<compile_context>
chip_gen: v6e
topology: v6e:2x2x1
jax: 0.10.0
libtpu: 0.0.40
codegen_flags: <defaults>
</compile_context>

<pallas_src>
import jax
import jax.numpy as jnp
from jax.experimental import pallas as pl
from jax.experimental.pallas import tpu as pltpu

LANE = 128


def _round_up(x, m):
    return (x + m - 1) // m * m


def _tpu_vmem_bytes():
    try:
        return int(pltpu.get_tpu_info().vmem_capacity_bytes)
    except Exception:
        return 64 << 20                       # conservative (v7x per-core VMEM)


_VMEM_CAP = _tpu_vmem_bytes()
# Conv row-tile working-set budget: ~45% of capacity (so ~29 MiB on v7x,
# capped at 48 MiB on v5e/v6e), per review guidance.
_CONV_BUDGET = min(int(_VMEM_CAP * 0.45), 48 << 20)
_CONV_VMEM_LIMIT = min(int(_VMEM_CAP * 0.85), 100 << 20)
_EPI_VMEM_LIMIT = min(int(_VMEM_CAP * 0.60), 48 << 20)


def _row_tile_candidates(H):
    cands = [t for t in range(8, H + 1, 8) if H % t == 0]
    return sorted(cands, reverse=True) if cands else [H]


def _pick_conv_row_tile(H, W, cin, cout):
    # Rough per-step working set: bf16 input (double-buffered) + bf16 y (dbuf)
    # + f32 accumulator + halo-concat copy + one transient tap + weights.
    for th in _row_tile_candidates(H):
        in_b = 2 * th * (W + 2) * cin * 2
        out_b = 2 * th * W * cout * 2
        acc_b = th * W * cout * 4
        win_b = (th + 2) * (W + 2) * cin * 2
        tap_b = 2 * th * W * cin * 2
        wgt_b = 2 * 9 * cin * cout * 2
        if in_b + out_b + acc_b + win_b + tap_b + wgt_b <= _CONV_BUDGET:
            return th
    return _row_tile_candidates(H)[-1]


def _pick_epi_row_tile(H, W, C):
    # HBM-bound epilogue: aim for multi-MiB lane-dense blocks.
    for te in _row_tile_candidates(H):
        if 6 * te * (W + 2) * C * 2 <= (24 << 20):
            return te
    return _row_tile_candidates(H)[-1]


# ----------------- conv1: im2col (taps packed into K) + batch stats ----------------- #
def _matmul_stats_kernel(x_ref, w_ref, y_ref, s_ref):
    # x_ref: (1, TH, W, K)    bf16  (K = 9*Cin padded to 128, taps pre-packed)
    # w_ref: (K, Cout_p)      bf16
    # y_ref: (1, TH, W, Cout) bf16  raw conv output (pre-BN)
    # s_ref: (1, 1, 2, Cout)  f32   per-(image, row-tile) [sum ; sum-of-squares]
    _, TH, W, K = x_ref.shape
    Cout = y_ref.shape[3]
    x = x_ref[0].reshape(TH * W, K)
    acc = jnp.dot(x, w_ref[...], preferred_element_type=jnp.float32)
    y_ref[0] = acc.reshape(TH, W, Cout).astype(y_ref.dtype)
    s_ref[0, 0] = jnp.concatenate(
        [jnp.sum(acc, axis=0, keepdims=True),
         jnp.sum(acc * acc, axis=0, keepdims=True)], axis=0)


def matmul_stats(xcol, w):
    # xcol: (N, H, W, K) bf16 ; w: (K, Cout_p) bf16
    N, H, W, K = xcol.shape
    Cout = w.shape[-1]
    TH = _pick_conv_row_tile(H, W, K, Cout)
    nt = H // TH
    return pl.pallas_call(
        _matmul_stats_kernel,
        out_shape=(jax.ShapeDtypeStruct((N, H, W, Cout), jnp.bfloat16),
                   jax.ShapeDtypeStruct((N, nt, 2, Cout), jnp.float32)),
        grid=(N, nt),
        in_specs=[pl.BlockSpec((1, TH, W, K), lambda n, i: (n, i, 0, 0)),
                  pl.BlockSpec((K, Cout), lambda n, i: (0, 0))],
        out_specs=(pl.BlockSpec((1, TH, W, Cout), lambda n, i: (n, i, 0, 0)),
                   pl.BlockSpec((1, 1, 2, Cout), lambda n, i: (n, i, 0, 0))),
        compiler_params=pltpu.CompilerParams(
            dimension_semantics=("parallel", "parallel"),
            vmem_limit_bytes=_CONV_VMEM_LIMIT),
    )(xcol, w)


# ------------- conv2 (and generic fallback): 9-tap 3x3 conv + batch stats ------------- #
def _conv3x3_halo_kernel(xm_ref, xt_ref, xb_ref, w_ref, y_ref, s_ref):
    # xm_ref: (1, TH, W+2, Cin)  bf16  main row tile (zero L/R columns baked in)
    # xt_ref: (1, 8,  W+2, Cin)  bf16  8-row block ending at the row above the tile
    # xb_ref: (1, 8,  W+2, Cin)  bf16  8-row block starting at the row below the tile
    # w_ref : (9, Cin, Cout)     bf16  tap-major weights (k = dy*3 + dx)
    # y_ref : (1, TH, W, Cout)   bf16  raw conv output (pre-BN)
    # s_ref : (1, 1, 2, Cout)    f32   per-(image, row-tile) stats partials
    _, TH, Wp, Cin = xm_ref.shape
    W = y_ref.shape[2]
    Cout = y_ref.shape[3]
    i = pl.program_id(1)
    nt = pl.num_programs(1)

    main = xm_ref[0]                                     # (TH, Wp, Cin)
    top = xt_ref[0, 7:8, :, :]                           # row just above the tile
    bot = xb_ref[0, 0:1, :, :]                           # row just below the tile
    zero_row = jnp.zeros_like(top)
    top = jnp.where(i == 0, zero_row, top)               # image top border
    bot = jnp.where(i == nt - 1, zero_row, bot)          # image bottom border
    xwin = jnp.concatenate([top, main, bot], axis=0)     # (TH+2, Wp, Cin)

    acc = jnp.zeros((TH * W, Cout), jnp.float32)
    for dy in range(3):                                  # dy-major: row slice reused
        xr = xwin[dy:dy + TH]                            # (TH, Wp, Cin)
        for dx in range(3):
            tap = xr[:, dx:dx + W, :].reshape(TH * W, Cin)
            acc = acc + jnp.dot(tap, w_ref[dy * 3 + dx],
                                preferred_element_type=jnp.float32)
    y_ref[0] = acc.reshape(TH, W, Cout).astype(y_ref.dtype)
    s_ref[0, 0] = jnp.concatenate(
        [jnp.sum(acc, axis=0, keepdims=True),
         jnp.sum(acc * acc, axis=0, keepdims=True)], axis=0)


def conv3x3_halo_stats(u, w9):
    # u: (N, H, W+2, Cin_p) bf16 with zero left/right columns; top/bottom
    #    borders are synthesized in-kernel.  w9: (9, Cin_p, Cout_p) bf16.
    N, H, Wp, Cin = u.shape
    W = Wp - 2
    Cout = w9.shape[-1]
    assert H >= 8 and H % 8 == 0, "halo conv path requires H % 8 == 0"
    TH = _pick_conv_row_tile(H, W, Cin, Cout)
    nt = H // TH
    thb = TH // 8
    hb_last = H // 8 - 1

    def top_map(n, i):                     # 8-row block containing row i*TH - 1
        return (n, jnp.maximum(i * thb - 1, 0), 0, 0)

    def bot_map(n, i):                     # 8-row block containing row (i+1)*TH
        return (n, jnp.minimum((i + 1) * thb, hb_last), 0, 0)

    return pl.pallas_call(
        _conv3x3_halo_kernel,
        out_shape=(jax.ShapeDtypeStruct((N, H, W, Cout), jnp.bfloat16),
                   jax.ShapeDtypeStruct((N, nt, 2, Cout), jnp.float32)),
        grid=(N, nt),
        in_specs=[pl.BlockSpec((1, TH, Wp, Cin), lambda n, i: (n, i, 0, 0)),
                  pl.BlockSpec((1, 8, Wp, Cin), top_map),
                  pl.BlockSpec((1, 8, Wp, Cin), bot_map),
                  pl.BlockSpec((9, Cin, Cout), lambda n, i: (0, 0, 0))],
        out_specs=(pl.BlockSpec((1, TH, W, Cout), lambda n, i: (n, i, 0, 0)),
                   pl.BlockSpec((1, 1, 2, Cout), lambda n, i: (n, i, 0, 0))),
        compiler_params=pltpu.CompilerParams(
            dimension_semantics=("parallel", "parallel"),
            vmem_limit_bytes=_CONV_VMEM_LIMIT),
    )(u, u, u, w9)


# --------------------- BN (batch stats) affine + ReLU epilogue ---------------------- #
def _make_bn_relu_kernel(pad_cols):
    def kernel(y_ref, sc_ref, sh_ref, o_ref):
        _, TE, W, C = y_ref.shape
        v = y_ref[0].astype(jnp.float32) * sc_ref[...] + sh_ref[...]
        r = jnp.maximum(v, 0.0).astype(o_ref.dtype)
        if pad_cols:                         # fused L/R zero columns for conv2's halo
            z = jnp.zeros((TE, 1, C), o_ref.dtype)
            o_ref[0] = jnp.concatenate([z, r, z], axis=1)
        else:
            o_ref[0] = r
    return kernel


def bn_relu_apply(y, scale, shift, pad_cols):
    # y: (N, H, W, C) bf16 -> (N, H, W(+2), C) bf16
    N, H, W, C = y.shape
    TE = _pick_epi_row_tile(H, W, C)
    Wout = W + 2 if pad_cols else W
    return pl.pallas_call(
        _make_bn_relu_kernel(pad_cols),
        out_shape=jax.ShapeDtypeStruct((N, H, Wout, C), jnp.bfloat16),
        grid=(N, H // TE),
        in_specs=[pl.BlockSpec((1, TE, W, C), lambda n, i: (n, i, 0, 0)),
                  pl.BlockSpec((1, C), lambda n, i: (0, 0)),
                  pl.BlockSpec((1, C), lambda n, i: (0, 0))],
        out_specs=pl.BlockSpec((1, TE, Wout, C), lambda n, i: (n, i, 0, 0)),
        compiler_params=pltpu.CompilerParams(
            dimension_semantics=("parallel", "parallel"),
            vmem_limit_bytes=_EPI_VMEM_LIMIT),
    )(y, scale.reshape(1, C), shift.reshape(1, C))


def _bn_scale_shift(stats, gamma, beta, count, eps=1e-5):
    # stats: (N, n_tiles, 2, C) partials -> batch mean/var (training-mode BN).
    s = jnp.sum(stats, axis=(0, 1))                        # (2, C)
    mean = s[0] / count
    var = jnp.maximum(s[1] / count - mean * mean, 0.0)     # cancellation guard
    scale = gamma / jnp.sqrt(var + eps)
    shift = beta - mean * scale
    return scale.astype(jnp.float32), shift.astype(jnp.float32)


# ------------------------------------ inconv.forward -------------------------------- #
def inconv_forward(x_nchw, p, out_ch):
    N, Cin, H, W = x_nchw.shape
    cnt = float(N * H * W)
    x = jnp.transpose(x_nchw, (0, 2, 3, 1)).astype(jnp.float32)   # NCHW -> NHWC

    if p["w1"].ndim == 2:
        # conv1 via im2col: taps packed into K (= 9*Cin, padded to 128 lanes).
        K = p["w1"].shape[0]
        xp = jnp.pad(x, ((0, 0), (1, 1), (1, 1), (0, 0)))
        cols = [xp[:, dy:dy + H, dx:dx + W, :]
                for dy in range(3) for dx in range(3)]
        xcol = jnp.concatenate(cols, axis=-1)                      # (N,H,W,9*Cin)
        xcol = jnp.pad(xcol, ((0, 0), (0, 0), (0, 0),
                              (0, K - 9 * Cin))).astype(jnp.bfloat16)
        y1, s1 = matmul_stats(xcol, p["w1"])
    else:
        # generic fallback (9*Cin > 128): zero L/R columns + lane pad, 9-tap kernel.
        cin_p = p["w1"].shape[1]
        xh = jnp.pad(x, ((0, 0), (0, 0), (1, 1),
                         (0, cin_p - Cin))).astype(jnp.bfloat16)
        y1, s1 = conv3x3_halo_stats(xh, p["w1"])

    sc1, sh1 = _bn_scale_shift(s1, p["g1"], p["be1"], cnt)
    u = bn_relu_apply(y1, sc1, sh1, pad_cols=True)                 # (N,H,W+2,Cp) bf16

    y2, s2 = conv3x3_halo_stats(u, p["w2"])
    sc2, sh2 = _bn_scale_shift(s2, p["g2"], p["be2"], cnt)
    a2 = bn_relu_apply(y2, sc2, sh2, pad_cols=False)               # (N,H,W,Cp) bf16

    out = a2[..., :out_ch].astype(jnp.float32)
    return jnp.transpose(out, (0, 3, 1, 2))                        # NHWC -> NCHW


# --------------------------------- deterministic params ----------------------------- #
def init_params(key, in_ch, out_ch):
    def conv_init(k, cin, cout):
        fan_in = cin * 9
        bound = 1.0 / (fan_in ** 0.5)
        kw, kb = jax.random.split(k)
        w = jax.random.uniform(kw, (3, 3, cin, cout), jnp.float32, -bound, bound)
        b = jax.random.uniform(kb, (cout,), jnp.float32, -bound, bound)
        return w, b

    k1, k2 = jax.random.split(key)
    w1, b1 = conv_init(k1, in_ch, out_ch)
    w2, b2 = conv_init(k2, out_ch, out_ch)
    ones = jnp.ones((out_ch,), jnp.float32)
    zeros = jnp.zeros((out_ch,), jnp.float32)
    return dict(w1=w1, b1=b1, g1=ones, be1=zeros,
                w2=w2, b2=b2, g2=ones, be2=zeros)


def prepare_params(p, in_ch, out_ch):
    """Pad channels to 128-lane multiples, pre-pack/cast weights for the kernels.
    Conv biases are dropped: they cancel exactly under training-mode BatchNorm."""
    cout_p = _round_up(out_ch, LANE)

    if 9 * in_ch <= LANE:
        # conv1 weights in im2col layout: row (dy*3+dx)*Cin + c, K padded to 128.
        w1 = (jnp.zeros((LANE, cout_p), jnp.float32)
              .at[:9 * in_ch, :out_ch].set(p["w1"].reshape(9 * in_ch, out_ch))
              .astype(jnp.bfloat16))
    else:
        cin_p = _round_up(in_ch, LANE)
        w1 = (jnp.zeros((9, cin_p, cout_p), jnp.float32)
              .at[:, :in_ch, :out_ch].set(p["w1"].reshape(9, in_ch, out_ch))
              .astype(jnp.bfloat16))

    w2 = (jnp.zeros((9, cout_p, cout_p), jnp.float32)
          .at[:, :out_ch, :out_ch].set(p["w2"].reshape(9, out_ch, out_ch))
          .astype(jnp.bfloat16))

    def pad_vec(v):
        return jnp.zeros((cout_p,), jnp.float32).at[:v.shape[0]].set(v)

    return dict(w1=w1, w2=w2,
                g1=pad_vec(p["g1"]), be1=pad_vec(p["be1"]),
                g2=pad_vec(p["g2"]), be2=pad_vec(p["be2"]))


# -------------------------------------- pure-JAX ref -------------------------------- #
def reference(x_nchw, p, eps=1e-5):
    def conv(x, w, b):
        y = jax.lax.conv_general_dilated(
            x, w, (1, 1), "SAME", dimension_numbers=("NHWC", "HWIO", "NHWC"))
        return y + b

    def bnr(y, g, be):
        mean = jnp.mean(y, axis=(0, 1, 2))
        var = jnp.mean((y - mean) ** 2, axis=(0, 1, 2))
        return jnp.maximum((y - mean) / jnp.sqrt(var + eps) * g + be, 0.0)

    x = jnp.transpose(x_nchw, (0, 2, 3, 1))
    x = bnr(conv(x, p["w1"], p["b1"]), p["g1"], p["be1"])
    x = bnr(conv(x, p["w2"], p["b2"]), p["g2"], p["be2"])
    return jnp.transpose(x, (0, 3, 1, 2))


if __name__ == "__main__":
    key = jax.random.PRNGKey(0)
    kx, kp = jax.random.split(key)
    in_ch, out_ch = 4, 8
    x = jax.random.normal(kx, (2, in_ch, 16, 16), jnp.float32)     # NCHW input
    params = init_params(kp, in_ch, out_ch)
    kparams = prepare_params(params, in_ch, out_ch)

    fwd = jax.jit(inconv_forward, static_argnums=(2,))
    out = jax.block_until_ready(fwd(x, kparams, out_ch))

    ref = reference(x, params)
    assert out.shape == (2, out_ch, 16, 16), out.shape
    # bf16 activations + bf16 MXU operands with f32 accumulation/statistics.
    err = float(jnp.max(jnp.abs(out - ref)))
    assert jnp.allclose(out, ref, atol=3e-2, rtol=3e-2), err
    print("KERNEL_OK")
</pallas_src>

<mosaic_0001>
module attributes {stable_mosaic.version = 11 : i64} {
  func.func @_matmul_stats_kernel(%arg0: i32, %arg1: i32, %arg2: memref<1x16x16x128xbf16, #tpu.memory_space<vmem>>, %arg3: memref<128x128xbf16, #tpu.memory_space<vmem>>, %arg4: memref<1x16x16x128xbf16, #tpu.memory_space<vmem>>, %arg5: memref<1x1x2x128xf32, #tpu.memory_space<vmem>>) attributes {dimension_semantics = [#tpu.dimension_semantics<parallel>, #tpu.dimension_semantics<parallel>], iteration_bounds = array<i64: 2, 1>, scalar_prefetch = 0 : i64, scratch_operands = 0 : i64, tpu.core_type = #tpu.core_type<tc>, window_params = [{transform_indices = @transform_0, window_bounds = array<i64: 1, 16, 16, 128>}, {pipeline_mode = #tpu.pipeline_mode<synchronous>, transform_indices = @transform_1, window_bounds = array<i64: 128, 128>}, {transform_indices = @transform_2, window_bounds = array<i64: 1, 16, 16, 128>}, {transform_indices = @transform_3, window_bounds = array<i64: 1, 1, 2, 128>}]} {
    %c0 = arith.constant 0 : index
    %c0_0 = arith.constant 0 : index
    %c0_1 = arith.constant 0 : index
    %c0_2 = arith.constant 0 : index
    %0 = vector.load %arg2[%c0, %c0_0, %c0_1, %c0_2] : memref<1x16x16x128xbf16, #tpu.memory_space<vmem>>, vector<1x16x16x128xbf16>
    %1 = vector.shape_cast %0 : vector<1x16x16x128xbf16> to vector<16x16x128xbf16>
    %2 = vector.shape_cast %1 : vector<16x16x128xbf16> to vector<256x128xbf16>
    %c0_3 = arith.constant 0 : index
    %c0_4 = arith.constant 0 : index
    %3 = vector.load %arg3[%c0_3, %c0_4] : memref<128x128xbf16, #tpu.memory_space<vmem>>, vector<128x128xbf16>
    %cst = arith.constant dense<0.000000e+00> : vector<256x128xf32>
    %4 = tpu.matmul %2, %3, %cst {dimension_numbers = #tpu.dot_dimension_numbers<[1], [0], [0], [1], [0, 0, 1, 1], [], []>} : vector<256x128xbf16>, vector<128x128xbf16>, vector<256x128xf32> -> vector<256x128xf32>
    %5 = vector.shape_cast %4 : vector<256x128xf32> to vector<16x16x128xf32>
    %6 = arith.truncf %5 : vector<16x16x128xf32> to vector<16x16x128xbf16>
    %c0_5 = arith.constant 0 : index
    %c0_6 = arith.constant 0 : index
    %c0_7 = arith.constant 0 : index
    %c0_8 = arith.constant 0 : index
    %7 = vector.load %arg4[%c0_5, %c0_6, %c0_7, %c0_8] : memref<1x16x16x128xbf16, #tpu.memory_space<vmem>>, vector<1x16x16x128xbf16>
    %8 = vector.shape_cast %7 : vector<1x16x16x128xbf16> to vector<16x16x128xbf16>
    %9 = vector.shape_cast %6 : vector<16x16x128xbf16> to vector<1x16x16x128xbf16>
    tpu.vector_store %arg4[%c0_5, %c0_6, %c0_7, %c0_8], %9 {strides = array<i32>} : memref<1x16x16x128xbf16, #tpu.memory_space<vmem>>, vector<1x16x16x128xbf16>,
    %cst_9 = arith.constant dense<0.000000e+00> : vector<128xf32>
    %10 = vector.multi_reduction <add>, %4, %cst_9 [0] : vector<256x128xf32> to vector<128xf32>
    %11 = vector.shape_cast %10 : vector<128xf32> to vector<1x128xf32>
    %12 = arith.mulf %4, %4 : vector<256x128xf32>
    %cst_10 = arith.constant dense<0.000000e+00> : vector<128xf32>
    %13 = vector.multi_reduction <add>, %12, %cst_10 [0] : vector<256x128xf32> to vector<128xf32>
    %14 = vector.shape_cast %13 : vector<128xf32> to vector<1x128xf32>
    %15 = tpu.concatenate %11, %14 in 0 : vector<1x128xf32>, vector<1x128xf32> -> vector<2x128xf32>
    %c0_11 = arith.constant 0 : index
    %c0_12 = arith.constant 0 : index
    %c0_13 = arith.constant 0 : index
    %c0_14 = arith.constant 0 : index
    %16 = vector.load %arg5[%c0_11, %c0_12, %c0_13, %c0_14] : memref<1x1x2x128xf32, #tpu.memory_space<vmem>>, vector<1x1x2x128xf32>
    %17 = vector.shape_cast %16 : vector<1x1x2x128xf32> to vector<2x128xf32>
    %18 = vector.shape_cast %15 : vector<2x128xf32> to vector<1x1x2x128xf32>
    tpu.vector_store %arg5[%c0_11, %c0_12, %c0_13, %c0_14], %18 {strides = array<i32>} : memref<1x1x2x128xf32, #tpu.memory_space<vmem>>, vector<1x1x2x128xf32>,
    return
  }
  func.func @transform_0(%arg0: i32, %arg1: i32) -> (i32, i32, i32, i32) {
    %c0_i32 = arith.constant 0 : i32
    %c0_i32_0 = arith.constant 0 : i32
    %c0_i32_1 = arith.constant 0 : i32
    return %arg0, %arg1, %c0_i32, %c0_i32_0 : i32, i32, i32, i32
  }
  func.func @transform_1(%arg0: i32, %arg1: i32) -> (i32, i32) {
    %c0_i32 = arith.constant 0 : i32
    %c0_i32_0 = arith.constant 0 : i32
    %c0_i32_1 = arith.constant 0 : i32
    return %c0_i32, %c0_i32_0 : i32, i32
  }
  func.func @transform_2(%arg0: i32, %arg1: i32) -> (i32, i32, i32, i32) {
    %c0_i32 = arith.constant 0 : i32
    %c0_i32_0 = arith.constant 0 : i32
    %c0_i32_1 = arith.constant 0 : i32
    return %arg0, %arg1, %c0_i32, %c0_i32_0 : i32, i32, i32, i32
  }
  func.func @transform_3(%arg0: i32, %arg1: i32) -> (i32, i32, i32, i32) {
    %c0_i32 = arith.constant 0 : i32
    %c0_i32_0 = arith.constant 0 : i32
    %c0_i32_1 = arith.constant 0 : i32
    return %arg0, %arg1, %c0_i32, %c0_i32_0 : i32, i32, i32, i32
  }
}

module attributes {stable_mosaic.version = 11 : i64} {
  func.func @_conv3x3_halo_kernel(%arg0: i32, %arg1: i32, %arg2: memref<1x16x18x128xbf16, #tpu.memory_space<vmem>>, %arg3: memref<1x8x18x128xbf16, #tpu.memory_space<vmem>>, %arg4: memref<1x8x18x128xbf16, #tpu.memory_space<vmem>>, %arg5: memref<9x128x128xbf16, #tpu.memory_space<vmem>>, %arg6: memref<1x16x16x128xbf16, #tpu.memory_space<vmem>>, %arg7: memref<1x1x2x128xf32, #tpu.memory_space<vmem>>) attributes {dimension_semantics = [#tpu.dimension_semantics<parallel>, #tpu.dimension_semantics<parallel>], iteration_bounds = array<i64: 2, 1>, scalar_prefetch = 0 : i64, scratch_operands = 0 : i64, tpu.core_type = #tpu.core_type<tc>, window_params = [{transform_indices = @transform_0, window_bounds = array<i64: 1, 16, 18, 128>}, {transform_indices = @transform_1, window_bounds = array<i64: 1, 8, 18, 128>}, {transform_indices = @transform_2, window_bounds = array<i64: 1, 8, 18, 128>}, {pipeline_mode = #tpu.pipeline_mode<synchronous>, transform_indices = @transform_3, window_bounds = array<i64: 9, 128, 128>}, {transform_indices = @transform_4, window_bounds = array<i64: 1, 16, 16, 128>}, {transform_indices = @transform_5, window_bounds = array<i64: 1, 1, 2, 128>}]} {
    %c0 = arith.constant 0 : index
    %c0_0 = arith.constant 0 : index
    %c0_1 = arith.constant 0 : index
    %c0_2 = arith.constant 0 : index
    %0 = vector.load %arg2[%c0, %c0_0, %c0_1, %c0_2] : memref<1x16x18x128xbf16, #tpu.memory_space<vmem>>, vector<1x16x18x128xbf16>
    %1 = vector.shape_cast %0 : vector<1x16x18x128xbf16> to vector<16x18x128xbf16>
    %c0_3 = arith.constant 0 : index
    %c7 = arith.constant 7 : index
    %c0_4 = arith.constant 0 : index
    %c0_5 = arith.constant 0 : index
    %2 = vector.load %arg3[%c0_3, %c7, %c0_4, %c0_5] : memref<1x8x18x128xbf16, #tpu.memory_space<vmem>>, vector<1x1x18x128xbf16>
    %3 = vector.shape_cast %2 : vector<1x1x18x128xbf16> to vector<1x18x128xbf16>
    %c0_6 = arith.constant 0 : index
    %c0_7 = arith.constant 0 : index
    %c0_8 = arith.constant 0 : index
    %c0_9 = arith.constant 0 : index
    %4 = vector.load %arg4[%c0_6, %c0_7, %c0_8, %c0_9] : memref<1x8x18x128xbf16, #tpu.memory_space<vmem>>, vector<1x1x18x128xbf16>
    %5 = vector.shape_cast %4 : vector<1x1x18x128xbf16> to vector<1x18x128xbf16>
    %cst = arith.constant 0.000000e+00 : bf16
    %6 = vector.broadcast %cst : bf16 to vector<1x18x128xbf16>
    %c0_i32 = arith.constant 0 : i32
    %7 = arith.cmpi eq, %arg1, %c0_i32 : i32
    %8 = arith.select %7, %6, %3 : vector<1x18x128xbf16>
    %c0_i32_10 = arith.constant 0 : i32
    %9 = arith.cmpi eq, %arg1, %c0_i32_10 : i32
    %10 = arith.select %9, %6, %5 : vector<1x18x128xbf16>
    %11 = tpu.concatenate %8, %1, %10 in 0 : vector<1x18x128xbf16>, vector<16x18x128xbf16>, vector<1x18x128xbf16> -> vector<18x18x128xbf16>
    %cst_11 = arith.constant 0.000000e+00 : f32
    %12 = vector.broadcast %cst_11 : f32 to vector<256x128xf32>
    %13 = vector.extract_strided_slice %11 {offsets = [0, 0, 0], sizes = [16, 18, 128], strides = [1, 1, 1]} : vector<18x18x128xbf16> to vector<16x18x128xbf16>
    %14 = vector.extract_strided_slice %13 {offsets = [0, 0, 0], sizes = [16, 16, 128], strides = [1, 1, 1]} : vector<16x18x128xbf16> to vector<16x16x128xbf16>
    %15 = vector.shape_cast %14 : vector<16x16x128xbf16> to vector<256x128xbf16>
    %c0_12 = arith.constant 0 : index
    %c0_13 = arith.constant 0 : index
    %c0_14 = arith.constant 0 : index
    %16 = vector.load %arg5[%c0_12, %c0_13, %c0_14] : memref<9x128x128xbf16, #tpu.memory_space<vmem>>, vector<1x128x128xbf16>
    %17 = vector.shape_cast %16 : vector<1x128x128xbf16> to vector<128x128xbf16>
    %cst_15 = arith.constant dense<0.000000e+00> : vector<256x128xf32>
    %18 = tpu.matmul %15, %17, %cst_15 {dimension_numbers = #tpu.dot_dimension_numbers<[1], [0], [0], [1], [0, 0, 1, 1], [], []>} : vector<256x128xbf16>, vector<128x128xbf16>, vector<256x128xf32> -> vector<256x128xf32>
    %19 = arith.addf %12, %18 : vector<256x128xf32>
    %20 = vector.extract_strided_slice %13 {offsets = [0, 1, 0], sizes = [16, 16, 128], strides = [1, 1, 1]} : vector<16x18x128xbf16> to vector<16x16x128xbf16>
    %21 = vector.shape_cast %20 : vector<16x16x128xbf16> to vector<256x128xbf16>
    %c1 = arith.constant 1 : index
    %c0_16 = arith.constant 0 : index
    %c0_17 = arith.constant 0 : index
    %22 = vector.load %arg5[%c1, %c0_16, %c0_17] : memref<9x128x128xbf16, #tpu.memory_space<vmem>>, vector<1x128x128xbf16>
    %23 = vector.shape_cast %22 : vector<1x128x128xbf16> to vector<128x128xbf16>
    %cst_18 = arith.constant dense<0.000000e+00> : vector<256x128xf32>
    %24 = tpu.matmul %21, %23, %cst_18 {dimension_numbers = #tpu.dot_dimension_numbers<[1], [0], [0], [1], [0, 0, 1, 1], [], []>} : vector<256x128xbf16>, vector<128x128xbf16>, vector<256x128xf32> -> vector<256x128xf32>
    %25 = arith.addf %19, %24 : vector<256x128xf32>
    %26 = vector.extract_strided_slice %13 {offsets = [0, 2, 0], sizes = [16, 16, 128], strides = [1, 1, 1]} : vector<16x18x128xbf16> to vector<16x16x128xbf16>
    %27 = vector.shape_cast %26 : vector<16x16x128xbf16> to vector<256x128xbf16>
    %c2 = arith.constant 2 : index
    %c0_19 = arith.constant 0 : index
    %c0_20 = arith.constant 0 : index
    %28 = vector.load %arg5[%c2, %c0_19, %c0_20] : memref<9x128x128xbf16, #tpu.memory_space<vmem>>, vector<1x128x128xbf16>
    %29 = vector.shape_cast %28 : vector<1x128x128xbf16> to vector<128x128xbf16>
    %cst_21 = arith.constant dense<0.000000e+00> : vector<256x128xf32>
    %30 = tpu.matmul %27, %29, %cst_21 {dimension_numbers = #tpu.dot_dimension_numbers<[1], [0], [0], [1], [0, 0, 1, 1], [], []>} : vector<256x128xbf16>, vector<128x128xbf16>, vector<256x128xf32> -> vector<256x128xf32>
    %31 = arith.addf %25, %30 : vector<256x128xf32>
    %32 = vector.extract_strided_slice %11 {offsets = [1, 0, 0], sizes = [16, 18, 128], strides = [1, 1, 1]} : vector<18x18x128xbf16> to vector<16x18x128xbf16>
    %33 = vector.extract_strided_slice %32 {offsets = [0, 0, 0], sizes = [16, 16, 128], strides = [1, 1, 1]} : vector<16x18x128xbf16> to vector<16x16x128xbf16>
    %34 = vector.shape_cast %33 : vector<16x16x128xbf16> to vector<256x128xbf16>
    %c3 = arith.constant 3 : index
    %c0_22 = arith.constant 0 : index
    %c0_23 = arith.constant 0 : index
    %35 = vector.load %arg5[%c3, %c0_22, %c0_23] : memref<9x128x128xbf16, #tpu.memory_space<vmem>>, vector<1x128x128xbf16>
    %36 = vector.shape_cast %35 : vector<1x128x128xbf16> to vector<128x128xbf16>
    %cst_24 = arith.constant dense<0.000000e+00> : vector<256x128xf32>
    %37 = tpu.matmul %34, %36, %cst_24 {dimension_numbers = #tpu.dot_dimension_numbers<[1], [0], [0], [1], [0, 0, 1, 1], [], []>} : vector<256x128xbf16>, vector<128x128xbf16>, vector<256x128xf32> -> vector<256x128xf32>
    %38 = arith.addf %31, %37 : vector<256x128xf32>
    %39 = vector.extract_strided_slice %32 {offsets = [0, 1, 0], sizes = [16, 16, 128], strides = [1, 1, 1]} : vector<16x18x128xbf16> to vector<16x16x128xbf16>
    %40 = vector.shape_cast %39 : vector<16x16x128xbf16> to vector<256x128xbf16>
    %c4 = arith.constant 4 : index
    %c0_25 = arith.constant 0 : index
    %c0_26 = arith.constant 0 : index
    %41 = vector.load %arg5[%c4, %c0_25, %c0_26] : memref<9x128x128xbf16, #tpu.memory_space<vmem>>, vector<1x128x128xbf16>
    %42 = vector.shape_cast %41 : vector<1x128x128xbf16> to vector<128x128xbf16>
    %cst_27 = arith.constant dense<0.000000e+00> : vector<256x128xf32>
    %43 = tpu.matmul %40, %42, %cst_27 {dimension_numbers = #tpu.dot_dimension_numbers<[1], [0], [0], [1], [0, 0, 1, 1], [], []>} : vector<256x128xbf16>, vector<128x128xbf16>, vector<256x128xf32> -> vector<256x128xf32>
    %44 = arith.addf %38, %43 : vector<256x128xf32>
    %45 = vector.extract_strided_slice %32 {offsets = [0, 2, 0], sizes = [16, 16, 128], strides = [1, 1, 1]} : vector<16x18x128xbf16> to vector<16x16x128xbf16>
    %46 = vector.shape_cast %45 : vector<16x16x128xbf16> to vector<256x128xbf16>
    %c5 = arith.constant 5 : index
    %c0_28 = arith.constant 0 : index
    %c0_29 = arith.constant 0 : index
    %47 = vector.load %arg5[%c5, %c0_28, %c0_29] : memref<9x128x128xbf16, #tpu.memory_space<vmem>>, vector<1x128x128xbf16>
    %48 = vector.shape_cast %47 : vector<1x128x128xbf16> to vector<128x128xbf16>
    %cst_30 = arith.constant dense<0.000000e+00> : vector<256x128xf32>
    %49 = tpu.matmul %46, %48, %cst_30 {dimension_numbers = #tpu.dot_dimension_numbers<[1], [0], [0], [1], [0, 0, 1, 1], [], []>} : vector<256x128xbf16>, vector<128x128xbf16>, vector<256x128xf32> -> vector<256x128xf32>
    %50 = arith.addf %44, %49 : vector<256x128xf32>
    %51 = vector.extract_strided_slice %11 {offsets = [2, 0, 0], sizes = [16, 18, 128], strides = [1, 1, 1]} : vector<18x18x128xbf16> to vector<16x18x128xbf16>
    %52 = vector.extract_strided_slice %51 {offsets = [0, 0, 0], sizes = [16, 16, 128], strides = [1, 1, 1]} : vector<16x18x128xbf16> to vector<16x16x128xbf16>
    %53 = vector.shape_cast %52 : vector<16x16x128xbf16> to vector<256x128xbf16>
    %c6 = arith.constant 6 : index
    %c0_31 = arith.constant 0 : index
    %c0_32 = arith.constant 0 : index
    %54 = vector.load %arg5[%c6, %c0_31, %c0_32] : memref<9x128x128xbf16, #tpu.memory_space<vmem>>, vector<1x128x128xbf16>
    %55 = vector.shape_cast %54 : vector<1x128x128xbf16> to vector<128x128xbf16>
    %cst_33 = arith.constant dense<0.000000e+00> : vector<256x128xf32>
    %56 = tpu.matmul %53, %55, %cst_33 {dimension_numbers = #tpu.dot_dimension_numbers<[1], [0], [0], [1], [0, 0, 1, 1], [], []>} : vector<256x128xbf16>, vector<128x128xbf16>, vector<256x128xf32> -> vector<256x128xf32>
    %57 = arith.addf %50, %56 : vector<256x128xf32>
    %58 = vector.extract_strided_slice %51 {offsets = [0, 1, 0], sizes = [16, 16, 128], strides = [1, 1, 1]} : vector<16x18x128xbf16> to vector<16x16x128xbf16>
    %59 = vector.shape_cast %58 : vector<16x16x128xbf16> to vector<256x128xbf16>
    %c7_34 = arith.constant 7 : index
    %c0_35 = arith.constant 0 : index
    %c0_36 = arith.constant 0 : index
    %60 = vector.load %arg5[%c7_34, %c0_35, %c0_36] : memref<9x128x128xbf16, #tpu.memory_space<vmem>>, vector<1x128x128xbf16>
    %61 = vector.shape_cast %60 : vector<1x128x128xbf16> to vector<128x128xbf16>
    %cst_37 = arith.constant dense<0.000000e+00> : vector<256x128xf32>
    %62 = tpu.matmul %59, %61, %cst_37 {dimension_numbers = #tpu.dot_dimension_numbers<[1], [0], [0], [1], [0, 0, 1, 1], [], []>} : vector<256x128xbf16>, vector<128x128xbf16>, vector<256x128xf32> -> vector<256x128xf32>
    %63 = arith.addf %57, %62 : vector<256x128xf32>
    %64 = vector.extract_strided_slice %51 {offsets = [0, 2, 0], sizes = [16, 16, 128], strides = [1, 1, 1]} : vector<16x18x128xbf16> to vector<16x16x128xbf16>
    %65 = vector.shape_cast %64 : vector<16x16x128xbf16> to vector<256x128xbf16>
    %c8 = arith.constant 8 : index
    %c0_38 = arith.constant 0 : index
    %c0_39 = arith.constant 0 : index
    %66 = vector.load %arg5[%c8, %c0_38, %c0_39] : memref<9x128x128xbf16, #tpu.memory_space<vmem>>, vector<1x128x128xbf16>
    %67 = vector.shape_cast %66 : vector<1x128x128xbf16> to vector<128x128xbf16>
    %cst_40 = arith.constant dense<0.000000e+00> : vector<256x128xf32>
    %68 = tpu.matmul %65, %67, %cst_40 {dimension_numbers = #tpu.dot_dimension_numbers<[1], [0], [0], [1], [0, 0, 1, 1], [], []>} : vector<256x128xbf16>, vector<128x128xbf16>, vector<256x128xf32> -> vector<256x128xf32>
    %69 = arith.addf %63, %68 : vector<256x128xf32>
    %70 = vector.shape_cast %69 : vector<256x128xf32> to vector<16x16x128xf32>
    %71 = arith.truncf %70 : vector<16x16x128xf32> to vector<16x16x128xbf16>
    %c0_41 = arith.constant 0 : index
    %c0_42 = arith.constant 0 : index
    %c0_43 = arith.constant 0 : index
    %c0_44 = arith.constant 0 : index
    %72 = vector.load %arg6[%c0_41, %c0_42, %c0_43, %c0_44] : memref<1x16x16x128xbf16, #tpu.memory_space<vmem>>, vector<1x16x16x128xbf16>
    %73 = vector.shape_cast %72 : vector<1x16x16x128xbf16> to vector<16x16x128xbf16>
    %74 = vector.shape_cast %71 : vector<16x16x128xbf16> to vector<1x16x16x128xbf16>
    tpu.vector_store %arg6[%c0_41, %c0_42, %c0_43, %c0_44], %74 {strides = array<i32>} : memref<1x16x16x128xbf16, #tpu.memory_space<vmem>>, vector<1x16x16x128xbf16>,
    %cst_45 = arith.constant dense<0.000000e+00> : vector<128xf32>
    %75 = vector.multi_reduction <add>, %69, %cst_45 [0] : vector<256x128xf32> to vector<128xf32>
    %76 = vector.shape_cast %75 : vector<128xf32> to vector<1x128xf32>
    %77 = arith.mulf %69, %69 : vector<256x128xf32>
    %cst_46 = arith.constant dense<0.000000e+00> : vector<128xf32>
    %78 = vector.multi_reduction <add>, %77, %cst_46 [0] : vector<256x128xf32> to vector<128xf32>
    %79 = vector.shape_cast %78 : vector<128xf32> to vector<1x128xf32>
    %80 = tpu.concatenate %76, %79 in 0 : vector<1x128xf32>, vector<1x128xf32> -> vector<2x128xf32>
    %c0_47 = arith.constant 0 : index
    %c0_48 = arith.constant 0 : index
    %c0_49 = arith.constant 0 : index
    %c0_50 = arith.constant 0 : index
    %81 = vector.load %arg7[%c0_47, %c0_48, %c0_49, %c0_50] : memref<1x1x2x128xf32, #tpu.memory_space<vmem>>, vector<1x1x2x128xf32>
    %82 = vector.shape_cast %81 : vector<1x1x2x128xf32> to vector<2x128xf32>
    %83 = vector.shape_cast %80 : vector<2x128xf32> to vector<1x1x2x128xf32>
    tpu.vector_store %arg7[%c0_47, %c0_48, %c0_49, %c0_50], %83 {strides = array<i32>} : memref<1x1x2x128xf32, #tpu.memory_space<vmem>>, vector<1x1x2x128xf32>,
    return
  }
  func.func @transform_0(%arg0: i32, %arg1: i32) -> (i32, i32, i32, i32) {
    %c0_i32 = arith.constant 0 : i32
    %c0_i32_0 = arith.constant 0 : i32
    %c0_i32_1 = arith.constant 0 : i32
    return %arg0, %arg1, %c0_i32, %c0_i32_0 : i32, i32, i32, i32
  }
  func.func @transform_1(%arg0: i32, %arg1: i32) -> (i32, i32, i32, i32) {
    %c2_i32 = arith.constant 2 : i32
    %0 = arith.muli %arg1, %c2_i32 : i32
    %c1_i32 = arith.constant 1 : i32
    %1 = arith.subi %0, %c1_i32 : i32
    %c0_i32 = arith.constant 0 : i32
    %2 = arith.maxsi %1, %c0_i32 : i32
    %c0_i32_0 = arith.constant 0 : i32
    %c0_i32_1 = arith.constant 0 : i32
    %c0_i32_2 = arith.constant 0 : i32
    return %arg0, %2, %c0_i32_0, %c0_i32_1 : i32, i32, i32, i32
  }
  func.func @transform_2(%arg0: i32, %arg1: i32) -> (i32, i32, i32, i32) {
    %c1_i32 = arith.constant 1 : i32
    %0 = arith.addi %arg1, %c1_i32 : i32
    %c2_i32 = arith.constant 2 : i32
    %1 = arith.muli %0, %c2_i32 : i32
    %c1_i32_0 = arith.constant 1 : i32
    %2 = arith.minsi %1, %c1_i32_0 : i32
    %c0_i32 = arith.constant 0 : i32
    %c0_i32_1 = arith.constant 0 : i32
    %c0_i32_2 = arith.constant 0 : i32
    return %arg0, %2, %c0_i32, %c0_i32_1 : i32, i32, i32, i32
  }
  func.func @transform_3(%arg0: i32, %arg1: i32) -> (i32, i32, i32) {
    %c0_i32 = arith.constant 0 : i32
    %c0_i32_0 = arith.constant 0 : i32
    %c0_i32_1 = arith.constant 0 : i32
    %c0_i32_2 = arith.constant 0 : i32
    return %c0_i32, %c0_i32_0, %c0_i32_1 : i32, i32, i32
  }
  func.func @transform_4(%arg0: i32, %arg1: i32) -> (i32, i32, i32, i32) {
    %c0_i32 = arith.constant 0 : i32
    %c0_i32_0 = arith.constant 0 : i32
    %c0_i32_1 = arith.constant 0 : i32
    return %arg0, %arg1, %c0_i32, %c0_i32_0 : i32, i32, i32, i32
  }
  func.func @transform_5(%arg0: i32, %arg1: i32) -> (i32, i32, i32, i32) {
    %c0_i32 = arith.constant 0 : i32
    %c0_i32_0 = arith.constant 0 : i32
    %c0_i32_1 = arith.constant 0 : i32
    return %arg0, %arg1, %c0_i32, %c0_i32_0 : i32, i32, i32, i32
  }
}

module attributes {stable_mosaic.version = 11 : i64} {
  func.func @kernel(%arg0: i32, %arg1: i32, %arg2: memref<1x16x16x128xbf16, #tpu.memory_space<vmem>>, %arg3: memref<1x128xf32, #tpu.memory_space<vmem>>, %arg4: memref<1x128xf32, #tpu.memory_space<vmem>>, %arg5: memref<1x16x18x128xbf16, #tpu.memory_space<vmem>>) attributes {dimension_semantics = [#tpu.dimension_semantics<parallel>, #tpu.dimension_semantics<parallel>], iteration_bounds = array<i64: 2, 1>, scalar_prefetch = 0 : i64, scratch_operands = 0 : i64, tpu.core_type = #tpu.core_type<tc>, window_params = [{transform_indices = @transform_0, window_bounds = array<i64: 1, 16, 16, 128>}, {pipeline_mode = #tpu.pipeline_mode<synchronous>, transform_indices = @transform_1, window_bounds = array<i64: 1, 128>}, {pipeline_mode = #tpu.pipeline_mode<synchronous>, transform_indices = @transform_2, window_bounds = array<i64: 1, 128>}, {transform_indices = @transform_3, window_bounds = array<i64: 1, 16, 18, 128>}]} {
    %c0 = arith.constant 0 : index
    %c0_0 = arith.constant 0 : index
    %c0_1 = arith.constant 0 : index
    %c0_2 = arith.constant 0 : index
    %0 = vector.load %arg2[%c0, %c0_0, %c0_1, %c0_2] : memref<1x16x16x128xbf16, #tpu.memory_space<vmem>>, vector<1x16x16x128xbf16>
    %1 = vector.shape_cast %0 : vector<1x16x16x128xbf16> to vector<16x16x128xbf16>
    %2 = arith.extf %1 : vector<16x16x128xbf16> to vector<16x16x128xf32>
    %c0_3 = arith.constant 0 : index
    %c0_4 = arith.constant 0 : index
    %3 = vector.load %arg3[%c0_3, %c0_4] : memref<1x128xf32, #tpu.memory_space<vmem>>, vector<1x128xf32>
    %4 = vector.shape_cast %3 : vector<1x128xf32> to vector<1x1x128xf32>
    %5 = vector.broadcast %4 : vector<1x1x128xf32> to vector<16x16x128xf32>
    %6 = arith.mulf %2, %5 : vector<16x16x128xf32>
    %c0_5 = arith.constant 0 : index
    %c0_6 = arith.constant 0 : index
    %7 = vector.load %arg4[%c0_5, %c0_6] : memref<1x128xf32, #tpu.memory_space<vmem>>, vector<1x128xf32>
    %8 = vector.shape_cast %7 : vector<1x128xf32> to vector<1x1x128xf32>
    %9 = vector.broadcast %8 : vector<1x1x128xf32> to vector<16x16x128xf32>
    %10 = arith.addf %6, %9 : vector<16x16x128xf32>
    %cst = arith.constant 0.000000e+00 : f32
    %11 = vector.broadcast %cst : f32 to vector<16x16x128xf32>
    %12 = arith.maximumf %10, %11 : vector<16x16x128xf32>
    %13 = arith.truncf %12 : vector<16x16x128xf32> to vector<16x16x128xbf16>
    %cst_7 = arith.constant 0.000000e+00 : bf16
    %14 = vector.broadcast %cst_7 : bf16 to vector<16x1x128xbf16>
    %15 = tpu.concatenate %14, %13, %14 in 1 : vector<16x1x128xbf16>, vector<16x16x128xbf16>, vector<16x1x128xbf16> -> vector<16x18x128xbf16>
    %c0_8 = arith.constant 0 : index
    %c0_9 = arith.constant 0 : index
    %c0_10 = arith.constant 0 : index
    %c0_11 = arith.constant 0 : index
    %16 = vector.load %arg5[%c0_8, %c0_9, %c0_10, %c0_11] : memref<1x16x18x128xbf16, #tpu.memory_space<vmem>>, vector<1x16x18x128xbf16>
    %17 = vector.shape_cast %16 : vector<1x16x18x128xbf16> to vector<16x18x128xbf16>
    %18 = vector.shape_cast %15 : vector<16x18x128xbf16> to vector<1x16x18x128xbf16>
    tpu.vector_store %arg5[%c0_8, %c0_9, %c0_10, %c0_11], %18 {strides = array<i32>} : memref<1x16x18x128xbf16, #tpu.memory_space<vmem>>, vector<1x16x18x128xbf16>,
    return
  }
  func.func @transform_0(%arg0: i32, %arg1: i32) -> (i32, i32, i32, i32) {
    %c0_i32 = arith.constant 0 : i32
    %c0_i32_0 = arith.constant 0 : i32
    %c0_i32_1 = arith.constant 0 : i32
    return %arg0, %arg1, %c0_i32, %c0_i32_0 : i32, i32, i32, i32
  }
  func.func @transform_1(%arg0: i32, %arg1: i32) -> (i32, i32) {
    %c0_i32 = arith.constant 0 : i32
    %c0_i32_0 = arith.constant 0 : i32
    %c0_i32_1 = arith.constant 0 : i32
    return %c0_i32, %c0_i32_0 : i32, i32
  }
  func.func @transform_2(%arg0: i32, %arg1: i32) -> (i32, i32) {
    %c0_i32 = arith.constant 0 : i32
    %c0_i32_0 = arith.constant 0 : i32
    %c0_i32_1 = arith.constant 0 : i32
    return %c0_i32, %c0_i32_0 : i32, i32
  }
  func.func @transform_3(%arg0: i32, %arg1: i32) -> (i32, i32, i32, i32) {
    %c0_i32 = arith.constant 0 : i32
    %c0_i32_0 = arith.constant 0 : i32
    %c0_i32_1 = arith.constant 0 : i32
    return %arg0, %arg1, %c0_i32, %c0_i32_0 : i32, i32, i32, i32
  }
}

module attributes {stable_mosaic.version = 11 : i64} {
  func.func @kernel(%arg0: i32, %arg1: i32, %arg2: memref<1x16x16x128xbf16, #tpu.memory_space<vmem>>, %arg3: memref<1x128xf32, #tpu.memory_space<vmem>>, %arg4: memref<1x128xf32, #tpu.memory_space<vmem>>, %arg5: memref<1x16x16x128xbf16, #tpu.memory_space<vmem>>) attributes {dimension_semantics = [#tpu.dimension_semantics<parallel>, #tpu.dimension_semantics<parallel>], iteration_bounds = array<i64: 2, 1>, scalar_prefetch = 0 : i64, scratch_operands = 0 : i64, tpu.core_type = #tpu.core_type<tc>, window_params = [{transform_indices = @transform_0, window_bounds = array<i64: 1, 16, 16, 128>}, {pipeline_mode = #tpu.pipeline_mode<synchronous>, transform_indices = @transform_1, window_bounds = array<i64: 1, 128>}, {pipeline_mode = #tpu.pipeline_mode<synchronous>, transform_indices = @transform_2, window_bounds = array<i64: 1, 128>}, {transform_indices = @transform_3, window_bounds = array<i64: 1, 16, 16, 128>}]} {
    %c0 = arith.constant 0 : index
    %c0_0 = arith.constant 0 : index
    %c0_1 = arith.constant 0 : index
    %c0_2 = arith.constant 0 : index
    %0 = vector.load %arg2[%c0, %c0_0, %c0_1, %c0_2] : memref<1x16x16x128xbf16, #tpu.memory_space<vmem>>, vector<1x16x16x128xbf16>
    %1 = vector.shape_cast %0 : vector<1x16x16x128xbf16> to vector<16x16x128xbf16>
    %2 = arith.extf %1 : vector<16x16x128xbf16> to vector<16x16x128xf32>
    %c0_3 = arith.constant 0 : index
    %c0_4 = arith.constant 0 : index
    %3 = vector.load %arg3[%c0_3, %c0_4] : memref<1x128xf32, #tpu.memory_space<vmem>>, vector<1x128xf32>
    %4 = vector.shape_cast %3 : vector<1x128xf32> to vector<1x1x128xf32>
    %5 = vector.broadcast %4 : vector<1x1x128xf32> to vector<16x16x128xf32>
    %6 = arith.mulf %2, %5 : vector<16x16x128xf32>
    %c0_5 = arith.constant 0 : index
    %c0_6 = arith.constant 0 : index
    %7 = vector.load %arg4[%c0_5, %c0_6] : memref<1x128xf32, #tpu.memory_space<vmem>>, vector<1x128xf32>
    %8 = vector.shape_cast %7 : vector<1x128xf32> to vector<1x1x128xf32>
    %9 = vector.broadcast %8 : vector<1x1x128xf32> to vector<16x16x128xf32>
    %10 = arith.addf %6, %9 : vector<16x16x128xf32>
    %cst = arith.constant 0.000000e+00 : f32
    %11 = vector.broadcast %cst : f32 to vector<16x16x128xf32>
    %12 = arith.maximumf %10, %11 : vector<16x16x128xf32>
    %13 = arith.truncf %12 : vector<16x16x128xf32> to vector<16x16x128xbf16>
    %c0_7 = arith.constant 0 : index
    %c0_8 = arith.constant 0 : index
    %c0_9 = arith.constant 0 : index
    %c0_10 = arith.constant 0 : index
    %14 = vector.load %arg5[%c0_7, %c0_8, %c0_9, %c0_10] : memref<1x16x16x128xbf16, #tpu.memory_space<vmem>>, vector<1x16x16x128xbf16>
    %15 = vector.shape_cast %14 : vector<1x16x16x128xbf16> to vector<16x16x128xbf16>
    %16 = vector.shape_cast %13 : vector<16x16x128xbf16> to vector<1x16x16x128xbf16>
    tpu.vector_store %arg5[%c0_7, %c0_8, %c0_9, %c0_10], %16 {strides = array<i32>} : memref<1x16x16x128xbf16, #tpu.memory_space<vmem>>, vector<1x16x16x128xbf16>,
    return
  }
  func.func @transform_0(%arg0: i32, %arg1: i32) -> (i32, i32, i32, i32) {
    %c0_i32 = arith.constant 0 : i32
    %c0_i32_0 = arith.constant 0 : i32
    %c0_i32_1 = arith.constant 0 : i32
    return %arg0, %arg1, %c0_i32, %c0_i32_0 : i32, i32, i32, i32
  }
  func.func @transform_1(%arg0: i32, %arg1: i32) -> (i32, i32) {
    %c0_i32 = arith.constant 0 : i32
    %c0_i32_0 = arith.constant 0 : i32
    %c0_i32_1 = arith.constant 0 : i32
    return %c0_i32, %c0_i32_0 : i32, i32
  }
  func.func @transform_2(%arg0: i32, %arg1: i32) -> (i32, i32) {
    %c0_i32 = arith.constant 0 : i32
    %c0_i32_0 = arith.constant 0 : i32
    %c0_i32_1 = arith.constant 0 : i32
    return %c0_i32, %c0_i32_0 : i32, i32
  }
  func.func @transform_3(%arg0: i32, %arg1: i32) -> (i32, i32, i32, i32) {
    %c0_i32 = arith.constant 0 : i32
    %c0_i32_0 = arith.constant 0 : i32
    %c0_i32_1 = arith.constant 0 : i32
    return %arg0, %arg1, %c0_i32, %c0_i32_0 : i32, i32, i32, i32
  }
}

</mosaic_0001>

<bundles_post_ra>
// kernel: inconv_forward.4
= control target key start
LH: loop header
LB: loop body
LE: loop exit
PB: predicated region body
PF: predicated region fallthrough
CT: control target
= control target key end

     0   :  { %s1371_s12 = smov 0   ;;  %s1373_s13 = smov 0   ;;  %s1565_s0 = inlined_call_operand.vmem [shape: bf16[2,16,16,128], index: 0, kind: input, shape index: {}]   ;;  %s1566_s1 = inlined_call_operand.vmem [shape: bf16[128,128], index: 1, kind: input, shape index: {}]   ;;  %s1567_s2 = inlined_call_operand.vmem [shape: bf16[2,16,16,128], index: 2, kind: output, shape index: {0}]   ;;  %s1568_s3 = inlined_call_operand.vmem [shape: f32[2,1,2,128], index: 3, kind: output, shape index: {1}]  }
   0x1   :  { %s1375_s14 = smov 0  }
   0x2 LB: > { %s26_s15 = sadd.s32 1, %s1345_s13  ;;  %p998_p0 = scmp.ge.s32.totalorder %s1349_s14, 1  ;;  %s1349_s14 = sphi %s1375_s14, %s14_s14   ;;  %s1345_s13 = sphi %s1373_s13, %s1570_s13   ;;  %s1341_s12 = sphi %s1371_s12, %s1569_s12  }
   0x3   : > { %p28_p1 = scmp.ge.s32.totalorder %s26_s15, 2  ;;  %p164_p2 = scmp.lt.s32.totalorder %s1349_s14, 3 }
   0x5   : > { %s1572_s15 = smov (%p28_p1, %s26_s15), 0  ;;  %p165_p3 = pnand %p998_p0, %p164_p2 }
   0x6   : > { %p206_p4 = scmp.lt.s32.totalorder (!%p165_p3), %s1341_s12, 1 }
   0x7   : > { %168 = sbr.rel (%p165_p3) target bundleno = 322 (0x142), region = 28 }
   0xc   : > { %v1303_v0 = vld [vmem:[%s1566_s1 + $0x38] sm:$0xff]   ;;  %v1304_v1 = vld [vmem:[%s1566_s1 + $0x30] sm:$0xff]   ;;  %s1574_s12 = smov (!%p206_p4, %s1341_s12), 1  ;;  %v1305_v2 = vld [vmem:[%s1566_s1 + $0x28] sm:$0xff]   ;;  %vm854_vm0 = vcmask 1040384  }
   0xd   : > { %1215 = vmatprep.subr.bf16.mxu0 %v1303_v0  ;;  %1263 = vmatprep.subr.bf16.mxu1 %v1303_v0  ;;  %s1062_s22 = sshll.u32 %s1574_s12, 7  ;;  %v1306_v3 = vld [vmem:[%s1566_s1 + $0x20] sm:$0xff]   ;;  %v1307_v5 = vld [vmem:[%s1566_s1 + $0x18] sm:$0xff]   ;;  %v1308_v6 = vld [vmem:[%s1566_s1 + $0x10] sm:$0xff]   ;;  %s1003_s16 = sshll.u32 %s1574_s12, 1 }
   0xe   : > { %1216 = vmatpush3.bf16.msra.mxu0 %v1303_v0  ;;  %1271 = vmatpush3.bf16.msra.mxu1 %v1303_v0  ;;  %s1406_s25 = scalar_lea.vmem %s1565_s0, %s1062_s22  ;;  %v1309_v8 = vld [vmem:[%s1566_s1 + $0x8] sm:$0xff]   ;;  %v1310_v9 = vld [vmem:[%s1566_s1] sm:$0xff]   ;;  %s1448_s11 = scalar_lea.vmem %s1567_s2, %s1062_s22 }
   0xf   : > { %1217 = vmatprep.subr.bf16.mxu0 %v1304_v1  ;;  %1264 = vmatprep.subr.bf16.mxu1 %v1304_v1  ;;  %v1311_v4 = vld [vmem:[%s1406_s25] sm:$0xff]   ;;  %v1312_v10 = vld [vmem:[%s1406_s25 + $0x8] sm:$0xff]   ;;  %v1313_v12 = vld [vmem:[%s1406_s25 + $0x10] sm:$0xff]   ;;  %s233_s19 = scalar_lea.vmem %s1568_s3, %s1003_s16 }
  0x10   : > { %1231 = vmatprep.mubr.bf16.mxu0 %v1311_v4  ;;  %v1319_v7 = vld [vmem:[%s1406_s25 + $0x40] sm:$0xff]   ;;  %v1320_v11 = vld [vmem:[%s1406_s25 + $0x48] sm:$0xff]   ;;  %v1321_v13 = vld [vmem:[%s1406_s25 + $0x50] sm:$0xff]  }
  0x11   : > { %1247 = vmatprep.mubr.bf16.mxu1 %v1319_v7  ;;  %v1314_v14 = vld [vmem:[%s1406_s25 + $0x18] sm:$0xff]   ;;  %v1315_v16 = vld [vmem:[%s1406_s25 + $0x20] sm:$0xff]   ;;  %v1316_v18 = vld [vmem:[%s1406_s25 + $0x28] sm:$0xff]  }
  0x12   : > { %1218 = vmatpush3.bf16.msra.mxu0 %v1304_v1  ;;  %1272 = vmatpush3.bf16.msra.mxu1 %v1304_v1  ;;  %v1322_v15 = vld [vmem:[%s1406_s25 + $0x58] sm:$0xff]   ;;  %v1323_v17 = vld [vmem:[%s1406_s25 + $0x60] sm:$0xff]   ;;  %v1324_v19 = vld [vmem:[%s1406_s25 + $0x68] sm:$0xff]  }
  0x13   : > { %1219 = vmatprep.subr.bf16.mxu0 %v1305_v2  ;;  %1265 = vmatprep.subr.bf16.mxu1 %v1305_v2  ;;  %v1317_v20 = vld [vmem:[%s1406_s25 + $0x30] sm:$0xff]   ;;  %v1318_v22 = vld [vmem:[%s1406_s25 + $0x38] sm:$0xff]  }
  0x14   : > { %v1325_v21 = vld [vmem:[%s1406_s25 + $0x70] sm:$0xff]   ;;  %v1326_v23 = vld [vmem:[%s1406_s25 + $0x78] sm:$0xff]  }
  0x16   : > { %1220 = vmatpush3.bf16.msra.mxu0 %v1305_v2  ;;  %1273 = vmatpush3.bf16.msra.mxu1 %v1305_v2 }
  0x17   : > { %1221 = vmatprep.subr.bf16.mxu0 %v1306_v3  ;;  %1266 = vmatprep.subr.bf16.mxu1 %v1306_v3 }
  0x1a   : > { %1222 = vmatpush3.bf16.msra.mxu0 %v1306_v3  ;;  %1274 = vmatpush3.bf16.msra.mxu1 %v1306_v3 }
  0x1b   : > { %1223 = vmatprep.subr.bf16.mxu0 %v1307_v5  ;;  %1267 = vmatprep.subr.bf16.mxu1 %v1307_v5 }
  0x1e   : > { %1224 = vmatpush3.bf16.msra.mxu0 %v1307_v5  ;;  %1275 = vmatpush3.bf16.msra.mxu1 %v1307_v5 }
  0x1f   : > { %1225 = vmatprep.subr.bf16.mxu0 %v1308_v6  ;;  %1268 = vmatprep.subr.bf16.mxu1 %v1308_v6 }
  0x22   : > { %1226 = vmatpush3.bf16.msra.mxu0 %v1308_v6  ;;  %1276 = vmatpush3.bf16.msra.mxu1 %v1308_v6 }
  0x23   : > { %1227 = vmatprep.subr.bf16.mxu0 %v1309_v8  ;;  %1269 = vmatprep.subr.bf16.mxu1 %v1309_v8 }
  0x26   : > { %1228 = vmatpush3.bf16.msra.mxu0 %v1309_v8  ;;  %1277 = vmatpush3.bf16.msra.mxu1 %v1309_v8 }
  0x27   : > { %1229 = vmatprep.subr.bf16.mxu0 %v1310_v9  ;;  %1270 = vmatprep.subr.bf16.mxu1 %v1310_v9 }
  0x2a   : > { %1230 = vmatpush3.bf16.msra.mxu0 %v1310_v9  ;;  %1278 = vmatpush3.bf16.msra.mxu1 %v1310_v9 }
  0x2d   : > { %1232 = vmatmul.mubr.bf16.vlgmr.msra.gmra.mxu0 %v1312_v10  ;;  %1248 = vmatmul.mubr.bf16.vlgmr.msra.gmra.mxu1 %v1320_v11 }
  0x2e   : > { %1235 = vmatprep.mubr.bf16.mxu0 %v1313_v12  ;;  %1251 = vmatprep.mubr.bf16.mxu1 %v1321_v13 }
  0x35   : > { %1236 = vmatmul.mubr.bf16.gmra.mxu0 %v1314_v14  ;;  %1252 = vmatmul.mubr.bf16.gmra.mxu1 %v1322_v15 }
  0x36   : > { %1239 = vmatprep.mubr.bf16.mxu0 %v1315_v16  ;;  %1255 = vmatprep.mubr.bf16.mxu1 %v1323_v17 }
  0x3d   : > { %1240 = vmatmul.mubr.bf16.gmra.mxu0 %v1316_v18  ;;  %1256 = vmatmul.mubr.bf16.gmra.mxu1 %v1324_v19 }
  0x3e   : > { %1243 = vmatprep.mubr.bf16.mxu0 %v1317_v20  ;;  %1259 = vmatprep.mubr.bf16.mxu1 %v1325_v21 }
  0x45   : > { %1244 = vmatmul.mubr.bf16.gmra.mxu0 %v1318_v22  ;;  %1260 = vmatmul.mubr.bf16.gmra.mxu1 %v1326_v23 }
  0xed   : > { %v1233_v24 = vpop.f32.mrf.mxu0  ;;  %v1439_v25 = vpop.f32.mrf.mxu1 }
  0xee   : > { %v787_v41 = vmul.f32 %v1233_v24, %v1233_v24 }
  0xef   : > { %v461_v26 = vpop.f32.mrf.mxu0  ;;  %v1441_v27 = vpop.f32.mrf.mxu1 }
  0xf0   : > { %v785_v32 = vmul.f32 %v461_v26, %v461_v26 }
  0xf1   : > { %v1234_v28 = vpop.f32.mrf.mxu0  ;;  %v1450_v29 = vpop.f32.mrf.mxu1 }
  0xf2   : > { %v1104_v30 = vpack.c.bf16 %v1234_v28, %v1233_v24  ;;  %v1144_v31 = vpack.c.bf16 %v1450_v29, %v1439_v25  ;;  %v788_v46 = vmul.f32 %v1234_v28, %v1234_v28 }
  0xf3   : > { %v464_v33 = vpop.f32.mrf.mxu0  ;;  %v1454_v34 = vpop.f32.mrf.mxu1 }
  0xf4   : > { %1176 = vst [vmem:[%s1448_s11 + $0x8] sm:$0xff] %v1104_v30   ;;  %v1099_v35 = vpack.c.bf16 %v464_v33, %v461_v26  ;;  %v748_v36 = vadd.f32 %v464_v33, %v461_v26  ;;  %v786_v37 = vmul.f32 %v464_v33, %v464_v33  ;;  %1184 = vst [vmem:[%s1448_s11 + $0x48] sm:$0xff] %v1144_v31  }
  0xf5   : > { %v1139_v38 = vpack.c.bf16 %v1454_v34, %v1441_v27  ;;  %v1237_v39 = vpop.f32.mrf.mxu0  ;;  %v1460_v40 = vpop.f32.mrf.mxu1 }
  0xf6   : > { %1100 = vst [vmem:[%s1448_s11] sm:$0xff] %v1099_v35   ;;  %v749_v42 = vadd.f32 %v1233_v24, %v748_v36  ;;  %v817_v43 = vadd.f32 %v786_v37, %v785_v32  ;;  %v791_v1 = vmul.f32 %v1237_v39, %v1237_v39 }
  0xf7   : > { %1183 = vst [vmem:[%s1448_s11 + $0x40] sm:$0xff] %v1139_v38   ;;  %v477_v44 = vpop.f32.mrf.mxu0  ;;  %v1464_v45 = vpop.f32.mrf.mxu1 }
  0xf8   : > { %v818_v47 = vadd.f32 %v817_v43, %v787_v41  ;;  %v750_v48 = vadd.f32 %v1234_v28, %v749_v42  ;;  %v789_v52 = vmul.f32 %v477_v44, %v477_v44 }
  0xf9   : > { %v1238_v49 = vpop.f32.mrf.mxu0  ;;  %v1466_v50 = vpop.f32.mrf.mxu1 }
  0xfa   : > { %v751_v51 = vadd.f32 %v750_v48, %v477_v44  ;;  %v819_v53 = vadd.f32 %v818_v47, %v788_v46  ;;  %v1114_v54 = vpack.c.bf16 %v1238_v49, %v1237_v39  ;;  %v1154_v56 = vpack.c.bf16 %v1466_v50, %v1460_v40 }
  0xfb   : > { %v480_v55 = vpop.f32.mrf.mxu0  ;;  %v1470_v57 = vpop.f32.mrf.mxu1  ;;  %v792_v6 = vmul.f32 %v1238_v49, %v1238_v49 }
  0xfc   : > { %v820_v58 = vadd.f32 %v819_v53, %v789_v52  ;;  %1178 = vst [vmem:[%s1448_s11 + $0x18] sm:$0xff] %v1114_v54   ;;  %v1109_v59 = vpack.c.bf16 %v480_v55, %v477_v44  ;;  %v752_v60 = vadd.f32 %v751_v51, %v480_v55  ;;  %v790_v61 = vmul.f32 %v480_v55, %v480_v55 }
  0xfd   : > { %v1241_v62 = vpop.f32.mrf.mxu0  ;;  %1186 = vst [vmem:[%s1448_s11 + $0x58] sm:$0xff] %v1154_v56   ;;  %v1149_v63 = vpack.c.bf16 %v1470_v57, %v1464_v45  ;;  %v1476_v0 = vpop.f32.mrf.mxu1 }
  0xfe   : > { %1177 = vst [vmem:[%s1448_s11 + $0x10] sm:$0xff] %v1109_v59   ;;  %v753_v2 = vadd.f32 %v1237_v39, %v752_v60  ;;  %v821_v3 = vadd.f32 %v820_v58, %v790_v61  ;;  %v795_v26 = vmul.f32 %v1241_v62, %v1241_v62  ;;  %v801_v61 = vmul.f32 %v1441_v27, %v1441_v27 }
  0xff   : > { %v493_v4 = vpop.f32.mrf.mxu0  ;;  %1185 = vst [vmem:[%s1448_s11 + $0x50] sm:$0xff] %v1149_v63   ;;  %v1480_v5 = vpop.f32.mrf.mxu1 }
 0x100   : > { %v822_v7 = vadd.f32 %v821_v3, %v791_v1  ;;  %v754_v8 = vadd.f32 %v1238_v49, %v753_v2  ;;  %v793_v12 = vmul.f32 %v493_v4, %v493_v4  ;;  %v802_v2 = vmul.f32 %v1454_v34, %v1454_v34 }
 0x101   : > { %v1242_v9 = vpop.f32.mrf.mxu0  ;;  %v1482_v10 = vpop.f32.mrf.mxu1 }
 0x102   : > { %v755_v11 = vadd.f32 %v754_v8, %v493_v4  ;;  %v823_v13 = vadd.f32 %v822_v7, %v792_v6  ;;  %v1124_v14 = vpack.c.bf16 %v1242_v9, %v1241_v62  ;;  %v1164_v16 = vpack.c.bf16 %v1482_v10, %v1476_v0 }
 0x103   : > { %v496_v15 = vpop.f32.mrf.mxu0  ;;  %v1486_v17 = vpop.f32.mrf.mxu1  ;;  %v796_v33 = vmul.f32 %v1242_v9, %v1242_v9  ;;  %v804_v8 = vmul.f32 %v1450_v29, %v1450_v29 }
 0x104   : > { %v824_v18 = vadd.f32 %v823_v13, %v793_v12  ;;  %1180 = vst [vmem:[%s1448_s11 + $0x28] sm:$0xff] %v1124_v14   ;;  %v1119_v19 = vpack.c.bf16 %v496_v15, %v493_v4  ;;  %v756_v20 = vadd.f32 %v755_v11, %v496_v15  ;;  %v794_v21 = vmul.f32 %v496_v15, %v496_v15 }
 0x105   : > { %v1245_v22 = vpop.f32.mrf.mxu0  ;;  %1188 = vst [vmem:[%s1448_s11 + $0x68] sm:$0xff] %v1164_v16   ;;  %v1159_v23 = vpack.c.bf16 %v1486_v17, %v1480_v5  ;;  %v1492_v24 = vpop.f32.mrf.mxu1  ;;  %v803_v4 = vmul.f32 %v1439_v25, %v1439_v25  ;;  %v805_v12 = vmul.f32 %v1464_v45, %v1464_v45  ;;  %v806_v15 = vmul.f32 %v1470_v57, %v1470_v57 }
 0x106   : > { %1179 = vst [vmem:[%s1448_s11 + $0x20] sm:$0xff] %v1119_v19   ;;  %v757_v28 = vadd.f32 %v1241_v62, %v756_v20  ;;  %v825_v30 = vadd.f32 %v824_v18, %v794_v21  ;;  %v799_v54 = vmul.f32 %v1245_v22, %v1245_v22  ;;  %v809_v21 = vmul.f32 %v1480_v5, %v1480_v5 }
 0x107   : > { %v509_v31 = vpop.f32.mrf.mxu0  ;;  %1187 = vst [vmem:[%s1448_s11 + $0x60] sm:$0xff] %v1159_v23   ;;  %v1496_v32 = vpop.f32.mrf.mxu1 }
 0x108   : > { %v826_v35 = vadd.f32 %v825_v30, %v795_v26  ;;  %v758_v36 = vadd.f32 %v1242_v9, %v757_v28  ;;  %v797_v41 = vmul.f32 %v509_v31, %v509_v31  ;;  %v810_v26 = vmul.f32 %v1486_v17, %v1486_v17 }
 0x109   : > { %v1246_v37 = vpop.f32.mrf.mxu0  ;;  %v1498_v38 = vpop.f32.mrf.mxu1 }
 0x10a   : > { %v759_v39 = vadd.f32 %v758_v36, %v509_v31  ;;  %v827_v42 = vadd.f32 %v826_v35, %v796_v33  ;;  %v1134_v43 = vpack.c.bf16 %v1246_v37, %v1245_v22  ;;  %v1174_v46 = vpack.c.bf16 %v1498_v38, %v1492_v24 }
 0x10b   : > { %v512_v44 = vpop.f32.mrf.mxu0  ;;  %v576_v47 = vpop.f32.mrf.mxu1  ;;  %v800_v58 = vmul.f32 %v1246_v37, %v1246_v37  ;;  %v813_v35 = vmul.f32 %v1496_v32, %v1496_v32 }
 0x10c   : > { %v828_v48 = vadd.f32 %v827_v42, %v797_v41  ;;  %1182 = vst [vmem:[%s1448_s11 + $0x38] sm:$0xff] %v1134_v43   ;;  %v1129_v49 = vpack.c.bf16 %v512_v44, %v509_v31  ;;  %v760_v51 = vadd.f32 %v759_v39, %v512_v44  ;;  %v798_v52 = vmul.f32 %v512_v44, %v512_v44 }
 0x10d   : > { %1190 = vst [vmem:[%s1448_s11 + $0x78] sm:$0xff] %v1174_v46   ;;  %v1169_v53 = vpack.c.bf16 %v576_v47, %v1496_v32  ;;  %v814_v39 = vmul.f32 %v576_v47, %v576_v47  ;;  %v815_v41 = vmul.f32 %v1492_v24, %v1492_v24  ;;  %v816_v43 = vmul.f32 %v1498_v38, %v1498_v38 }
 0x10e   : > { %1181 = vst [vmem:[%s1448_s11 + $0x30] sm:$0xff] %v1129_v49   ;;  %v761_v55 = vadd.f32 %v1245_v22, %v760_v51  ;;  %v829_v56 = vadd.f32 %v828_v48, %v798_v52 }
 0x10f   : > { %1189 = vst [vmem:[%s1448_s11 + $0x70] sm:$0xff] %v1169_v53  }
 0x110   : > { %v762_v59 = vadd.f32 %v1246_v37, %v761_v55  ;;  %v830_v60 = vadd.f32 %v829_v56, %v799_v54 }
 0x112   : > { %v831_v62 = vadd.f32 %v830_v60, %v800_v58  ;;  %v763_v63 = vadd.f32 %v762_v59, %v1441_v27 }
 0x114   : > { %v764_v1 = vadd.f32 %v763_v63, %v1454_v34  ;;  %v832_v3 = vadd.f32 %v831_v62, %v801_v61 }
 0x116   : > { %v765_v6 = vadd.f32 %v1439_v25, %v764_v1  ;;  %v833_v7 = vadd.f32 %v832_v3, %v802_v2  ;;  %v807_v25 = vmul.f32 %v1460_v40, %v1460_v40 }
 0x118   : > { %v834_v9 = vadd.f32 %v833_v7, %v803_v4  ;;  %v766_v11 = vadd.f32 %v1450_v29, %v765_v6  ;;  %v808_v29 = vmul.f32 %v1466_v50, %v1466_v50 }
 0x11a   : > { %v767_v27 = vadd.f32 %v766_v11, %v1464_v45  ;;  %v835_v13 = vadd.f32 %v834_v9, %v804_v8 }
 0x11c   : > { %v836_v34 = vadd.f32 %v835_v13, %v805_v12  ;;  %v768_v14 = vadd.f32 %v767_v27, %v1470_v57 }
 0x11e   : > { %v769_v16 = vadd.f32 %v1460_v40, %v768_v14  ;;  %v837_v18 = vadd.f32 %v836_v34, %v806_v15  ;;  %v811_v40 = vmul.f32 %v1476_v0, %v1476_v0 }
 0x120   : > { %v838_v19 = vadd.f32 %v837_v18, %v807_v25  ;;  %v770_v20 = vadd.f32 %v1466_v50, %v769_v16  ;;  %v812_v50 = vmul.f32 %v1482_v10, %v1482_v10 }
 0x122   : > { %v771_v45 = vadd.f32 %v770_v20, %v1480_v5  ;;  %v839_v22 = vadd.f32 %v838_v19, %v808_v29 }
 0x124   : > { %v840_v23 = vadd.f32 %v839_v22, %v809_v21  ;;  %v772_v57 = vadd.f32 %v771_v45, %v1486_v17 }
 0x126   : > { %v773_v28 = vadd.f32 %v1476_v0, %v772_v57  ;;  %v841_v30 = vadd.f32 %v840_v23, %v810_v26 }
 0x128   : > { %v842_v31 = vadd.f32 %v841_v30, %v811_v40  ;;  %v774_v33 = vadd.f32 %v1482_v10, %v773_v28 }
 0x12a   : > { %v775_v5 = vadd.f32 %v774_v33, %v1496_v32  ;;  %v843_v36 = vadd.f32 %v842_v31, %v812_v50 }
 0x12c   : > { %v844_v37 = vadd.f32 %v843_v36, %v813_v35  ;;  %v776_v17 = vadd.f32 %v775_v5, %v576_v47 }
 0x12e   : > { %v777_v0 = vadd.f32 %v1492_v24, %v776_v17  ;;  %v845_v42 = vadd.f32 %v844_v37, %v814_v39 }
 0x130   : > { %v778_v10 = vadd.f32 %v1498_v38, %v777_v0  ;;  %v846_v44 = vadd.f32 %v845_v42, %v815_v41 }
 0x132   : > { %v779_v46 = vrot.slane %v778_v10, 4  ;;  %v847_v48 = vadd.f32 %v846_v44, %v816_v43 }
 0x134   : > { %v780_v32 = vadd.f32 %v779_v46, %v778_v10  ;;  %v848_v49 = vrot.slane %v847_v48, 4 }
 0x136   : > { %v781_v51 = vrot.slane %v780_v32, 2  ;;  %v849_v52 = vadd.f32 %v848_v49, %v847_v48 }
 0x138   : > { %v782_v47 = vadd.f32 %v781_v51, %v780_v32  ;;  %v850_v53 = vrot.slane %v849_v52, 2 }
 0x13a   : > { %v783_v54 = vrot.slane %v782_v47, 1  ;;  %v851_v55 = vadd.f32 %v850_v53, %v849_v52 }
 0x13c   : > { %v852_v56 = vrot.slane %v851_v55, 1  ;;  %v784_v24 = vadd.f32 %v783_v54, %v782_v47 }
 0x13e   : > { %v853_v38 = vadd.f32 %v852_v56, %v851_v55 }
 0x140   : > { %v855_v58 = vsel %vm854_vm0, %v784_v24, %v853_v38 }
 0x141   : > { %856 = vst [vmem:[%s233_s19] sm:$0x3] %v855_v58 }
 0x142 PF: > { %s14_s14 = sadd.s32 1, %s1349_s14   ;;  %s1569_s12 = smov %s1345_s13 }
 0x143   : > { %p11_p5 = scmp.ge.s32.totalorder %s14_s14, 4   ;;  %s1570_s13 = smov %s1572_s15 }
 0x145   :  { %13 = sbr.rel (!%p11_p5) target bundleno = 2 (0x2), region = 70 }

// kernel: inconv_forward.7
= control target key start
LH: loop header
LB: loop body
LE: loop exit
PB: predicated region body
PF: predicated region fallthrough
CT: control target
= control target key end

     0   :  { %s966_s12 = smov 0   ;;  %s968_s13 = smov 0   ;;  %s1116_s0 = inlined_call_operand.vmem [shape: bf16[2,16,16,128], index: 0, kind: input, shape index: {}]   ;;  %s1117_s1 = inlined_call_operand.vmem [shape: f32[1,128], index: 1, kind: input, shape index: {}]   ;;  %s1118_s2 = inlined_call_operand.vmem [shape: f32[1,128], index: 2, kind: input, shape index: {}]   ;;  %s1119_s3 = inlined_call_operand.vmem [shape: bf16[2,16,16,128], index: 3, kind: output, shape index: {}]  }
   0x1   :  { %s970_s14 = smov 0  }
   0x2 LB: > { %s25_s15 = sadd.s32 1, %s940_s13  ;;  %p649_p0 = scmp.ge.s32.totalorder %s944_s14, 1  ;;  %s944_s14 = sphi %s970_s14, %s13_s14   ;;  %s940_s13 = sphi %s968_s13, %s1121_s13   ;;  %s936_s12 = sphi %s966_s12, %s1120_s12  }
   0x3   : > { %p27_p1 = scmp.ge.s32.totalorder %s25_s15, 2  ;;  %p159_p2 = scmp.lt.s32.totalorder %s944_s14, 3 }
   0x5   : > { %s1123_s15 = smov (%p27_p1, %s25_s15), 0  ;;  %p160_p3 = pnand %p649_p0, %p159_p2 }
   0x6   : > { %p194_p4 = scmp.lt.s32.totalorder (!%p160_p3), %s936_s12, 1 }
   0x7   : > { %163 = sbr.rel (%p160_p3) target bundleno = 58 (0x3a), region = 32 }
   0xc   : > { %s1125_s12 = smov (!%p194_p4, %s936_s12), 1  ;;  %v997_v0 = vld [vmem:[%s1117_s1] ss:$0 sm:$0xff] }
   0xd   : > { %s690_s16 = sshll.u32 %s1125_s12, 7  ;;  %v1006_v9 = vld [vmem:[%s1118_s2] ss:$0 sm:$0xff] }
   0xe   : > { %s992_s19 = scalar_lea.vmem %s1116_s0, %s690_s16  ;;  %s1031_s26 = scalar_lea.vmem %s1119_s3, %s690_s16 }
   0xf   : > { %v725_v1 = vld [vmem:[%s992_s19] sm:$0xff]   ;;  %v868_v2 = vld [vmem:[%s992_s19 + $0x8] sm:$0xff]   ;;  %v869_v3 = vld [vmem:[%s992_s19 + $0x10] sm:$0xff]  }
  0x10   : > { %v726_v4 = vunpack.c.l.bf16 %v725_v1  ;;  %v727_v5 = vunpack.c.h.bf16 %v725_v1  ;;  %v730_v6 = vunpack.c.l.bf16 %v868_v2  ;;  %v731_v7 = vunpack.c.h.bf16 %v868_v2  ;;  %v870_v8 = vld [vmem:[%s992_s19 + $0x18] sm:$0xff]   ;;  %v871_v30 = vld [vmem:[%s992_s19 + $0x20] sm:$0xff]   ;;  %v872_v35 = vld [vmem:[%s992_s19 + $0x28] sm:$0xff]  }
  0x11   : > { %v734_v10 = vunpack.c.l.bf16 %v869_v3  ;;  %v735_v11 = vunpack.c.h.bf16 %v869_v3  ;;  %v738_v12 = vunpack.c.l.bf16 %v870_v8  ;;  %v739_v13 = vunpack.c.h.bf16 %v870_v8  ;;  %v873_v40 = vld [vmem:[%s992_s19 + $0x30] sm:$0xff]   ;;  %v874_v45 = vld [vmem:[%s992_s19 + $0x38] sm:$0xff]   ;;  %v875_v3 = vld [vmem:[%s992_s19 + $0x40] sm:$0xff]  }
  0x12   : > { %v286_v14 = vmul.f32 %v726_v4, %v997_v0  ;;  %v287_v15 = vmul.f32 %v727_v5, %v997_v0  ;;  %v288_v16 = vmul.f32 %v730_v6, %v997_v0  ;;  %v289_v17 = vmul.f32 %v731_v7, %v997_v0 }
  0x13   : > { %v290_v18 = vmul.f32 %v734_v10, %v997_v0  ;;  %v291_v19 = vmul.f32 %v735_v11, %v997_v0  ;;  %v292_v20 = vmul.f32 %v738_v12, %v997_v0  ;;  %v293_v21 = vmul.f32 %v739_v13, %v997_v0  ;;  %v876_v13 = vld [vmem:[%s992_s19 + $0x48] sm:$0xff]  }
  0x14   : > { %v325_v22 = vadd.f32 %v1006_v9, %v286_v14  ;;  %v326_v23 = vadd.f32 %v1006_v9, %v287_v15  ;;  %v327_v24 = vadd.f32 %v1006_v9, %v288_v16  ;;  %v328_v25 = vadd.f32 %v1006_v9, %v289_v17 }
  0x15   : > { %v329_v26 = vadd.f32 %v1006_v9, %v290_v18  ;;  %v330_v27 = vadd.f32 %v1006_v9, %v291_v19  ;;  %v331_v28 = vadd.f32 %v1006_v9, %v292_v20  ;;  %v332_v29 = vadd.f32 %v1006_v9, %v293_v21  ;;  %v877_v18 = vld [vmem:[%s992_s19 + $0x50] sm:$0xff]  }
  0x16   : > { %v357_v31 = vmax.f32 %v325_v22, 0.0  ;;  %v358_v32 = vmax.f32 %v326_v23, 0.0  ;;  %v359_v33 = vmax.f32 %v327_v24, 0.0  ;;  %v360_v34 = vmax.f32 %v328_v25, 0.0  ;;  %v878_v23 = vld [vmem:[%s992_s19 + $0x58] sm:$0xff]  }
  0x17   : > { %v361_v36 = vmax.f32 %v329_v26, 0.0  ;;  %v362_v37 = vmax.f32 %v330_v27, 0.0  ;;  %v363_v38 = vmax.f32 %v331_v28, 0.0  ;;  %v364_v39 = vmax.f32 %v332_v29, 0.0 }
  0x18   : > { %v791_v41 = vpack.c.bf16 %v358_v32, %v357_v31  ;;  %v796_v42 = vpack.c.bf16 %v360_v34, %v359_v33  ;;  %v742_v43 = vunpack.c.l.bf16 %v871_v30  ;;  %v743_v44 = vunpack.c.h.bf16 %v871_v30 }
  0x19   : > { %v801_v46 = vpack.c.bf16 %v362_v37, %v361_v36  ;;  %v806_v47 = vpack.c.bf16 %v364_v39, %v363_v38  ;;  %v746_v48 = vunpack.c.l.bf16 %v872_v35  ;;  %v747_v49 = vunpack.c.h.bf16 %v872_v35 }
  0x1a   : > { %792 = vst [vmem:[%s1031_s26] sm:$0xff] %v791_v41   ;;  %883 = vst [vmem:[%s1031_s26 + $0x8] sm:$0xff] %v796_v42   ;;  %v294_v50 = vmul.f32 %v742_v43, %v997_v0  ;;  %v295_v51 = vmul.f32 %v743_v44, %v997_v0  ;;  %v750_v52 = vunpack.c.l.bf16 %v873_v40  ;;  %v751_v53 = vunpack.c.h.bf16 %v873_v40  ;;  %v879_v40 = vld [vmem:[%s992_s19 + $0x60] sm:$0xff]  }
  0x1b   : > { %884 = vst [vmem:[%s1031_s26 + $0x10] sm:$0xff] %v801_v46   ;;  %885 = vst [vmem:[%s1031_s26 + $0x18] sm:$0xff] %v806_v47   ;;  %v296_v54 = vmul.f32 %v746_v48, %v997_v0  ;;  %v297_v55 = vmul.f32 %v747_v49, %v997_v0  ;;  %v754_v56 = vunpack.c.l.bf16 %v874_v45  ;;  %v755_v57 = vunpack.c.h.bf16 %v874_v45 }
  0x1c   : > { %v333_v58 = vadd.f32 %v1006_v9, %v294_v50  ;;  %v334_v59 = vadd.f32 %v1006_v9, %v295_v51  ;;  %v298_v60 = vmul.f32 %v750_v52, %v997_v0  ;;  %v299_v61 = vmul.f32 %v751_v53, %v997_v0  ;;  %v880_v53 = vld [vmem:[%s992_s19 + $0x68] sm:$0xff]  }
  0x1d   : > { %v335_v62 = vadd.f32 %v1006_v9, %v296_v54  ;;  %v336_v63 = vadd.f32 %v1006_v9, %v297_v55  ;;  %v300_v1 = vmul.f32 %v754_v56, %v997_v0  ;;  %v301_v2 = vmul.f32 %v755_v57, %v997_v0 }
  0x1e   : > { %v365_v4 = vmax.f32 %v333_v58, 0.0  ;;  %v366_v5 = vmax.f32 %v334_v59, 0.0  ;;  %v337_v6 = vadd.f32 %v1006_v9, %v298_v60  ;;  %v338_v7 = vadd.f32 %v1006_v9, %v299_v61  ;;  %v881_v58 = vld [vmem:[%s992_s19 + $0x70] sm:$0xff]  }
  0x1f   : > { %v367_v8 = vmax.f32 %v335_v62, 0.0  ;;  %v368_v10 = vmax.f32 %v336_v63, 0.0  ;;  %v339_v11 = vadd.f32 %v1006_v9, %v300_v1  ;;  %v340_v12 = vadd.f32 %v1006_v9, %v301_v2  ;;  %v882_v63 = vld [vmem:[%s992_s19 + $0x78] sm:$0xff]  }
  0x20   : > { %v811_v14 = vpack.c.bf16 %v366_v5, %v365_v4  ;;  %v369_v15 = vmax.f32 %v337_v6, 0.0  ;;  %v370_v16 = vmax.f32 %v338_v7, 0.0  ;;  %v758_v17 = vunpack.c.l.bf16 %v875_v3 }
  0x21   : > { %v816_v19 = vpack.c.bf16 %v368_v10, %v367_v8  ;;  %v371_v20 = vmax.f32 %v339_v11, 0.0  ;;  %v372_v21 = vmax.f32 %v340_v12, 0.0  ;;  %v759_v22 = vunpack.c.h.bf16 %v875_v3 }
  0x22   : > { %886 = vst [vmem:[%s1031_s26 + $0x20] sm:$0xff] %v811_v14   ;;  %v821_v24 = vpack.c.bf16 %v370_v16, %v369_v15  ;;  %v302_v25 = vmul.f32 %v758_v17, %v997_v0  ;;  %v762_v26 = vunpack.c.l.bf16 %v876_v13  ;;  %v763_v27 = vunpack.c.h.bf16 %v876_v13 }
  0x23   : > { %887 = vst [vmem:[%s1031_s26 + $0x28] sm:$0xff] %v816_v19   ;;  %v826_v28 = vpack.c.bf16 %v372_v21, %v371_v20  ;;  %v303_v29 = vmul.f32 %v759_v22, %v997_v0  ;;  %v766_v30 = vunpack.c.l.bf16 %v877_v18  ;;  %v767_v31 = vunpack.c.h.bf16 %v877_v18 }
  0x24   : > { %888 = vst [vmem:[%s1031_s26 + $0x30] sm:$0xff] %v821_v24   ;;  %v341_v32 = vadd.f32 %v1006_v9, %v302_v25  ;;  %v304_v33 = vmul.f32 %v762_v26, %v997_v0  ;;  %v305_v34 = vmul.f32 %v763_v27, %v997_v0  ;;  %v770_v35 = vunpack.c.l.bf16 %v878_v23 }
  0x25   : > { %889 = vst [vmem:[%s1031_s26 + $0x38] sm:$0xff] %v826_v28   ;;  %v342_v36 = vadd.f32 %v1006_v9, %v303_v29  ;;  %v306_v37 = vmul.f32 %v766_v30, %v997_v0  ;;  %v307_v38 = vmul.f32 %v767_v31, %v997_v0  ;;  %v771_v39 = vunpack.c.h.bf16 %v878_v23 }
  0x26   : > { %v373_v41 = vmax.f32 %v341_v32, 0.0  ;;  %v343_v42 = vadd.f32 %v1006_v9, %v304_v33  ;;  %v344_v43 = vadd.f32 %v1006_v9, %v305_v34  ;;  %v308_v44 = vmul.f32 %v770_v35, %v997_v0 }
  0x27   : > { %v374_v45 = vmax.f32 %v342_v36, 0.0  ;;  %v345_v46 = vadd.f32 %v1006_v9, %v306_v37  ;;  %v346_v47 = vadd.f32 %v1006_v9, %v307_v38  ;;  %v309_v48 = vmul.f32 %v771_v39, %v997_v0 }
  0x28   : > { %v375_v49 = vmax.f32 %v343_v42, 0.0  ;;  %v376_v50 = vmax.f32 %v344_v43, 0.0  ;;  %v347_v51 = vadd.f32 %v1006_v9, %v308_v44  ;;  %v774_v52 = vunpack.c.l.bf16 %v879_v40 }
  0x29   : > { %v831_v54 = vpack.c.bf16 %v374_v45, %v373_v41  ;;  %v377_v55 = vmax.f32 %v345_v46, 0.0  ;;  %v378_v56 = vmax.f32 %v346_v47, 0.0  ;;  %v348_v57 = vadd.f32 %v1006_v9, %v309_v48 }
  0x2a   : > { %v836_v59 = vpack.c.bf16 %v376_v50, %v375_v49  ;;  %v379_v60 = vmax.f32 %v347_v51, 0.0  ;;  %v775_v61 = vunpack.c.h.bf16 %v879_v40  ;;  %v310_v62 = vmul.f32 %v774_v52, %v997_v0 }
  0x2b   : > { %890 = vst [vmem:[%s1031_s26 + $0x40] sm:$0xff] %v831_v54   ;;  %v841_v1 = vpack.c.bf16 %v378_v56, %v377_v55  ;;  %v380_v2 = vmax.f32 %v348_v57, 0.0  ;;  %v778_v3 = vunpack.c.l.bf16 %v880_v53  ;;  %v779_v4 = vunpack.c.h.bf16 %v880_v53 }
  0x2c   : > { %891 = vst [vmem:[%s1031_s26 + $0x48] sm:$0xff] %v836_v59   ;;  %v311_v5 = vmul.f32 %v775_v61, %v997_v0  ;;  %v349_v6 = vadd.f32 %v1006_v9, %v310_v62  ;;  %v782_v7 = vunpack.c.l.bf16 %v881_v58  ;;  %v783_v8 = vunpack.c.h.bf16 %v881_v58 }
  0x2d   : > { %892 = vst [vmem:[%s1031_s26 + $0x50] sm:$0xff] %v841_v1   ;;  %v846_v10 = vpack.c.bf16 %v380_v2, %v379_v60  ;;  %v312_v11 = vmul.f32 %v778_v3, %v997_v0  ;;  %v313_v12 = vmul.f32 %v779_v4, %v997_v0  ;;  %v786_v13 = vunpack.c.l.bf16 %v882_v63 }
  0x2e   : > { %v350_v14 = vadd.f32 %v1006_v9, %v311_v5  ;;  %v381_v15 = vmax.f32 %v349_v6, 0.0  ;;  %v314_v16 = vmul.f32 %v782_v7, %v997_v0  ;;  %v315_v17 = vmul.f32 %v783_v8, %v997_v0 }
  0x2f   : > { %893 = vst [vmem:[%s1031_s26 + $0x58] sm:$0xff] %v846_v10   ;;  %v351_v18 = vadd.f32 %v1006_v9, %v312_v11  ;;  %v352_v19 = vadd.f32 %v1006_v9, %v313_v12  ;;  %v787_v20 = vunpack.c.h.bf16 %v882_v63  ;;  %v316_v21 = vmul.f32 %v786_v13, %v997_v0 }
  0x30   : > { %v382_v22 = vmax.f32 %v350_v14, 0.0  ;;  %v353_v23 = vadd.f32 %v1006_v9, %v314_v16  ;;  %v354_v24 = vadd.f32 %v1006_v9, %v315_v17 }
  0x31   : > { %v383_v25 = vmax.f32 %v351_v18, 0.0  ;;  %v384_v26 = vmax.f32 %v352_v19, 0.0  ;;  %v317_v27 = vmul.f32 %v787_v20, %v997_v0  ;;  %v355_v28 = vadd.f32 %v1006_v9, %v316_v21 }
  0x32   : > { %v851_v29 = vpack.c.bf16 %v382_v22, %v381_v15  ;;  %v385_v30 = vmax.f32 %v353_v23, 0.0  ;;  %v386_v31 = vmax.f32 %v354_v24, 0.0 }
  0x33   : > { %v856_v32 = vpack.c.bf16 %v384_v26, %v383_v25  ;;  %v356_v33 = vadd.f32 %v1006_v9, %v317_v27  ;;  %v387_v34 = vmax.f32 %v355_v28, 0.0 }
  0x34   : > { %894 = vst [vmem:[%s1031_s26 + $0x60] sm:$0xff] %v851_v29   ;;  %v861_v35 = vpack.c.bf16 %v386_v31, %v385_v30 }
  0x35   : > { %895 = vst [vmem:[%s1031_s26 + $0x68] sm:$0xff] %v856_v32   ;;  %v388_v36 = vmax.f32 %v356_v33, 0.0 }
  0x36   : > { %896 = vst [vmem:[%s1031_s26 + $0x70] sm:$0xff] %v861_v35  }
  0x37   : > { %v866_v37 = vpack.c.bf16 %v388_v36, %v387_v34 }
  0x39   : > { %897 = vst [vmem:[%s1031_s26 + $0x78] sm:$0xff] %v866_v37  }
  0x3a PF: > { %s13_s14 = sadd.s32 1, %s944_s14   ;;  %s1120_s12 = smov %s940_s13 }
  0x3b   : > { %p10_p5 = scmp.ge.s32.totalorder %s13_s14, 4   ;;  %s1121_s13 = smov %s1123_s15 }
  0x3d   :  { %12 = sbr.rel (!%p10_p5) target bundleno = 2 (0x2), region = 62 }

// kernel: inconv_forward.5
= control target key start
LH: loop header
LB: loop body
LE: loop exit
PB: predicated region body
PF: predicated region fallthrough
CT: control target
= control target key end

     0   :  { %s1114_s12 = smov 0   ;;  %s1116_s13 = smov 0   ;;  %s1363_s0 = inlined_call_operand.vmem [shape: bf16[2,16,16,128], index: 0, kind: input, shape index: {}]   ;;  %s1364_s1 = inlined_call_operand.vmem [shape: f32[1,128], index: 1, kind: input, shape index: {}]   ;;  %s1365_s2 = inlined_call_operand.vmem [shape: f32[1,128], index: 2, kind: input, shape index: {}]   ;;  %s1366_s3 = inlined_call_operand.vmem [shape: bf16[2,16,18,128], index: 3, kind: output, shape index: {}]  }
   0x1   :  { %s1118_s14 = smov 0  }
   0x2 LB: > { %s25_s15 = sadd.s32 1, %s1088_s13  ;;  %p909_p0 = scmp.ge.s32.totalorder %s1092_s14, 1  ;;  %s1092_s14 = sphi %s1118_s14, %s13_s14   ;;  %s1088_s13 = sphi %s1116_s13, %s1370_s13   ;;  %s1084_s12 = sphi %s1114_s12, %s1369_s12  }
   0x3   : > { %p27_p1 = scmp.ge.s32.totalorder %s25_s15, 2  ;;  %p159_p2 = scmp.lt.s32.totalorder %s1092_s14, 3 }
   0x5   : > { %s1372_s15 = smov (%p27_p1, %s25_s15), 0  ;;  %p160_p3 = pnand %p909_p0, %p159_p2 }
   0x6   : > { %p194_p4 = scmp.lt.s32.totalorder (!%p160_p3), %s1084_s12, 1 }
   0x7   : > { %163 = sbr.rel (%p160_p3) target bundleno = 97 (0x61), region = 32 }
   0xc   : > { %s1374_s12 = smov (!%p194_p4, %s1084_s12), 1  ;;  %v1143_v0 = vld [vmem:[%s1364_s1] ss:$0 sm:$0xff]  ;;  %vm550_vm0 = vcmask 1040384   ;;  %vm551_vm1 = vsmask.f32 256 }
   0xd   : > { %s965_s16 = sshll.u32 %s1374_s12, 7  ;;  %v1152_v9 = vld [vmem:[%s1365_s2] ss:$0 sm:$0xff]  ;;  %s1045_s24 = smul.u32 192, %s1374_s12  ;;  %vm1175_vm2 = vmand %vm550_vm0, %vm551_vm1 }
   0xe   : > { %s1138_s19 = scalar_lea.vmem %s1363_s0, %s965_s16 }
   0xf   : > { %v967_v1 = vld [vmem:[%s1138_s19] sm:$0xff]   ;;  %v1030_v2 = vld [vmem:[%s1138_s19 + $0x8] sm:$0xff]   ;;  %v1031_v3 = vld [vmem:[%s1138_s19 + $0x10] sm:$0xff]   ;;  %s1186_s27 = scalar_lea.vmem %s1366_s3, %s1045_s24 }
  0x10   : > { %v968_v4 = vunpack.c.l.bf16 %v967_v1  ;;  %v969_v5 = vunpack.c.h.bf16 %v967_v1  ;;  %v972_v6 = vunpack.c.l.bf16 %v1030_v2  ;;  %v973_v7 = vunpack.c.h.bf16 %v1030_v2  ;;  %v1032_v8 = vld [vmem:[%s1138_s19 + $0x18] sm:$0xff]   ;;  %v1033_v30 = vld [vmem:[%s1138_s19 + $0x20] sm:$0xff]   ;;  %v1034_v35 = vld [vmem:[%s1138_s19 + $0x28] sm:$0xff]  }
  0x11   : > { %v976_v10 = vunpack.c.l.bf16 %v1031_v3  ;;  %v977_v11 = vunpack.c.h.bf16 %v1031_v3  ;;  %v980_v12 = vunpack.c.l.bf16 %v1032_v8  ;;  %v981_v13 = vunpack.c.h.bf16 %v1032_v8 }
  0x12   : > { %v287_v14 = vmul.f32 %v968_v4, %v1143_v0  ;;  %v288_v15 = vmul.f32 %v969_v5, %v1143_v0  ;;  %v289_v16 = vmul.f32 %v972_v6, %v1143_v0  ;;  %v290_v17 = vmul.f32 %v973_v7, %v1143_v0 }
  0x13   : > { %v291_v18 = vmul.f32 %v976_v10, %v1143_v0  ;;  %v292_v19 = vmul.f32 %v977_v11, %v1143_v0  ;;  %v293_v20 = vmul.f32 %v980_v12, %v1143_v0  ;;  %v294_v21 = vmul.f32 %v981_v13, %v1143_v0 }
  0x14   : > { %v326_v22 = vadd.f32 %v1152_v9, %v287_v14  ;;  %v327_v23 = vadd.f32 %v1152_v9, %v288_v15  ;;  %v328_v24 = vadd.f32 %v1152_v9, %v289_v16  ;;  %v329_v25 = vadd.f32 %v1152_v9, %v290_v17 }
  0x15   : > { %v330_v26 = vadd.f32 %v1152_v9, %v291_v18  ;;  %v331_v27 = vadd.f32 %v1152_v9, %v292_v19  ;;  %v332_v28 = vadd.f32 %v1152_v9, %v293_v20  ;;  %v333_v29 = vadd.f32 %v1152_v9, %v294_v21 }
  0x16   : > { %v358_v31 = vmax.f32 %v326_v22, 0.0  ;;  %v359_v32 = vmax.f32 %v327_v23, 0.0  ;;  %v360_v33 = vmax.f32 %v328_v24, 0.0  ;;  %v361_v34 = vmax.f32 %v329_v25, 0.0  ;;  %v1035_v23 = vld [vmem:[%s1138_s19 + $0x30] sm:$0xff]   ;;  %v1036_v24 = vld [vmem:[%s1138_s19 + $0x38] sm:$0xff]  }
  0x17   : > { %v362_v36 = vmax.f32 %v330_v26, 0.0  ;;  %v363_v37 = vmax.f32 %v331_v27, 0.0  ;;  %v364_v38 = vmax.f32 %v332_v28, 0.0  ;;  %v365_v39 = vmax.f32 %v333_v29, 0.0  ;;  %v1037_v29 = vld [vmem:[%s1138_s19 + $0x40] sm:$0xff]  }
  0x18   : > { %v390_v40 = vpack.c.bf16 %v359_v32, %v358_v31  ;;  %v391_v41 = vpack.c.bf16 %v361_v34, %v360_v33  ;;  %v984_v42 = vunpack.c.l.bf16 %v1033_v30  ;;  %v985_v43 = vunpack.c.h.bf16 %v1033_v30 }
  0x19   : > { %v392_v44 = vpack.c.bf16 %v363_v37, %v362_v36  ;;  %v393_v45 = vpack.c.bf16 %v365_v39, %v364_v38  ;;  %v988_v46 = vunpack.c.l.bf16 %v1034_v35  ;;  %v989_v47 = vunpack.c.h.bf16 %v1034_v35 }
  0x1a   : > { %v407_v48 = vshrl.u32 %v390_v40, 16  ;;  %v410_v49 = vshll.u32 %v390_v40, 16  ;;  %v414_v50 = vshrl.u32 %v391_v41, 16  ;;  %v417_v51 = vshll.u32 %v391_v41, 16 }
  0x1b   : > { %v421_v53 = vshrl.u32 %v392_v44, 16  ;;  %v424_v54 = vshll.u32 %v392_v44, 16  ;;  %v428_v55 = vshrl.u32 %v393_v45, 16  ;;  %v431_v56 = vshll.u32 %v393_v45, 16 }
  0x1c   : > { %v409_v57 = vrot.slane %v407_v48, 7  ;;  %v416_v58 = vrot.slane %v414_v50, 7  ;;  %v295_v59 = vmul.f32 %v984_v42, %v1143_v0  ;;  %v296_v60 = vmul.f32 %v985_v43, %v1143_v0 }
  0x1d   : > { %v423_v61 = vrot.slane %v421_v53, 7  ;;  %v430_v62 = vrot.slane %v428_v55, 7  ;;  %v297_v63 = vmul.f32 %v988_v46, %v1143_v0  ;;  %v298_v1 = vmul.f32 %v989_v47, %v1143_v0 }
  0x1e   : > { %v412_v2 = vor.u32 %v410_v49, %v409_v57  ;;  %v569_v3 = vsel %vm1175_vm2, %v409_v57, 0  ;;  %v419_v4 = vor.u32 %v417_v51, %v416_v58  ;;  %v570_v5 = vsel %vm1175_vm2, %v416_v58, 0 }
  0x1f   : > { %v917_v6 = vcombine.low %v569_v3, %v569_v3  ;;  %v920_v7 = vcombine.low %v570_v5, %v570_v5  ;;  %v426_v8 = vor.u32 %v424_v54, %v423_v61  ;;  %v571_v10 = vsel %vm1175_vm2, %v423_v61, 0 }
  0x20   : > { %v553_v11 = vsel %vm1175_vm2, 0, %v412_v2  ;;  %v554_v12 = vsel %vm1175_vm2, 0, %v419_v4  ;;  %v923_v13 = vcombine.low %v571_v10, %v571_v10  ;;  %v433_v14 = vor.u32 %v431_v56, %v430_v62 }
  0x21   : > { %v915_v15 = vcombine.low %v553_v11, %v553_v11  ;;  %v916_v16 = vcombine.high %v553_v11, %v553_v11  ;;  %763 = vst [vmem:[%s1186_s27 + $0x8] sm:$0x1] %v917_v6  ;;  %v918_v17 = vcombine.low %v554_v12, %v554_v12  ;;  %v919_v18 = vcombine.high %v554_v12, %v554_v12 }
  0x22   : > { %766 = vst [vmem:[%s1186_s27 + $0x14] sm:$0x1] %v920_v7  ;;  %v555_v19 = vsel %vm1175_vm2, 0, %v426_v8  ;;  %769 = vst [vmem:[%s1186_s27 + $0x20] sm:$0x1] %v923_v13  ;;  %v556_v20 = vsel %vm1175_vm2, 0, %v433_v14  ;;  %v334_v22 = vadd.f32 %v1152_v9, %v295_v59  ;;  %v335_v31 = vadd.f32 %v1152_v9, %v296_v60 }
  0x23   : > { %v572_v21 = vsel %vm1175_vm2, %v430_v62, 0  ;;  %761 = vst [vmem:[%s1186_s27] sm:$0xf] %v915_v15  ;;  %762 = vst [vmem:[%s1186_s27 + $0x4] sm:$0xf] %v916_v16  ;;  %v921_v25 = vcombine.low %v555_v19, %v555_v19  ;;  %v922_v26 = vcombine.high %v555_v19, %v555_v19  ;;  %v924_v27 = vcombine.low %v556_v20, %v556_v20  ;;  %v1038_v59 = vld [vmem:[%s1138_s19 + $0x48] sm:$0xff]  }
  0x24   : > { %764 = vst [vmem:[%s1186_s27 + $0xc] sm:$0xf] %v918_v17  ;;  %765 = vst [vmem:[%s1186_s27 + $0x10] sm:$0xf] %v919_v18  ;;  %v925_v28 = vcombine.high %v556_v20, %v556_v20  ;;  %v926_v30 = vcombine.low %v572_v21, %v572_v21  ;;  %v366_v32 = vmax.f32 %v334_v22, 0.0  ;;  %v336_v33 = vadd.f32 %v1152_v9, %v297_v63 }
  0x25   : > { %767 = vst [vmem:[%s1186_s27 + $0x18] sm:$0xf] %v921_v25  ;;  %768 = vst [vmem:[%s1186_s27 + $0x1c] sm:$0xf] %v922_v26  ;;  %v337_v34 = vadd.f32 %v1152_v9, %v298_v1  ;;  %v992_v35 = vunpack.c.l.bf16 %v1035_v23  ;;  %v993_v36 = vunpack.c.h.bf16 %v1035_v23  ;;  %v996_v37 = vunpack.c.l.bf16 %v1036_v24 }
  0x26   : > { %770 = vst [vmem:[%s1186_s27 + $0x24] sm:$0xf] %v924_v27  ;;  %771 = vst [vmem:[%s1186_s27 + $0x28] sm:$0xf] %v925_v28  ;;  %v367_v38 = vmax.f32 %v335_v31, 0.0  ;;  %v368_v39 = vmax.f32 %v336_v33, 0.0  ;;  %v997_v40 = vunpack.c.h.bf16 %v1036_v24  ;;  %v1000_v41 = vunpack.c.l.bf16 %v1037_v29 }
  0x27   : > { %772 = vst [vmem:[%s1186_s27 + $0x2c] sm:$0x1] %v926_v30  ;;  %v369_v42 = vmax.f32 %v337_v34, 0.0  ;;  %v299_v43 = vmul.f32 %v992_v35, %v1143_v0  ;;  %v300_v44 = vmul.f32 %v993_v36, %v1143_v0  ;;  %v301_v45 = vmul.f32 %v996_v37, %v1143_v0 }
  0x28   : > { %v394_v46 = vpack.c.bf16 %v367_v38, %v366_v32  ;;  %v302_v47 = vmul.f32 %v997_v40, %v1143_v0  ;;  %v1001_v48 = vunpack.c.h.bf16 %v1037_v29  ;;  %v303_v49 = vmul.f32 %v1000_v41, %v1143_v0 }
  0x29   : > { %v395_v50 = vpack.c.bf16 %v369_v42, %v368_v39  ;;  %v338_v51 = vadd.f32 %v1152_v9, %v299_v43  ;;  %v339_v53 = vadd.f32 %v1152_v9, %v300_v44  ;;  %v340_v54 = vadd.f32 %v1152_v9, %v301_v45  ;;  %v1039_v42 = vld [vmem:[%s1138_s19 + $0x50] sm:$0xff]  }
  0x2a   : > { %v435_v55 = vshrl.u32 %v394_v46, 16  ;;  %v438_v56 = vshll.u32 %v394_v46, 16  ;;  %v341_v57 = vadd.f32 %v1152_v9, %v302_v47  ;;  %v304_v58 = vmul.f32 %v1001_v48, %v1143_v0  ;;  %v1040_v47 = vld [vmem:[%s1138_s19 + $0x58] sm:$0xff]   ;;  %v1041_v48 = vld [vmem:[%s1138_s19 + $0x60] sm:$0xff]  }
  0x2b   : > { %v442_v60 = vshrl.u32 %v395_v50, 16  ;;  %v445_v61 = vshll.u32 %v395_v50, 16  ;;  %v370_v62 = vmax.f32 %v338_v51, 0.0  ;;  %v371_v63 = vmax.f32 %v339_v53, 0.0 }
  0x2c   : > { %v437_v1 = vrot.slane %v435_v55, 7  ;;  %v372_v2 = vmax.f32 %v340_v54, 0.0  ;;  %v373_v3 = vmax.f32 %v341_v57, 0.0  ;;  %v342_v4 = vadd.f32 %v1152_v9, %v303_v49 }
  0x2d   : > { %v444_v5 = vrot.slane %v442_v60, 7  ;;  %v396_v6 = vpack.c.bf16 %v371_v63, %v370_v62  ;;  %v343_v7 = vadd.f32 %v1152_v9, %v304_v58  ;;  %v1004_v8 = vunpack.c.l.bf16 %v1038_v59 }
  0x2e   : > { %v440_v10 = vor.u32 %v438_v56, %v437_v1  ;;  %v573_v11 = vsel %vm1175_vm2, %v437_v1, 0  ;;  %v397_v12 = vpack.c.bf16 %v373_v3, %v372_v2  ;;  %v374_v13 = vmax.f32 %v342_v4, 0.0 }
  0x2f   : > { %v929_v14 = vcombine.low %v573_v11, %v573_v11  ;;  %v447_v15 = vor.u32 %v445_v61, %v444_v5  ;;  %v574_v16 = vsel %vm1175_vm2, %v444_v5, 0  ;;  %v449_v17 = vshrl.u32 %v396_v6, 16 }
  0x30   : > { %v557_v18 = vsel %vm1175_vm2, 0, %v440_v10  ;;  %v932_v19 = vcombine.low %v574_v16, %v574_v16  ;;  %v452_v20 = vshll.u32 %v396_v6, 16  ;;  %v456_v21 = vshrl.u32 %v397_v12, 16  ;;  %v1042_v16 = vld [vmem:[%s1138_s19 + $0x68] sm:$0xff]  }
  0x31   : > { %v927_v22 = vcombine.low %v557_v18, %v557_v18  ;;  %v928_v23 = vcombine.high %v557_v18, %v557_v18  ;;  %775 = vst [vmem:[%s1186_s27 + $0x38] sm:$0x1] %v929_v14  ;;  %v558_v24 = vsel %vm1175_vm2, 0, %v447_v15  ;;  %v451_v25 = vrot.slane %v449_v17, 7 }
  0x32   : > { %v930_v26 = vcombine.low %v558_v24, %v558_v24  ;;  %v931_v27 = vcombine.high %v558_v24, %v558_v24  ;;  %778 = vst [vmem:[%s1186_s27 + $0x44] sm:$0x1] %v932_v19  ;;  %v458_v28 = vrot.slane %v456_v21, 7  ;;  %v459_v29 = vshll.u32 %v397_v12, 16  ;;  %v1043_v21 = vld [vmem:[%s1138_s19 + $0x70] sm:$0xff]  }
  0x33   : > { %773 = vst [vmem:[%s1186_s27 + $0x30] sm:$0xf] %v927_v22  ;;  %774 = vst [vmem:[%s1186_s27 + $0x34] sm:$0xf] %v928_v23  ;;  %v454_v30 = vor.u32 %v452_v20, %v451_v25  ;;  %v575_v31 = vsel %vm1175_vm2, %v451_v25, 0  ;;  %v375_v32 = vmax.f32 %v343_v7, 0.0  ;;  %v1005_v33 = vunpack.c.h.bf16 %v1038_v59 }
  0x34   : > { %776 = vst [vmem:[%s1186_s27 + $0x3c] sm:$0xf] %v930_v26  ;;  %777 = vst [vmem:[%s1186_s27 + $0x40] sm:$0xf] %v931_v27  ;;  %v935_v34 = vcombine.low %v575_v31, %v575_v31  ;;  %v461_v35 = vor.u32 %v459_v29, %v458_v28  ;;  %v576_v36 = vsel %vm1175_vm2, %v458_v28, 0  ;;  %v305_v37 = vmul.f32 %v1004_v8, %v1143_v0 }
  0x35   : > { %v559_v38 = vsel %vm1175_vm2, 0, %v454_v30  ;;  %v938_v39 = vcombine.low %v576_v36, %v576_v36  ;;  %v398_v40 = vpack.c.bf16 %v375_v32, %v374_v13  ;;  %v306_v41 = vmul.f32 %v1005_v33, %v1143_v0 }
  0x36   : > { %v933_v43 = vcombine.low %v559_v38, %v559_v38  ;;  %v934_v44 = vcombine.high %v559_v38, %v559_v38  ;;  %781 = vst [vmem:[%s1186_s27 + $0x50] sm:$0x1] %v935_v34  ;;  %v560_v45 = vsel %vm1175_vm2, 0, %v461_v35  ;;  %v344_v46 = vadd.f32 %v1152_v9, %v305_v37 }
  0x37   : > { %v936_v49 = vcombine.low %v560_v45, %v560_v45  ;;  %v937_v50 = vcombine.high %v560_v45, %v560_v45  ;;  %784 = vst [vmem:[%s1186_s27 + $0x5c] sm:$0x1] %v938_v39  ;;  %v463_v51 = vshrl.u32 %v398_v40, 16  ;;  %v466_v53 = vshll.u32 %v398_v40, 16 }
  0x38   : > { %779 = vst [vmem:[%s1186_s27 + $0x48] sm:$0xf] %v933_v43  ;;  %780 = vst [vmem:[%s1186_s27 + $0x4c] sm:$0xf] %v934_v44  ;;  %v345_v54 = vadd.f32 %v1152_v9, %v306_v41  ;;  %v376_v55 = vmax.f32 %v344_v46, 0.0  ;;  %v1008_v56 = vunpack.c.l.bf16 %v1039_v42  ;;  %v1009_v57 = vunpack.c.h.bf16 %v1039_v42 }
  0x39   : > { %782 = vst [vmem:[%s1186_s27 + $0x54] sm:$0xf] %v936_v49  ;;  %783 = vst [vmem:[%s1186_s27 + $0x58] sm:$0xf] %v937_v50  ;;  %v465_v58 = vrot.slane %v463_v51, 7  ;;  %v1012_v59 = vunpack.c.l.bf16 %v1040_v47  ;;  %v1013_v60 = vunpack.c.h.bf16 %v1040_v47  ;;  %v1016_v61 = vunpack.c.l.bf16 %v1041_v48 }
  0x3a   : > { %v377_v62 = vmax.f32 %v345_v54, 0.0  ;;  %v307_v63 = vmul.f32 %v1008_v56, %v1143_v0  ;;  %v308_v1 = vmul.f32 %v1009_v57, %v1143_v0  ;;  %v1017_v2 = vunpack.c.h.bf16 %v1041_v48 }
  0x3b   : > { %v468_v3 = vor.u32 %v466_v53, %v465_v58  ;;  %v577_v4 = vsel %vm1175_vm2, %v465_v58, 0  ;;  %v309_v5 = vmul.f32 %v1012_v59, %v1143_v0  ;;  %v310_v6 = vmul.f32 %v1013_v60, %v1143_v0 }
  0x3c   : > { %v941_v7 = vcombine.low %v577_v4, %v577_v4  ;;  %v399_v8 = vpack.c.bf16 %v377_v62, %v376_v55  ;;  %v346_v10 = vadd.f32 %v1152_v9, %v307_v63  ;;  %v347_v11 = vadd.f32 %v1152_v9, %v308_v1  ;;  %v1044_v4 = vld [vmem:[%s1138_s19 + $0x78] sm:$0xff]  }
  0x3d   : > { %v561_v12 = vsel %vm1175_vm2, 0, %v468_v3  ;;  %v348_v13 = vadd.f32 %v1152_v9, %v309_v5  ;;  %v349_v14 = vadd.f32 %v1152_v9, %v310_v6  ;;  %v311_v15 = vmul.f32 %v1016_v61, %v1143_v0 }
  0x3e   : > { %v939_v17 = vcombine.low %v561_v12, %v561_v12  ;;  %v940_v18 = vcombine.high %v561_v12, %v561_v12  ;;  %787 = vst [vmem:[%s1186_s27 + $0x68] sm:$0x1] %v941_v7  ;;  %v470_v19 = vshrl.u32 %v399_v8, 16  ;;  %v473_v20 = vshll.u32 %v399_v8, 16 }
  0x3f   : > { %v378_v22 = vmax.f32 %v346_v10, 0.0  ;;  %v379_v23 = vmax.f32 %v347_v11, 0.0  ;;  %v380_v24 = vmax.f32 %v348_v13, 0.0  ;;  %v381_v25 = vmax.f32 %v349_v14, 0.0 }
  0x40   : > { %785 = vst [vmem:[%s1186_s27 + $0x60] sm:$0xf] %v939_v17  ;;  %786 = vst [vmem:[%s1186_s27 + $0x64] sm:$0xf] %v940_v18  ;;  %v472_v26 = vrot.slane %v470_v19, 7  ;;  %v312_v27 = vmul.f32 %v1017_v2, %v1143_v0  ;;  %v350_v28 = vadd.f32 %v1152_v9, %v311_v15  ;;  %v1020_v29 = vunpack.c.l.bf16 %v1042_v16 }
  0x41   : > { %v400_v30 = vpack.c.bf16 %v379_v23, %v378_v22  ;;  %v401_v31 = vpack.c.bf16 %v381_v25, %v380_v24  ;;  %v1021_v32 = vunpack.c.h.bf16 %v1042_v16  ;;  %v1024_v33 = vunpack.c.l.bf16 %v1043_v21 }
  0x42   : > { %v475_v34 = vor.u32 %v473_v20, %v472_v26  ;;  %v578_v35 = vsel %vm1175_vm2, %v472_v26, 0  ;;  %v351_v36 = vadd.f32 %v1152_v9, %v312_v27  ;;  %v382_v37 = vmax.f32 %v350_v28, 0.0 }
  0x43   : > { %v944_v38 = vcombine.low %v578_v35, %v578_v35  ;;  %v477_v39 = vshrl.u32 %v400_v30, 16  ;;  %v480_v40 = vshll.u32 %v400_v30, 16  ;;  %v484_v41 = vshrl.u32 %v401_v31, 16 }
  0x44   : > { %v562_v42 = vsel %vm1175_vm2, 0, %v475_v34  ;;  %v487_v43 = vshll.u32 %v401_v31, 16  ;;  %v383_v44 = vmax.f32 %v351_v36, 0.0  ;;  %v313_v45 = vmul.f32 %v1020_v29, %v1143_v0 }
  0x45   : > { %v942_v46 = vcombine.low %v562_v42, %v562_v42  ;;  %v943_v47 = vcombine.high %v562_v42, %v562_v42  ;;  %790 = vst [vmem:[%s1186_s27 + $0x74] sm:$0x1] %v944_v38  ;;  %v479_v48 = vrot.slane %v477_v39, 7  ;;  %v486_v49 = vrot.slane %v484_v41, 7 }
  0x46   : > { %v402_v50 = vpack.c.bf16 %v383_v44, %v382_v37  ;;  %v314_v51 = vmul.f32 %v1021_v32, %v1143_v0  ;;  %v352_v53 = vadd.f32 %v1152_v9, %v313_v45  ;;  %v1025_v54 = vunpack.c.h.bf16 %v1043_v21 }
  0x47   : > { %788 = vst [vmem:[%s1186_s27 + $0x6c] sm:$0xf] %v942_v46  ;;  %789 = vst [vmem:[%s1186_s27 + $0x70] sm:$0xf] %v943_v47  ;;  %v482_v55 = vor.u32 %v480_v40, %v479_v48  ;;  %v579_v56 = vsel %vm1175_vm2, %v479_v48, 0  ;;  %v489_v57 = vor.u32 %v487_v43, %v486_v49  ;;  %v580_v58 = vsel %vm1175_vm2, %v486_v49, 0 }
  0x48   : > { %v947_v59 = vcombine.low %v579_v56, %v579_v56  ;;  %v950_v60 = vcombine.low %v580_v58, %v580_v58  ;;  %v491_v61 = vshrl.u32 %v402_v50, 16  ;;  %v494_v62 = vshll.u32 %v402_v50, 16 }
  0x49   : > { %v563_v63 = vsel %vm1175_vm2, 0, %v482_v55  ;;  %v564_v1 = vsel %vm1175_vm2, 0, %v489_v57  ;;  %v353_v2 = vadd.f32 %v1152_v9, %v314_v51  ;;  %v384_v3 = vmax.f32 %v352_v53, 0.0 }
  0x4a   : > { %v945_v5 = vcombine.low %v563_v63, %v563_v63  ;;  %v946_v6 = vcombine.high %v563_v63, %v563_v63  ;;  %793 = vst [vmem:[%s1186_s27 + $0x80] sm:$0x1] %v947_v59  ;;  %v948_v7 = vcombine.low %v564_v1, %v564_v1  ;;  %v949_v8 = vcombine.high %v564_v1, %v564_v1 }
  0x4b   : > { %796 = vst [vmem:[%s1186_s27 + $0x8c] sm:$0x1] %v950_v60  ;;  %v493_v10 = vrot.slane %v491_v61, 7  ;;  %v385_v11 = vmax.f32 %v353_v2, 0.0  ;;  %v315_v12 = vmul.f32 %v1024_v33, %v1143_v0  ;;  %v316_v13 = vmul.f32 %v1025_v54, %v1143_v0 }
  0x4c   : > { %791 = vst [vmem:[%s1186_s27 + $0x78] sm:$0xf] %v945_v5  ;;  %792 = vst [vmem:[%s1186_s27 + $0x7c] sm:$0xf] %v946_v6  ;;  %v1028_v14 = vunpack.c.l.bf16 %v1044_v4  ;;  %v1029_v15 = vunpack.c.h.bf16 %v1044_v4 }
  0x4d   : > { %794 = vst [vmem:[%s1186_s27 + $0x84] sm:$0xf] %v948_v7  ;;  %795 = vst [vmem:[%s1186_s27 + $0x88] sm:$0xf] %v949_v8  ;;  %v496_v16 = vor.u32 %v494_v62, %v493_v10  ;;  %v581_v17 = vsel %vm1175_vm2, %v493_v10, 0  ;;  %v403_v18 = vpack.c.bf16 %v385_v11, %v384_v3  ;;  %v354_v19 = vadd.f32 %v1152_v9, %v315_v12 }
  0x4e   : > { %v953_v20 = vcombine.low %v581_v17, %v581_v17  ;;  %v355_v21 = vadd.f32 %v1152_v9, %v316_v13  ;;  %v317_v22 = vmul.f32 %v1028_v14, %v1143_v0  ;;  %v318_v23 = vmul.f32 %v1029_v15, %v1143_v0 }
  0x4f   : > { %v565_v24 = vsel %vm1175_vm2, 0, %v496_v16  ;;  %v498_v25 = vshrl.u32 %v403_v18, 16  ;;  %v501_v26 = vshll.u32 %v403_v18, 16  ;;  %v386_v27 = vmax.f32 %v354_v19, 0.0 }
  0x50   : > { %v951_v28 = vcombine.low %v565_v24, %v565_v24  ;;  %v952_v29 = vcombine.high %v565_v24, %v565_v24  ;;  %799 = vst [vmem:[%s1186_s27 + $0x98] sm:$0x1] %v953_v20  ;;  %v387_v30 = vmax.f32 %v355_v21, 0.0  ;;  %v356_v31 = vadd.f32 %v1152_v9, %v317_v22 }
  0x51   : > { %v500_v32 = vrot.slane %v498_v25, 7  ;;  %v357_v33 = vadd.f32 %v1152_v9, %v318_v23 }
  0x52   : > { %797 = vst [vmem:[%s1186_s27 + $0x90] sm:$0xf] %v951_v28  ;;  %798 = vst [vmem:[%s1186_s27 + $0x94] sm:$0xf] %v952_v29  ;;  %v404_v34 = vpack.c.bf16 %v387_v30, %v386_v27  ;;  %v388_v0 = vmax.f32 %v356_v31, 0.0 }
  0x53   : > { %v503_v35 = vor.u32 %v501_v26, %v500_v32  ;;  %v582_v36 = vsel %vm1175_vm2, %v500_v32, 0  ;;  %v389_v37 = vmax.f32 %v357_v33, 0.0 }
  0x54   : > { %v956_v38 = vcombine.low %v582_v36, %v582_v36  ;;  %v505_v39 = vshrl.u32 %v404_v34, 16  ;;  %v508_v40 = vshll.u32 %v404_v34, 16 }
  0x55   : > { %v566_v41 = vsel %vm1175_vm2, 0, %v503_v35  ;;  %v405_v42 = vpack.c.bf16 %v389_v37, %v388_v0 }
  0x56   : > { %v954_v9 = vcombine.low %v566_v41, %v566_v41  ;;  %v955_v43 = vcombine.high %v566_v41, %v566_v41  ;;  %802 = vst [vmem:[%s1186_s27 + $0xa4] sm:$0x1] %v956_v38  ;;  %v507_v44 = vrot.slane %v505_v39, 7 }
  0x57   : > { %v512_v45 = vshrl.u32 %v405_v42, 16  ;;  %v515_v46 = vshll.u32 %v405_v42, 16 }
  0x58   : > { %800 = vst [vmem:[%s1186_s27 + $0x9c] sm:$0xf] %v954_v9  ;;  %801 = vst [vmem:[%s1186_s27 + $0xa0] sm:$0xf] %v955_v43  ;;  %v510_v47 = vor.u32 %v508_v40, %v507_v44  ;;  %v583_v48 = vsel %vm1175_vm2, %v507_v44, 0 }
  0x59   : > { %v959_v49 = vcombine.low %v583_v48, %v583_v48  ;;  %v514_v50 = vrot.slane %v512_v45, 7 }
  0x5a   : > { %v567_v51 = vsel %vm1175_vm2, 0, %v510_v47 }
  0x5b   : > { %v957_v53 = vcombine.low %v567_v51, %v567_v51  ;;  %v958_v54 = vcombine.high %v567_v51, %v567_v51  ;;  %805 = vst [vmem:[%s1186_s27 + $0xb0] sm:$0x1] %v959_v49  ;;  %v517_v55 = vor.u32 %v515_v46, %v514_v50  ;;  %v584_v56 = vsel %vm1175_vm2, %v514_v50, 0 }
  0x5c   : > { %v962_v57 = vcombine.low %v584_v56, %v584_v56 }
  0x5d   : > { %803 = vst [vmem:[%s1186_s27 + $0xa8] sm:$0xf] %v957_v53  ;;  %804 = vst [vmem:[%s1186_s27 + $0xac] sm:$0xf] %v958_v54  ;;  %v568_v58 = vsel %vm1175_vm2, 0, %v517_v55 }
  0x5e   : > { %v960_v59 = vcombine.low %v568_v58, %v568_v58  ;;  %v961_v60 = vcombine.high %v568_v58, %v568_v58  ;;  %808 = vst [vmem:[%s1186_s27 + $0xbc] sm:$0x1] %v962_v57 }
  0x60   : > { %806 = vst [vmem:[%s1186_s27 + $0xb4] sm:$0xf] %v960_v59  ;;  %807 = vst [vmem:[%s1186_s27 + $0xb8] sm:$0xf] %v961_v60 }
  0x61 PF: > { %s13_s14 = sadd.s32 1, %s1092_s14   ;;  %s1369_s12 = smov %s1088_s13 }
  0x62   : > { %p10_p5 = scmp.ge.s32.totalorder %s13_s14, 4   ;;  %s1370_s13 = smov %s1372_s15 }
  0x64   :  { %12 = sbr.rel (!%p10_p5) target bundleno = 2 (0x2), region = 62 }

// kernel: inconv_forward.6
= control target key start
LH: loop header
LB: loop body
LE: loop exit
PB: predicated region body
PF: predicated region fallthrough
CT: control target
= control target key end

     0   :  { %s5319_s18 = smov 0   ;;  %s5321_s19 = smov 0   ;;  %s6755_s0 = inlined_call_operand.vmem [shape: bf16[2,16,18,128], index: 0, kind: input, shape index: {}, may-alias: {0,1,2}]   ;;  %s6756_s1 = inlined_call_operand.vmem [shape: bf16[2,16,18,128], index: 1, kind: input, shape index: {}, may-alias: {0,1,2}]   ;;  %s6757_s2 = inlined_call_operand.vmem [shape: bf16[2,16,18,128], index: 2, kind: input, shape index: {}, may-alias: {0,1,2}]   ;;  %s6758_s3 = inlined_call_operand.vmem [shape: bf16[9,128,128], index: 3, kind: input, shape index: {}]   ;;  %s6759_s4 = inlined_call_operand.vmem [shape: bf16[2,16,16,128], index: 4, kind: output, shape index: {0}]   ;;  %s6760_s5 = inlined_call_operand.vmem [shape: f32[2,1,2,128], index: 5, kind: output, shape index: {1}]  }
   0x1   :  { %s5323_s20 = smov 0  }
   0x2 LB: > { %s28_s1 = sadd.s32 1, %s5282_s19  ;;  %p4031_p0 = scmp.ge.s32.totalorder %s5286_s20, 1  ;;  %s5286_s20 = sphi %s5323_s20, %s16_s20   ;;  %s5282_s19 = sphi %s5321_s19, %s6902_s19   ;;  %s5278_s18 = sphi %s5319_s18, %s6901_s18  }
   0x3   : > { %p30_p1 = scmp.ge.s32.totalorder %s28_s1, 2  ;;  %p282_p2 = scmp.lt.s32.totalorder %s5286_s20, 3 }
   0x5   : > { %s6904_s1 = smov (%p30_p1, %s28_s1), 0  ;;  %p283_p3 = pnand %p4031_p0, %p282_p2 }
   0x7   : > { %286 = sbr.rel (%p283_p3) target bundleno = 572 (0x23c), region = 36 }
   0xc   : > { %v5167_v0 = vld [vmem:[%s6758_s3 + $0x78] sm:$0xff]   ;;  %v5168_v1 = vld [vmem:[%s6758_s3 + $0x70] sm:$0xff]   ;;  %v6761_v2 = vmov 0   ;;  %p356_p4 = scmp.lt.s32.totalorder %s5278_s18, 1  ;;  %v5169_v5 = vld [vmem:[%s6758_s3 + $0x68] sm:$0xff]   ;;  %vm1502_vm0 = vcmask 1042432  }
   0xd   : > { %v510_v3 = vrot.slane %v6761_v2, 4  ;;  %4693 = vmatprep.subr.bf16.mxu0 %v5167_v0  ;;  %5125 = vmatprep.subr.bf16.mxu1 %v5167_v0  ;;  %v5345_v4 = vrot.slane %v6761_v2, 5  ;;  %v5170_v7 = vld [vmem:[%s6758_s3 + $0x60] sm:$0xff]   ;;  %vm504_vm1 = vsmask.f32 3328  ;;  %vm1503_vm4 = vcmask 1046532  }
   0xe   : > { %4694 = vmatpush3.bf16.msra.mxu0 %v5167_v0  ;;  %5133 = vmatpush3.bf16.msra.mxu1 %v5167_v0  ;;  %s6906_s18 = smov (!%p356_p4, %s5278_s18), 1  ;;  %vm505_vm2 = vsmask.f32 7440  ;;  %v5367_v10 = vrot.slane %v6761_v2, 9  ;;  %v5171_v16 = vld [vmem:[%s6758_s3 + $0x58] sm:$0xff]   ;;  %vm5386_vm5 = vmor %vm1502_vm0, %vm1503_vm4  ;;  %v5172_v37 = vld [vmem:[%s6758_s3 + $0x50] sm:$0xff]  }
   0xf   : > { %4695 = vmatprep.subr.bf16.mxu0 %v5168_v1  ;;  %5126 = vmatprep.subr.bf16.mxu1 %v5168_v1  ;;  %v514_v6 = vor.u32 %v5345_v4, %v510_v3  ;;  %s5141_s28 = smul.u32 192, %s6906_s18  ;;  %vm5357_vm3 = vmor %vm504_vm1, %vm505_vm2  ;;  %v1509_v11 = vrot.slane %v5345_v4, 4  ;;  %v5173_v60 = vld [vmem:[%s6758_s3 + $0x48] sm:$0xff]   ;;  %v5224_v22 = vld [vmem:[%s6758_s3 + $0x170] sm:$0xff]   ;;  %s4349_s8 = sshll.u32 %s6906_s18, 7  ;;  %vm3845_vm6 = vcmask 1040384  }
  0x10   : > { %v5242_v9 = vld [vmem:[%s6758_s3 + $0x230] sm:$0xff]   ;;  %s6660_s11 = scalar_lea.vmem %s6759_s4, %s4349_s8  ;;  %s4037_s12 = sshll.u32 %s6906_s18, 1 }
  0x11   : > { %v515_v8 = vrot.slane %v514_v6, 4  ;;  %s5364_s6 = scalar_lea.vmem %s6755_s0, %s5141_s28  ;;  %v5415_v47 = vsel %vm5386_vm5, %v1509_v11, %v5345_v4  ;;  %s421_s15 = scalar_lea.vmem %s6760_s5, %s4037_s12 }
  0x12   : > { %4696 = vmatpush3.bf16.msra.mxu0 %v5168_v1  ;;  %5134 = vmatpush3.bf16.msra.mxu1 %v5168_v1  ;;  %v444_v13 = vld [vmem:[%s5364_s6 + $0x54] sm:$0xf]  ;;  %v445_v14 = vld [vmem:[%s5364_s6 + $0x58] sm:$0xf]  ;;  %v446_v15 = vld [vmem:[%s5364_s6 + $0x5c] sm:$0x1] }
  0x13   : > { %4697 = vmatprep.subr.bf16.mxu0 %v5169_v5  ;;  %5127 = vmatprep.subr.bf16.mxu1 %v5169_v5  ;;  %v520_v12 = vsel %vm5357_vm3, %v515_v8, %v5345_v4  ;;  %v700_v18 = vshrl.u32 %v444_v13, 16  ;;  %v703_v19 = vshll.u32 %v444_v13, 16  ;;  %v709_v20 = vshll.u32 %v445_v14, 16  ;;  %v5382_v21 = vld [vmem:[%s5364_s6] sm:$0xf] }
  0x14   : > { %v5379_v17 = vcombine.low %v520_v12, %v520_v12  ;;  %v713_v23 = vshrl.u32 %v445_v14, 16  ;;  %v719_v24 = vshll.u32 %v446_v15, 16  ;;  %v5391_v25 = vld [vmem:[%s5364_s6 + $0x4] sm:$0xf]  ;;  %v5394_v26 = vld [vmem:[%s5364_s6 + $0x8] sm:$0x1] }
  0x15   : > { %v702_v28 = vrot.slane %v700_v18, 4  ;;  %v705_v29 = vrot.slane %v703_v19, 5  ;;  %v711_v30 = vrot.slane %v709_v20, 5  ;;  %v532_v31 = vshrl.u32 %v5382_v21, 16  ;;  %v447_v36 = vld [vmem:[%s5364_s6 + $0x60] sm:$0xf] }
  0x16   : > { %4698 = vmatpush3.bf16.msra.mxu0 %v5169_v5  ;;  %5135 = vmatpush3.bf16.msra.mxu1 %v5169_v5  ;;  %6792 = vst [vmem:[#allocation2_spill] sm:$0xff] %v5379_v17  ;;  %v715_v32 = vrot.slane %v713_v23, 4  ;;  %v721_v33 = vrot.slane %v719_v24, 5  ;;  %v535_v34 = vshll.u32 %v5382_v21, 16  ;;  %v541_v35 = vshll.u32 %v5391_v25, 16  ;;  %v5174_v24 = vld [vmem:[%s6758_s3 + $0x40] sm:$0xff]  }
  0x17   : > { %4699 = vmatprep.subr.bf16.mxu0 %v5170_v7  ;;  %5128 = vmatprep.subr.bf16.mxu1 %v5170_v7  ;;  %v706_v38 = vor.u32 %v705_v29, %v702_v28  ;;  %v534_v39 = vrot.slane %v532_v31, 4  ;;  %v545_v40 = vshrl.u32 %v5391_v25, 16  ;;  %v551_v41 = vshll.u32 %v5394_v26, 16  ;;  %v448_v42 = vld [vmem:[%s5364_s6 + $0x64] sm:$0xf] }
  0x18   : > { %4709 = vmatprep.mubr.bf16.mxu0 %v5379_v17  ;;  %v716_v43 = vor.u32 %v715_v32, %v711_v30  ;;  %v537_v44 = vrot.slane %v535_v34, 5  ;;  %v543_v45 = vrot.slane %v541_v35, 5  ;;  %v449_v46 = vld [vmem:[%s5364_s6 + $0x68] sm:$0x1]  ;;  %v724_v51 = vshrl.u32 %v447_v36, 16 }
  0x19   : > { %v707_v48 = vrot.slane %v706_v38, 4  ;;  %v547_v49 = vrot.slane %v545_v40, 4  ;;  %v553_v50 = vrot.slane %v551_v41, 5  ;;  %v727_v54 = vshll.u32 %v447_v36, 16  ;;  %v5432_v12 = vld [vmem:[%s5364_s6 + $0x10] sm:$0xf] }
  0x1a   : > { %4700 = vmatpush3.bf16.msra.mxu0 %v5170_v7  ;;  %5136 = vmatpush3.bf16.msra.mxu1 %v5170_v7  ;;  %v717_v52 = vrot.slane %v716_v43, 4  ;;  %v538_v53 = vor.u32 %v537_v44, %v534_v39  ;;  %v733_v55 = vshll.u32 %v448_v42, 16  ;;  %v726_v58 = vrot.slane %v724_v51, 4  ;;  %v5427_v7 = vld [vmem:[%s5364_s6 + $0xc] sm:$0xf]  ;;  %v5175_v43 = vld [vmem:[%s6758_s3 + $0x38] sm:$0xff]  }
  0x1b   : > { %4701 = vmatprep.subr.bf16.mxu0 %v5171_v16  ;;  %5129 = vmatprep.subr.bf16.mxu1 %v5171_v16  ;;  %v712_v56 = vsel %vm5357_vm3, %v707_v48, %v711_v30  ;;  %v548_v57 = vor.u32 %v547_v49, %v543_v45  ;;  %v737_v59 = vshrl.u32 %v448_v42, 16  ;;  %v729_v63 = vrot.slane %v727_v54, 5  ;;  %v5435_v13 = vld [vmem:[%s5364_s6 + $0x14] sm:$0x1]  ;;  %v450_v23 = vld [vmem:[%s5364_s6 + $0x6c] sm:$0xf] }
  0x1c   : > { %v722_v61 = vsel %vm5357_vm3, %v717_v52, %v721_v33  ;;  %v539_v62 = vrot.slane %v538_v53, 4  ;;  %v735_v0 = vrot.slane %v733_v55, 5  ;;  %v743_v6 = vshll.u32 %v449_v46, 16  ;;  %v451_v32 = vld [vmem:[%s5364_s6 + $0x70] sm:$0xf] }
  0x1d   : > { %v5424_v1 = vcombine.low %v712_v56, %v722_v61  ;;  %v549_v3 = vrot.slane %v548_v57, 4  ;;  %v739_v5 = vrot.slane %v737_v59, 4  ;;  %v730_v11 = vor.u32 %v729_v63, %v726_v58  ;;  %v452_v39 = vld [vmem:[%s5364_s6 + $0x74] sm:$0x1]  ;;  %v5461_v48 = vld [vmem:[%s5364_s6 + $0x18] sm:$0xf] }
  0x1e   : > { %4702 = vmatpush3.bf16.msra.mxu0 %v5171_v16  ;;  %5137 = vmatpush3.bf16.msra.mxu1 %v5171_v16  ;;  %v544_v8 = vsel %vm5357_vm3, %v539_v62, %v543_v45  ;;  %v556_v14 = vshrl.u32 %v5427_v7, 16  ;;  %v559_v15 = vshll.u32 %v5427_v7, 16  ;;  %v745_v19 = vrot.slane %v743_v6, 5  ;;  %v5469_v54 = vld [vmem:[%s5364_s6 + $0x1c] sm:$0xf]  ;;  %v5178_v61 = vld [vmem:[%s6758_s3 + $0xb0] sm:$0xff]  }
  0x1f   : > { %4703 = vmatprep.subr.bf16.mxu0 %v5172_v37  ;;  %5130 = vmatprep.subr.bf16.mxu1 %v5172_v37  ;;  %6795 = vst [vmem:[#allocation3_spill] sm:$0xff] %v5424_v1  ;;  %v554_v16 = vsel %vm5357_vm3, %v549_v3, %v553_v50  ;;  %v740_v18 = vor.u32 %v739_v5, %v735_v0  ;;  %v565_v20 = vshll.u32 %v5432_v12, 16  ;;  %v731_v29 = vrot.slane %v730_v11, 4  ;;  %v5176_v50 = vld [vmem:[%s6758_s3 + $0xb8] sm:$0xff]   ;;  %v5472_v59 = vld [vmem:[%s5364_s6 + $0x20] sm:$0x1] }
  0x20   : > { %v5446_v28 = vcombine.low %v544_v8, %v554_v16  ;;  %v558_v30 = vrot.slane %v556_v14, 4  ;;  %v561_v31 = vrot.slane %v559_v15, 5  ;;  %4725 = vmatprep.mubr.bf16.mxu1 %v5424_v1  ;;  %v569_v35 = vshrl.u32 %v5432_v12, 16  ;;  %v5485_v5 = vld [vmem:[%s5364_s6 + $0x78] sm:$0xf] }
  0x21   : > { %v741_v33 = vrot.slane %v740_v18, 4  ;;  %v567_v34 = vrot.slane %v565_v20, 5  ;;  %v575_v36 = vshll.u32 %v5435_v13, 16  ;;  %v748_v40 = vshrl.u32 %v450_v23, 16  ;;  %v5489_v15 = vld [vmem:[%s5364_s6 + $0x7c] sm:$0xf] }
  0x22   : > { %4704 = vmatpush3.bf16.msra.mxu0 %v5172_v37  ;;  %5138 = vmatpush3.bf16.msra.mxu1 %v5172_v37  ;;  %6796 = vst [vmem:[#allocation4_spill] sm:$0xff] %v5446_v28  ;;  %v736_v37 = vsel %vm5357_vm3, %v731_v29, %v735_v0  ;;  %v562_v38 = vor.u32 %v561_v31, %v558_v30  ;;  %v751_v41 = vshll.u32 %v450_v23, 16  ;;  %v571_v44 = vrot.slane %v569_v35, 4  ;;  %v5493_v23 = vld [vmem:[%s5364_s6 + $0x80] sm:$0x1] }
  0x23   : > { %4705 = vmatprep.subr.bf16.mxu0 %v5173_v60  ;;  %5131 = vmatprep.subr.bf16.mxu1 %v5173_v60  ;;  %v746_v42 = vsel %vm5357_vm3, %v741_v33, %v745_v19  ;;  %v577_v45 = vrot.slane %v575_v36, 5  ;;  %v757_v46 = vshll.u32 %v451_v32, 16  ;;  %v750_v52 = vrot.slane %v748_v40, 4 }
  0x24   : > { %v5463_v49 = vcombine.low %v736_v37, %v746_v42  ;;  %v563_v51 = vrot.slane %v562_v38, 4  ;;  %v753_v53 = vrot.slane %v751_v41, 5  ;;  %v572_v55 = vor.u32 %v571_v44, %v567_v34 }
  0x25   : > { %v759_v56 = vrot.slane %v757_v46, 5  ;;  %v761_v57 = vshrl.u32 %v451_v32, 16  ;;  %v767_v58 = vshll.u32 %v452_v39, 16  ;;  %v580_v0 = vshrl.u32 %v5461_v48, 16 }
  0x26   : > { %4706 = vmatpush3.bf16.msra.mxu0 %v5173_v60  ;;  %5139 = vmatpush3.bf16.msra.mxu1 %v5173_v60  ;;  %6797 = vst [vmem:[#allocation5_spill] sm:$0xff] %v5463_v49  ;;  %v5177_v60 = vld [vmem:[%s6758_s3 + $0x30] sm:$0xff]   ;;  %v568_v62 = vsel %vm5357_vm3, %v563_v51, %v567_v34  ;;  %v754_v63 = vor.u32 %v753_v53, %v750_v52  ;;  %v583_v3 = vshll.u32 %v5461_v48, 16  ;;  %v573_v6 = vrot.slane %v572_v55, 4  ;;  %v5180_v53 = vld [vmem:[%s6758_s3 + $0xa8] sm:$0xff]  }
  0x27   : > { %4707 = vmatprep.subr.bf16.mxu0 %v5174_v24  ;;  %5132 = vmatprep.subr.bf16.mxu1 %v5174_v24  ;;  %v763_v8 = vrot.slane %v761_v57, 4  ;;  %v769_v11 = vrot.slane %v767_v58, 5  ;;  %v589_v14 = vshll.u32 %v5469_v54, 16  ;;  %v582_v18 = vrot.slane %v580_v0, 4  ;;  %v5522_v55 = vld [vmem:[%s5364_s6 + $0x28] sm:$0xf] }
  0x28   : > { %v755_v16 = vrot.slane %v754_v63, 4  ;;  %v585_v19 = vrot.slane %v583_v3, 5  ;;  %v593_v20 = vshrl.u32 %v5469_v54, 16  ;;  %v578_v29 = vsel %vm5357_vm3, %v573_v6, %v577_v45  ;;  %v5512_v45 = vld [vmem:[%s5364_s6 + $0x24] sm:$0xf] }
  0x29   : > { %v591_v30 = vrot.slane %v589_v14, 5  ;;  %v599_v31 = vshll.u32 %v5472_v59, 16  ;;  %v5500_v32 = vcombine.low %v568_v62, %v578_v29  ;;  %v772_v38 = vshrl.u32 %v5485_v5, 16  ;;  %v5529_v6 = vld [vmem:[%s5364_s6 + $0x2c] sm:$0x1]  ;;  %v5181_v14 = vld [vmem:[%s6758_s3 + $0x20] sm:$0xff]  }
  0x2a   : > { %4708 = vmatpush3.bf16.msra.mxu0 %v5174_v24  ;;  %5140 = vmatpush3.bf16.msra.mxu1 %v5174_v24  ;;  %v764_v24 = vor.u32 %v763_v8, %v759_v56  ;;  %v760_v33 = vsel %vm5357_vm3, %v755_v16, %v759_v56  ;;  %v586_v34 = vor.u32 %v585_v19, %v582_v18  ;;  %v595_v35 = vrot.slane %v593_v20, 4  ;;  %v5542_v18 = vld [vmem:[%s5364_s6 + $0x84] sm:$0xf] }
  0x2b   : > { %4741 = vmatprep.subr.bf16.mxu1 %v5175_v43  ;;  %4789 = vmatprep.subr.bf16.mxu0 %v5176_v50  ;;  %6798 = vst [vmem:[#allocation6_spill] sm:$0xff] %v5500_v32  ;;  %v601_v37 = vrot.slane %v599_v31, 5  ;;  %v775_v39 = vshll.u32 %v5485_v5, 16  ;;  %v781_v42 = vshll.u32 %v5489_v15, 16  ;;  %v785_v44 = vshrl.u32 %v5489_v15, 16 }
  0x2c   : > { %v765_v36 = vrot.slane %v764_v24, 4  ;;  %v587_v40 = vrot.slane %v586_v34, 4  ;;  %v596_v41 = vor.u32 %v595_v35, %v591_v30  ;;  %v791_v52 = vshll.u32 %v5493_v23, 16  ;;  %v5182_v24 = vld [vmem:[%s6758_s3 + $0xa0] sm:$0xff]   ;;  %v5550_v31 = vld [vmem:[%s5364_s6 + $0x88] sm:$0xf] }
  0x2d   : > { %4710 = vmatmul.mubr.bf16.vlgmr.msra.gmra.mxu0 %v5446_v28  ;;  %4726 = vmatmul.mubr.bf16.vlgmr.msra.gmra.mxu1 %v5463_v49  ;;  %v777_v51 = vrot.slane %v775_v39, 5  ;;  %v783_v62 = vrot.slane %v781_v42, 5  ;;  %v787_v0 = vrot.slane %v785_v44, 4  ;;  %v604_v8 = vshrl.u32 %v5512_v45, 16  ;;  %v5562_v42 = vld [vmem:[%s5364_s6 + $0x30] sm:$0xf] }
  0x2e   : > { %4742 = vmatpush3.bf16.msra.mxu1 %v5175_v43  ;;  %4790 = vmatpush3.bf16.msra.mxu0 %v5176_v50  ;;  %v5179_v43 = vld [vmem:[%s6758_s3 + $0x28] sm:$0xff]   ;;  %v770_v46 = vsel %vm5357_vm3, %v765_v36, %v769_v11  ;;  %v774_v50 = vrot.slane %v772_v38, 4  ;;  %v592_v57 = vsel %vm5357_vm3, %v587_v40, %v591_v30  ;;  %v597_v58 = vrot.slane %v596_v41, 4  ;;  %v5183_v44 = vld [vmem:[%s6758_s3 + $0x18] sm:$0xff]  }
  0x2f   : > { %4743 = vmatprep.subr.bf16.mxu1 %v5177_v60  ;;  %4791 = vmatprep.subr.bf16.mxu0 %v5178_v61  ;;  %v5524_v56 = vcombine.low %v760_v33, %v770_v46  ;;  %v793_v3 = vrot.slane %v791_v52, 5  ;;  %v617_v16 = vshrl.u32 %v5522_v55, 16  ;;  %v788_v29 = vor.u32 %v787_v0, %v783_v62 }
  0x30   : > { %4713 = vmatprep.mubr.bf16.mxu0 %v5500_v32  ;;  %v778_v63 = vor.u32 %v777_v51, %v774_v50  ;;  %v602_v11 = vsel %vm5357_vm3, %v597_v58, %v601_v37  ;;  %v606_v30 = vrot.slane %v604_v8, 4  ;;  %v623_v36 = vshll.u32 %v5529_v6, 16  ;;  %v5554_v37 = vld [vmem:[%s5364_s6 + $0x8c] sm:$0x1] }
  0x31   : > { %6799 = vst [vmem:[#allocation7_spill] sm:$0xff] %v5524_v56  ;;  %4729 = vmatprep.mubr.bf16.mxu1 %v5524_v56  ;;  %v5544_v19 = vcombine.low %v592_v57, %v602_v11  ;;  %v619_v35 = vrot.slane %v617_v16, 4  ;;  %v789_v39 = vrot.slane %v788_v29, 4  ;;  %v796_v40 = vshrl.u32 %v5542_v18, 16  ;;  %v5583_v16 = vld [vmem:[%s5364_s6 + $0x90] sm:$0xf] }
  0x32   : > { %4744 = vmatpush3.bf16.msra.mxu1 %v5177_v60  ;;  %4792 = vmatpush3.bf16.msra.mxu0 %v5178_v61  ;;  %v607_v60 = vshll.u32 %v5512_v45, 16  ;;  %v613_v61 = vshll.u32 %v5522_v55, 16  ;;  %v779_v20 = vrot.slane %v778_v63, 4  ;;  %v799_v41 = vshll.u32 %v5542_v18, 16  ;;  %v5665_v56 = vld [vmem:[%s5364_s6 + $0x48] sm:$0xf] }
  0x33   : > { %4745 = vmatprep.subr.bf16.mxu1 %v5179_v43  ;;  %6800 = vst [vmem:[#allocation8_spill] sm:$0xff] %v5544_v19  ;;  %4793 = vmatprep.subr.bf16.mxu0 %v5180_v53  ;;  %v625_v51 = vrot.slane %v623_v36, 5  ;;  %v805_v52 = vshll.u32 %v5550_v31, 16  ;;  %v794_v57 = vsel %vm5357_vm3, %v789_v39, %v793_v3  ;;  %v798_v58 = vrot.slane %v796_v40, 4  ;;  %v5185_v3 = vld [vmem:[%s6758_s3 + $0x10] sm:$0xff]  }
  0x34   : > { %v609_v33 = vrot.slane %v607_v60, 5  ;;  %v615_v34 = vrot.slane %v613_v61, 5  ;;  %v784_v38 = vsel %vm5357_vm3, %v779_v20, %v783_v62  ;;  %v801_v62 = vrot.slane %v799_v41, 5  ;;  %v5580_v61 = vld [vmem:[%s5364_s6 + $0x38] sm:$0x1]  ;;  %v5186_v36 = vld [vmem:[%s6758_s3 + $0x90] sm:$0xff]  }
  0x35   : > { %4714 = vmatmul.mubr.bf16.gmra.mxu0 %v5544_v19  ;;  %v809_v63 = vshrl.u32 %v5550_v31, 16  ;;  %v5577_v0 = vcombine.low %v784_v38, %v794_v57  ;;  %v807_v60 = vrot.slane %v805_v52, 5  ;;  %v631_v39 = vshll.u32 %v5562_v42, 16 }
  0x36   : > { %4746 = vmatpush3.bf16.msra.mxu1 %v5179_v43  ;;  %4794 = vmatpush3.bf16.msra.mxu0 %v5180_v53  ;;  %v610_v46 = vor.u32 %v609_v33, %v606_v30  ;;  %v620_v50 = vor.u32 %v619_v35, %v615_v34  ;;  %v5569_v43 = vld [vmem:[%s5364_s6 + $0x34] sm:$0xf]  ;;  %v5184_v53 = vld [vmem:[%s6758_s3 + $0x98] sm:$0xff]   ;;  %v802_v20 = vor.u32 %v801_v62, %v798_v58  ;;  %v815_v30 = vshll.u32 %v5554_v37, 16 }
  0x37   : > { %4747 = vmatprep.subr.bf16.mxu1 %v5181_v14  ;;  %4795 = vmatprep.subr.bf16.mxu0 %v5182_v24  ;;  %6801 = vst [vmem:[#allocation9_spill] sm:$0xff] %v5577_v0  ;;  %v811_v29 = vrot.slane %v809_v63, 4  ;;  %v628_v33 = vshrl.u32 %v5562_v42, 16  ;;  %v5591_v35 = vld [vmem:[%s5364_s6 + $0x94] sm:$0xf]  ;;  %v637_v40 = vshll.u32 %v5569_v43, 16 }
  0x38   : > { %v611_v8 = vrot.slane %v610_v46, 4  ;;  %v621_v11 = vrot.slane %v620_v50, 4  ;;  %4730 = vmatmul.mubr.bf16.gmra.mxu1 %v5577_v0  ;;  %v803_v46 = vrot.slane %v802_v20, 4  ;;  %v817_v52 = vrot.slane %v815_v30, 5 }
  0x39   : > { %v812_v50 = vor.u32 %v811_v29, %v807_v60  ;;  %v630_v57 = vrot.slane %v628_v33, 4  ;;  %v639_v58 = vrot.slane %v637_v40, 5  ;;  %v647_v63 = vshll.u32 %v5580_v61, 16 }
  0x3a   : > { %4748 = vmatpush3.bf16.msra.mxu1 %v5181_v14  ;;  %4796 = vmatpush3.bf16.msra.mxu0 %v5182_v24  ;;  %v616_v38 = vsel %vm5357_vm3, %v611_v8, %v615_v34  ;;  %v626_v14 = vsel %vm5357_vm3, %v621_v11, %v625_v51  ;;  %v633_v24 = vrot.slane %v631_v39, 5  ;;  %v641_v34 = vshrl.u32 %v5569_v43, 16  ;;  %v5611_v8 = vld [vmem:[%s5364_s6 + $0x98] sm:$0x1] }
  0x3b   : > { %v5603_v41 = vcombine.low %v616_v38, %v626_v14  ;;  %4749 = vmatprep.subr.bf16.mxu1 %v5183_v44  ;;  %4797 = vmatprep.subr.bf16.mxu0 %v5184_v53  ;;  %v808_v51 = vsel %vm5357_vm3, %v803_v46, %v807_v60  ;;  %v813_v62 = vrot.slane %v812_v50, 4  ;;  %v820_v11 = vshrl.u32 %v5583_v16, 16  ;;  %v5617_v38 = vld [vmem:[%s5364_s6 + $0x3c] sm:$0xf]  ;;  %v5188_v46 = vld [vmem:[%s6758_s3 + $0x88] sm:$0xff]  }
  0x3c   : > { %v634_v20 = vor.u32 %v633_v24, %v630_v57  ;;  %v643_v29 = vrot.slane %v641_v34, 4  ;;  %v823_v30 = vshll.u32 %v5583_v16, 16  ;;  %v829_v33 = vshll.u32 %v5591_v35, 16  ;;  %v5631_v24 = vld [vmem:[%s5364_s6 + $0x40] sm:$0xf] }
  0x3d   : > { %6802 = vst [vmem:[#allocation10_spill] sm:$0xff] %v5603_v41  ;;  %4717 = vmatprep.mubr.bf16.mxu0 %v5603_v41  ;;  %v818_v60 = vsel %vm5357_vm3, %v813_v62, %v817_v52  ;;  %v649_v14 = vrot.slane %v647_v63, 5  ;;  %v822_v39 = vrot.slane %v820_v11, 4  ;;  %v833_v40 = vshrl.u32 %v5591_v35, 16 }
  0x3e   : > { %4750 = vmatpush3.bf16.msra.mxu1 %v5183_v44  ;;  %4798 = vmatpush3.bf16.msra.mxu0 %v5184_v53  ;;  %v5187_v44 = vld [vmem:[%s6758_s3 + $0x8] sm:$0xff]   ;;  %v5628_v53 = vcombine.low %v808_v51, %v818_v60  ;;  %v635_v50 = vrot.slane %v634_v20, 4  ;;  %v644_v57 = vor.u32 %v643_v29, %v639_v58  ;;  %v825_v52 = vrot.slane %v823_v30, 5  ;;  %v5189_v51 = vld [vmem:[%s6758_s3] sm:$0xff]  }
  0x3f   : > { %4751 = vmatprep.subr.bf16.mxu1 %v5185_v3  ;;  %4799 = vmatprep.subr.bf16.mxu0 %v5186_v36  ;;  %v831_v34 = vrot.slane %v829_v33, 5  ;;  %v835_v62 = vrot.slane %v833_v40, 4  ;;  %v839_v63 = vshll.u32 %v5611_v8, 16  ;;  %v652_v11 = vshrl.u32 %v5617_v38, 16  ;;  %v5642_v33 = vld [vmem:[%s5364_s6 + $0x44] sm:$0x1] }
  0x40   : > { %6803 = vst [vmem:[#allocation11_spill] sm:$0xff] %v5628_v53  ;;  %4733 = vmatprep.mubr.bf16.mxu1 %v5628_v53  ;;  %v640_v20 = vsel %vm5357_vm3, %v635_v50, %v639_v58  ;;  %v645_v29 = vrot.slane %v644_v57, 4  ;;  %v826_v30 = vor.u32 %v825_v52, %v822_v39  ;;  %v655_v60 = vshll.u32 %v5617_v38, 16  ;;  %v5650_v53 = vld [vmem:[%s5364_s6 + $0xa0] sm:$0xf] }
  0x41   : > { %v836_v40 = vor.u32 %v835_v62, %v831_v34  ;;  %v841_v2 = vrot.slane %v839_v63, 5  ;;  %v654_v27 = vrot.slane %v652_v11, 4  ;;  %v661_v17 = vshll.u32 %v5631_v24, 16  ;;  %v5659_v52 = vld [vmem:[%s5364_s6 + $0xa4] sm:$0x1] }
  0x42   : > { %4752 = vmatpush3.bf16.msra.mxu1 %v5185_v3  ;;  %4800 = vmatpush3.bf16.msra.mxu0 %v5186_v36  ;;  %v5646_v3 = vld [vmem:[%s5364_s6 + $0x9c] sm:$0xf]  ;;  %v5190_v36 = vld [vmem:[%s6758_s3 + $0x80] sm:$0xff]   ;;  %v650_v58 = vsel %vm5357_vm3, %v645_v29, %v649_v14  ;;  %v827_v39 = vrot.slane %v826_v30, 4  ;;  %v657_v50 = vrot.slane %v655_v60, 5  ;;  %v665_v57 = vshrl.u32 %v5631_v24, 16 }
  0x43   : > { %4753 = vmatprep.subr.bf16.mxu1 %v5187_v44  ;;  %4801 = vmatprep.subr.bf16.mxu0 %v5188_v46  ;;  %6804 = vst [vmem:[#allocation12_spill] sm:$0xff] %v5659_v52  ;;  %v5661_v62 = vcombine.low %v640_v20, %v650_v58  ;;  %v837_v63 = vrot.slane %v836_v40, 4  ;;  %v663_v11 = vrot.slane %v661_v17, 5  ;;  %v671_v0 = vshll.u32 %v5642_v33, 16  ;;  %v5670_v14 = vld [vmem:[%s6758_s3 + $0xf8] sm:$0xff]  }
  0x44   : > { %v832_v29 = vsel %vm5357_vm3, %v827_v39, %v831_v34  ;;  %v658_v30 = vor.u32 %v657_v50, %v654_v27  ;;  %v667_v60 = vrot.slane %v665_v57, 4  ;;  %v844_v20 = vshrl.u32 %v5646_v3, 16  ;;  %v5676_v58 = vld [vmem:[%s5364_s6 + $0x4c] sm:$0xf]  ;;  %v5686_v27 = vld [vmem:[%s6758_s3 + $0x138] sm:$0xff]  }
  0x45   : > { %6805 = vst [vmem:[#allocation13_spill] sm:$0xff] %v5661_v62  ;;  %4718 = vmatmul.mubr.bf16.gmra.mxu0 %v5661_v62  ;;  %v842_v17 = vsel %vm5357_vm3, %v837_v63, %v841_v2  ;;  %v847_v40 = vshll.u32 %v5646_v3, 16  ;;  %v853_v34 = vshll.u32 %v5650_v53, 16  ;;  %v857_v2 = vshrl.u32 %v5650_v53, 16  ;;  %v5693_v63 = vld [vmem:[%s5364_s6 + $0x50] sm:$0x1] }
  0x46   : > { %4754 = vmatpush3.bf16.msra.mxu1 %v5187_v44  ;;  %4802 = vmatpush3.bf16.msra.mxu0 %v5188_v46  ;;  %v673_v44 = vrot.slane %v671_v0, 5  ;;  %v5688_v46 = vcombine.low %v832_v29, %v842_v17  ;;  %v659_v39 = vrot.slane %v658_v30, 4  ;;  %v668_v50 = vor.u32 %v667_v60, %v663_v11  ;;  %v5696_v62 = vld [vmem:[%s5364_s6 + $0xa8] sm:$0xf] }
  0x47   : > { %4755 = vmatprep.subr.bf16.mxu1 %v5189_v51  ;;  %4803 = vmatprep.subr.bf16.mxu0 %v5190_v36  ;;  %v846_v57 = vrot.slane %v844_v20, 4  ;;  %v849_v49 = vrot.slane %v847_v40, 5  ;;  %v855_v1 = vrot.slane %v853_v34, 5  ;;  %v863_v0 = vshll.u32 %v5659_v52, 16  ;;  %6807 = vst [vmem:[#allocation15_spill] sm:$0xff] %v5696_v62 }
  0x48   : > { %6806 = vst [vmem:[#allocation14_spill] sm:$0xff] %v5688_v46  ;;  %4734 = vmatmul.mubr.bf16.gmra.mxu1 %v5688_v46  ;;  %v664_v29 = vsel %vm5357_vm3, %v659_v39, %v663_v11  ;;  %v669_v17 = vrot.slane %v668_v50, 4  ;;  %v676_v30 = vshrl.u32 %v5665_v56, 16  ;;  %v679_v60 = vshll.u32 %v5665_v56, 16  ;;  %v5704_v20 = vld [vmem:[%s5364_s6 + $0xac] sm:$0xf] }
  0x49   : > { %v850_v40 = vor.u32 %v849_v49, %v846_v57  ;;  %v859_v34 = vrot.slane %v857_v2, 4  ;;  %v865_v41 = vrot.slane %v863_v0, 5  ;;  %v685_v19 = vshll.u32 %v5676_v58, 16  ;;  %v5715_v57 = vld [vmem:[%s5364_s6 + $0xb0] sm:$0x1] }
  0x4a   : > { %4756 = vmatpush3.bf16.msra.mxu1 %v5189_v51  ;;  %4804 = vmatpush3.bf16.msra.mxu0 %v5190_v36  ;;  %v674_v51 = vsel %vm5357_vm3, %v669_v17, %v673_v44  ;;  %v678_v11 = vrot.slane %v676_v30, 4  ;;  %v681_v39 = vrot.slane %v679_v60, 5  ;;  %v689_v50 = vshrl.u32 %v5676_v58, 16 }
  0x4b   : > { %4837 = vmatprep.subr.bf16.mxu1 %v5670_v14  ;;  %4885 = vmatprep.subr.bf16.mxu0 %v5686_v27  ;;  %v5712_v46 = vcombine.low %v664_v29, %v674_v51  ;;  %v851_v32 = vrot.slane %v850_v40, 4  ;;  %v860_v36 = vor.u32 %v859_v34, %v855_v1  ;;  %v687_v49 = vrot.slane %v685_v19, 5 }
  0x4c   : > { %v682_v2 = vor.u32 %v681_v39, %v678_v11  ;;  %v691_v0 = vrot.slane %v689_v50, 4  ;;  %v695_v28 = vshll.u32 %v5693_v63, 16  ;;  %v868_v52 = vshrl.u32 %v5696_v62, 16 }
  0x4d   : > { %6808 = vst [vmem:[#allocation16_spill] sm:$0xff] %v5712_v46  ;;  %4721 = vmatprep.mubr.bf16.mxu0 %v5712_v46  ;;  %v856_v44 = vsel %vm5357_vm3, %v851_v32, %v855_v1  ;;  %v861_v17 = vrot.slane %v860_v36, 4  ;;  %v871_v29 = vshll.u32 %v5696_v62, 16  ;;  %v877_v30 = vshll.u32 %v5704_v20, 16 }
  0x4e   : > { %v683_v60 = vrot.slane %v682_v2, 4  ;;  %v692_v19 = vor.u32 %v691_v0, %v687_v49  ;;  %v697_v40 = vrot.slane %v695_v28, 5  ;;  %v870_v34 = vrot.slane %v868_v52, 4 }
  0x4f   : > { %v866_v51 = vsel %vm5357_vm3, %v861_v17, %v865_v41  ;;  %v873_v11 = vrot.slane %v871_v29, 5  ;;  %v879_v39 = vrot.slane %v877_v30, 5  ;;  %v881_v50 = vshrl.u32 %v5704_v20, 16 }
  0x50   : > { %v5727_v46 = vcombine.low %v856_v44, %v866_v51  ;;  %v688_v1 = vsel %vm5357_vm3, %v683_v60, %v687_v49  ;;  %v693_v32 = vrot.slane %v692_v19, 4  ;;  %v887_v36 = vshll.u32 %v5715_v57, 16 }
  0x51   : > { %v874_v62 = vor.u32 %v873_v11, %v870_v34  ;;  %v883_v2 = vrot.slane %v881_v50, 4  ;;  %v6809_v28 = vsel %vm5386_vm5, %v5367_v10, %v5345_v4  ;;  %v5742_v52 = vcombine.low %v5382_v21, %v5391_v25 }
  0x52   : > { %v5738_v41 = vcombine.low %v6809_v28, %v5415_v47  ;;  %v1517_v0 = vrot.slane %v5394_v26, 5  ;;  %4737 = vmatprep.mubr.bf16.mxu1 %v5727_v46  ;;  %v698_v49 = vsel %vm5357_vm3, %v693_v32, %v697_v40  ;;  %v4106_v44 = vrot.slane %v5382_v21, 9 }
  0x53   : > { %v1514_v17 = vrot.slane %v5391_v25, 5  ;;  %v5750_v29 = vcombine.low %v688_v1, %v698_v49  ;;  %v875_v4 = vrot.slane %v874_v62, 4  ;;  %v884_v10 = vor.u32 %v883_v2, %v879_v39 }
  0x54   : > { %6810 = vst [vmem:[#allocation17_spill] sm:$0xff] %v5738_v41  ;;  %v889_v47 = vrot.slane %v887_v36, 5  ;;  %v4107_v60 = vrot.slane %v5427_v7, 9  ;;  %v1521_v19 = vrot.slane %v5432_v12, 5  ;;  %v1524_v21 = vrot.slane %v5435_v13, 5 }
  0x55   : > { %v1516_v30 = vrot.slane %v1514_v17, 4  ;;  %4722 = vmatmul.mubr.bf16.gmra.mxu0 %v5750_v29  ;;  %v880_v26 = vsel %vm5357_vm3, %v875_v4, %v879_v39  ;;  %v885_v40 = vrot.slane %v884_v10, 4  ;;  %v5760_v25 = vcombine.low %v5461_v48, %v5469_v54 }
  0x56   : > { %4805 = vmatprep.mubr.bf16.mxu0 %v5738_v41  ;;  %v1515_v62 = vsel %vm5386_vm5, %v4106_v44, %v1514_v17  ;;  %v1523_v51 = vrot.slane %v1521_v19, 4  ;;  %v6811_v39 = vmov 0   ;;  %v1522_v13 = vsel %vm5386_vm5, %v4107_v60, %v1521_v19 }
  0x57   : > { %v1518_v34 = vsel %vm5386_vm5, %v1516_v30, %v1517_v0  ;;  %v890_v11 = vsel %vm5357_vm3, %v885_v40, %v889_v47  ;;  %v5771_v50 = vcombine.low %v6811_v39, %v6811_v39  ;;  %v1528_v1 = vrot.slane %v5469_v54, 5  ;;  %v5197_v54 = vld [vmem:[%s6758_s3 + $0x130] sm:$0xff]  }
  0x58   : > { %v5776_v32 = vcombine.low %v880_v26, %v890_v11  ;;  %v1525_v36 = vsel %vm5386_vm5, %v1523_v51, %v1524_v21  ;;  %v4108_v2 = vrot.slane %v5461_v48, 9  ;;  %v5781_v28 = vcombine.low %v1515_v62, %v1518_v34  ;;  %v5196_v21 = vld [vmem:[%s6758_s3 + $0xf0] sm:$0xff]   ;;  %v5201_v34 = vld [vmem:[%s6758_s3 + $0x128] sm:$0xff]  }
  0x59   : > { %v1531_v0 = vrot.slane %v5472_v59, 5  ;;  %v1535_v49 = vrot.slane %v5522_v55, 5  ;;  %v5786_v44 = vcombine.low %v1522_v13, %v1525_v36  ;;  %v1530_v17 = vrot.slane %v1528_v1, 4 }
  0x5a   : > { %4738 = vmatmul.mubr.bf16.gmra.mxu1 %v5776_v32  ;;  %v4109_v4 = vrot.slane %v5512_v45, 9  ;;  %v1542_v10 = vrot.slane %v5569_v43, 5  ;;  %v1538_v59 = vrot.slane %v5529_v6, 5  ;;  %v4110_v47 = vrot.slane %v5562_v42, 9 }
  0x5b   : > { %4757 = vmatprep.mubr.bf16.mxu1 %v5771_v50  ;;  %v1537_v48 = vrot.slane %v1535_v49, 4  ;;  %v1549_v30 = vrot.slane %v5631_v24, 5  ;;  %v1529_v60 = vsel %vm5386_vm5, %v4108_v2, %v1528_v1  ;;  %v1532_v19 = vsel %vm5386_vm5, %v1530_v17, %v1531_v0  ;;  %v5205_v2 = vld [vmem:[%s6758_s3 + $0x120] sm:$0xff]  }
  0x5c   : > { %v1544_v26 = vrot.slane %v1542_v10, 4  ;;  %v1545_v40 = vrot.slane %v5580_v61, 5  ;;  %v5807_v6 = vcombine.low %v5427_v7, %v5432_v12  ;;  %v4111_v61 = vrot.slane %v5617_v38, 9 }
  0x5d   : > { %4806 = vmatmul.mubr.bf16.vlgmr.msra.gmra.mxu0 %v5781_v28  ;;  %v1539_v62 = vsel %vm5386_vm5, %v1537_v48, %v1538_v59  ;;  %v1551_v51 = vrot.slane %v1549_v30, 4  ;;  %v1552_v7 = vrot.slane %v5642_v33, 5  ;;  %v5821_v12 = vcombine.low %v1529_v60, %v1532_v19  ;;  %v5869_v48 = vld [vmem:[%s5364_s6 + $0x54] sm:$0xf]  ;;  %v5257_v19 = vld [vmem:[%s5364_s6 + $0x5c] sm:$0x1] }
  0x5e   : > { %4886 = vmatpush3.bf16.msra.mxu0 %v5686_v27  ;;  %4809 = vmatprep.mubr.bf16.mxu0 %v5786_v44  ;;  %v1536_v27 = vsel %vm5386_vm5, %v4109_v4, %v1535_v49  ;;  %v1556_v11 = vrot.slane %v5676_v58, 5  ;;  %v1543_v13 = vsel %vm5386_vm5, %v4110_v47, %v1542_v10  ;;  %v1546_v1 = vsel %vm5386_vm5, %v1544_v26, %v1545_v40  ;;  %v5853_v49 = vld [vmem:[%s5364_s6 + $0x58] sm:$0xf]  ;;  %v5204_v10 = vld [vmem:[%s6758_s3 + $0xe0] sm:$0xff]  }
  0x5f   : > { %4887 = vmatprep.subr.bf16.mxu0 %v5197_v54  ;;  %v5825_v39 = vcombine.low %v1536_v27, %v1539_v62  ;;  %v5835_v33 = vcombine.low %v5512_v45, %v5522_v55  ;;  %v4112_v36 = vrot.slane %v5665_v56, 9  ;;  %v5843_v0 = vcombine.low %v5562_v42, %v5569_v43 }
  0x60   : > { %v1550_v45 = vsel %vm5386_vm5, %v4111_v61, %v1549_v30  ;;  %v1553_v55 = vsel %vm5386_vm5, %v1551_v51, %v1552_v7  ;;  %v1563_v17 = vrot.slane %v5853_v49, 5  ;;  %v5861_v42 = vcombine.low %v5617_v38, %v5631_v24  ;;  %v5209_v38 = vld [vmem:[%s6758_s3 + $0x118] sm:$0xff]   ;;  %v5905_v7 = vld [vmem:[%s5364_s6 + $0x64] sm:$0xf] }
  0x61   : > { %v1558_v43 = vrot.slane %v1556_v11, 4  ;;  %v1559_v4 = vrot.slane %v5693_v63, 5  ;;  %v4113_v59 = vrot.slane %v5869_v48, 9  ;;  %v5877_v24 = vcombine.low %v5485_v5, %v5489_v15 }
  0x62   : > { %4758 = vmatmul.mubr.bf16.vlgmr.msra.gmra.mxu1 %v5742_v52  ;;  %4888 = vmatpush3.bf16.msra.mxu0 %v5197_v54  ;;  %v5857_v54 = vcombine.low %v1543_v13, %v1546_v1  ;;  %v4116_v63 = vrot.slane %v5485_v5, 9  ;;  %v1584_v47 = vrot.slane %v5489_v15, 5  ;;  %v5881_v30 = vcombine.low %v1550_v45, %v1553_v55  ;;  %v5208_v45 = vld [vmem:[%s6758_s3 + $0xd8] sm:$0xff]  }
  0x63   : > { %4838 = vmatpush3.bf16.msra.mxu1 %v5670_v14  ;;  %4761 = vmatprep.mubr.bf16.mxu1 %v5807_v6  ;;  %v5200_v14 = vld [vmem:[%s6758_s3 + $0xe8] sm:$0xff]   ;;  %v1557_v60 = vsel %vm5386_vm5, %v4112_v36, %v1556_v11  ;;  %v1566_v26 = vrot.slane %v5257_v19, 5  ;;  %v1587_v40 = vrot.slane %v5493_v23, 5  ;;  %v1565_v27 = vrot.slane %v1563_v17, 4 }
  0x64   : > { %4839 = vmatprep.subr.bf16.mxu1 %v5196_v21  ;;  %4889 = vmatprep.subr.bf16.mxu0 %v5201_v34  ;;  %v1585_v5 = vsel %vm5386_vm5, %v4116_v63, %v1584_v47  ;;  %v1586_v15 = vrot.slane %v1584_v47, 4  ;;  %v1560_v62 = vsel %vm5386_vm5, %v1558_v43, %v1559_v4  ;;  %v4117_v23 = vrot.slane %v5542_v18, 9  ;;  %v6812_v47 = vld [vmem:[#allocation12_spill] sm:$0xff] }
  0x65   : > { %4810 = vmatmul.mubr.bf16.gmra.mxu0 %v5821_v12  ;;  %v1591_v61 = vrot.slane %v5550_v31, 5  ;;  %v1594_v51 = vrot.slane %v5554_v37, 5  ;;  %v1570_v11 = vrot.slane %v5905_v7, 5  ;;  %v5912_v1 = vcombine.low %v5583_v16, %v5591_v35 }
  0x66   : > { %4813 = vmatprep.mubr.bf16.mxu0 %v5825_v39  ;;  %4890 = vmatpush3.bf16.msra.mxu0 %v5201_v34  ;;  %v5213_v34 = vld [vmem:[%s6758_s3 + $0x110] sm:$0xff]   ;;  %v1588_v13 = vsel %vm5386_vm5, %v1586_v15, %v1587_v40  ;;  %v1601_v55 = vrot.slane %v5611_v8, 5  ;;  %v1605_v43 = vrot.slane %v5650_v53, 5  ;;  %v1608_v8 = vrot.slane %v6812_v47, 5  ;;  %v6813_v40 = vld [vmem:[#allocation15_spill] sm:$0xff] }
  0x67   : > { %4840 = vmatpush3.bf16.msra.mxu1 %v5196_v21  ;;  %4891 = vmatprep.subr.bf16.mxu0 %v5205_v2  ;;  %v5893_v21 = vcombine.low %v5542_v18, %v5550_v31  ;;  %v4118_v18 = vrot.slane %v5583_v16, 9  ;;  %v5916_v31 = vcombine.low %v1585_v5, %v1588_v13  ;;  %v1592_v37 = vsel %vm5386_vm5, %v4117_v23, %v1591_v61  ;;  %v5259_v23 = vld [vmem:[%s5364_s6 + $0x70] sm:$0xf]  ;;  %v5216_v47 = vld [vmem:[%s6758_s3 + $0xc8] sm:$0xff]  }
  0x68   : > { %4841 = vmatprep.subr.bf16.mxu1 %v5200_v14  ;;  %v1593_v36 = vrot.slane %v1591_v61, 4  ;;  %v5927_v16 = vcombine.low %v5646_v3, %v5650_v53  ;;  %v1607_v53 = vrot.slane %v1605_v43, 4  ;;  %v5944_v5 = vcombine.low %v6813_v40, %v5704_v20 }
  0x69   : > { %v1564_v15 = vsel %vm5386_vm5, %v4113_v59, %v1563_v17  ;;  %v1577_v61 = vrot.slane %v5259_v23, 5  ;;  %v5217_v17 = vld [vmem:[%s6758_s3 + $0x108] sm:$0xff]  }
  0x6a   : > { %4762 = vmatmul.mubr.bf16.gmra.mxu1 %v5760_v25  ;;  %4892 = vmatpush3.bf16.msra.mxu0 %v5205_v2  ;;  %v1598_v2 = vrot.slane %v5591_v35, 5  ;;  %v1595_v35 = vsel %vm5386_vm5, %v1593_v36, %v1594_v51  ;;  %v1609_v59 = vsel %vm5386_vm5, %v1607_v53, %v1608_v8  ;;  %v6002_v53 = vcombine.low %v5869_v48, %v5853_v49  ;;  %v5222_v49 = vld [vmem:[%s6758_s3 + $0x178] sm:$0xff]  }
  0x6b   : > { %4765 = vmatprep.mubr.bf16.mxu1 %v5835_v33  ;;  %4842 = vmatpush3.bf16.msra.mxu1 %v5200_v14  ;;  %v4119_v14 = vrot.slane %v5646_v3, 9  ;;  %v5938_v19 = vcombine.low %v1592_v37, %v1595_v35 }
  0x6c   : > { %4843 = vmatprep.subr.bf16.mxu1 %v5204_v10  ;;  %4893 = vmatprep.subr.bf16.mxu0 %v5209_v38  ;;  %v1599_v4 = vsel %vm5386_vm5, %v4118_v18, %v1598_v2  ;;  %v1600_v63 = vrot.slane %v1598_v2, 4  ;;  %v1572_v2 = vrot.slane %v1570_v11, 4 }
  0x6d   : > { %4814 = vmatmul.mubr.bf16.gmra.mxu0 %v5857_v54  ;;  %v1606_v3 = vsel %vm5386_vm5, %v4119_v14, %v1605_v43  ;;  %v5262_v43 = vld [vmem:[%s5364_s6 + $0x6c] sm:$0xf] }
  0x6e   : > { %4817 = vmatprep.mubr.bf16.mxu0 %v5881_v30  ;;  %4894 = vmatpush3.bf16.msra.mxu0 %v5209_v38  ;;  %v1567_v38 = vsel %vm5386_vm5, %v1565_v27, %v1566_v26  ;;  %v1602_v51 = vsel %vm5386_vm5, %v1600_v63, %v1601_v55  ;;  %v5965_v26 = vcombine.low %v1557_v60, %v1560_v62  ;;  %v5260_v27 = vld [vmem:[%s5364_s6 + $0x60] sm:$0xf]  ;;  %v5261_v55 = vld [vmem:[%s5364_s6 + $0x68] sm:$0x1]  ;;  %v4115_v35 = vrot.slane %v5262_v43, 9 }
  0x6f   : > { %4844 = vmatpush3.bf16.msra.mxu1 %v5204_v10  ;;  %4895 = vmatprep.subr.bf16.mxu0 %v5213_v34  ;;  %v5212_v10 = vld [vmem:[%s6758_s3 + $0xd0] sm:$0xff]   ;;  %v5958_v13 = vcombine.low %v1599_v4, %v1602_v51  ;;  %v4114_v18 = vrot.slane %v5260_v27, 9  ;;  %v5968_v37 = vcombine.low %v1606_v3, %v1609_v59  ;;  %v5971_v36 = vcombine.low %v1564_v15, %v1567_v38  ;;  %v5221_v60 = vld [vmem:[%s6758_s3 + $0x100] sm:$0xff]  }
  0x70   : > { %4845 = vmatprep.subr.bf16.mxu1 %v5208_v45  ;;  %v1573_v14 = vrot.slane %v5261_v55, 5  ;;  %v1579_v62 = vrot.slane %v1577_v61, 4  ;;  %v5263_v4 = vld [vmem:[%s5364_s6 + $0x74] sm:$0x1]  ;;  %v5220_v3 = vld [vmem:[%s6758_s3 + $0xc0] sm:$0xff]   ;;  %v6022_v48 = vcombine.low %v5260_v27, %v5905_v7  ;;  %v1612_v51 = vrot.slane %v5704_v20, 5 }
  0x71   : > { %v1580_v63 = vrot.slane %v5263_v4, 5  ;;  %v4120_v7 = vrot.slane %v6813_v40, 9  ;;  %v6046_v40 = vld [vmem:[%s5364_s6 + $0xb8] sm:$0xf]  ;;  %v6051_v27 = vld [vmem:[%s5364_s6 + $0xb4] sm:$0xf] }
  0x72   : > { %4766 = vmatmul.mubr.bf16.gmra.mxu1 %v5843_v0  ;;  %4896 = vmatpush3.bf16.msra.mxu0 %v5213_v34  ;;  %v5988_v34 = vcombine.low %v5665_v56, %v5676_v58  ;;  %v1574_v8 = vsel %vm5386_vm5, %v1572_v2, %v1573_v14  ;;  %v1578_v56 = vsel %vm5386_vm5, %v4115_v35, %v1577_v61  ;;  %v4211_v2 = vrot.slane %v6051_v27, 9  ;;  %v5225_v4 = vld [vmem:[%s6758_s3 + $0x1b0] sm:$0xff]  }
  0x73   : > { %4769 = vmatprep.mubr.bf16.mxu1 %v5861_v42  ;;  %4846 = vmatpush3.bf16.msra.mxu1 %v5208_v45  ;;  %v1571_v45 = vsel %vm5386_vm5, %v4114_v18, %v1570_v11  ;;  %v1581_v58 = vsel %vm5386_vm5, %v1579_v62, %v1580_v63  ;;  %v5223_v11 = vld [vmem:[%s6758_s3 + $0x1b8] sm:$0xff]   ;;  %v6025_v61 = vcombine.low %v5262_v43, %v5259_v23  ;;  %v1614_v23 = vrot.slane %v1612_v51, 4  ;;  %v6814_v43 = vld [vmem:[#allocation4_spill] sm:$0xff]  ;;  %v6815_v63 = vld [vmem:[#allocation6_spill] sm:$0xff] }
  0x74   : > { %4847 = vmatprep.subr.bf16.mxu1 %v5212_v10  ;;  %4897 = vmatprep.subr.bf16.mxu0 %v5217_v17  ;;  %v6011_v15 = vcombine.low %v1571_v45, %v1574_v8  ;;  %v6014_v38 = vcombine.low %v1578_v56, %v1581_v58  ;;  %v6054_v18 = vld [vmem:[%s5364_s6 + $0xbc] sm:$0x1]  ;;  %v5227_v45 = vld [vmem:[%s6758_s3 + $0x1a8] sm:$0xff]   ;;  %v5228_v58 = vld [vmem:[%s6758_s3 + $0x160] sm:$0xff]  }
  0x75   : > { %4818 = vmatmul.mubr.bf16.gmra.mxu0 %v5965_v26  ;;  %v2495_v14 = vrot.slane %v6054_v18, 5  ;;  %v5226_v8 = vld [vmem:[%s6758_s3 + $0x168] sm:$0xff]   ;;  %v6818_v56 = vld [vmem:[#allocation13_spill] sm:$0xff] }
  0x76   : > { %4821 = vmatprep.mubr.bf16.mxu0 %v5971_v36  ;;  %4898 = vmatpush3.bf16.msra.mxu0 %v5217_v17  ;;  %v1613_v17 = vsel %vm5386_vm5, %v4120_v7, %v1612_v51  ;;  %v5230_v51 = vld [vmem:[%s6758_s3 + $0x158] sm:$0xff]   ;;  %v6819_v7 = vld [vmem:[#allocation16_spill] sm:$0xff] }
  0x77   : > { %4848 = vmatpush3.bf16.msra.mxu1 %v5212_v10  ;;  %4899 = vmatprep.subr.bf16.mxu0 %v5221_v60  ;;  %v1615_v10 = vrot.slane %v5715_v57, 5  ;;  %v2492_v57 = vrot.slane %v6046_v40, 5 }
  0x78   : > { %4849 = vmatprep.subr.bf16.mxu1 %v5216_v47 }
  0x79   : > { %v1616_v20 = vsel %vm5386_vm5, %v1614_v23, %v1615_v10  ;;  %v2494_v55 = vrot.slane %v2492_v57, 4  ;;  %v2493_v35 = vsel %vm5386_vm5, %v4211_v2, %v2492_v57  ;;  %v5232_v23 = vld [vmem:[%s6758_s3 + $0x150] sm:$0xff]   ;;  %v5235_v10 = vld [vmem:[%s6758_s3 + $0x188] sm:$0xff]   ;;  %v6821_v2 = vld [vmem:[#allocation5_spill] sm:$0xff] }
  0x7a   : > { %4770 = vmatmul.mubr.bf16.gmra.mxu1 %v5988_v34  ;;  %4900 = vmatpush3.bf16.msra.mxu0 %v5221_v60  ;;  %v6042_v59 = vcombine.low %v1613_v17, %v1616_v20  ;;  %v5238_v17 = vld [vmem:[%s6758_s3 + $0x180] sm:$0xff]   ;;  %v5234_v20 = vld [vmem:[%s6758_s3 + $0x148] sm:$0xff]  }
  0x7b   : > { %4773 = vmatprep.mubr.bf16.mxu1 %v6002_v53  ;;  %4850 = vmatpush3.bf16.msra.mxu1 %v5216_v47  ;;  %v2496_v60 = vsel %vm5386_vm5, %v2494_v55, %v2495_v14  ;;  %v6816_v47 = vld [vmem:[#allocation8_spill] sm:$0xff]  ;;  %v6820_v57 = vld [vmem:[#allocation3_spill] sm:$0xff]  ;;  %v5237_v55 = vld [vmem:[%s6758_s3 + $0x140] sm:$0xff]  }
  0x7c   : > { %4851 = vmatprep.subr.bf16.mxu1 %v5220_v3  ;;  %4981 = vmatprep.subr.bf16.mxu0 %v5223_v11  ;;  %v6064_v62 = vcombine.low %v2493_v35, %v2496_v60  ;;  %v5240_v14 = vld [vmem:[%s6758_s3 + $0x238] sm:$0xff]   ;;  %v6822_v35 = vld [vmem:[#allocation7_spill] sm:$0xff] }
  0x7d   : > { %4822 = vmatmul.mubr.bf16.gmra.mxu0 %v6011_v15  ;;  %v6823_v60 = vld [vmem:[#allocation9_spill] sm:$0xff] }
  0x7e   : > { %4825 = vmatprep.mubr.bf16.mxu0 %v6014_v38 }
  0x7f   : > { %4852 = vmatpush3.bf16.msra.mxu1 %v5220_v3  ;;  %v6817_v3 = vld [vmem:[#allocation10_spill] sm:$0xff] }
  0x80   : > { %4933 = vmatprep.subr.bf16.mxu1 %v5222_v49 }
  0x82   : > { %4774 = vmatmul.mubr.bf16.gmra.mxu1 %v6022_v48 }
  0x83   : > { %4777 = vmatprep.mubr.bf16.mxu1 %v6025_v61 }
  0x85   : > { %4826 = vmatmul.mubr.bf16.gmra.mxu0 %v5916_v31 }
  0x86   : > { %4829 = vmatprep.mubr.bf16.mxu0 %v5938_v19 }
  0x8a   : > { %4778 = vmatmul.mubr.bf16.gmra.mxu1 %v5877_v24 }
  0x8b   : > { %4781 = vmatprep.mubr.bf16.mxu1 %v5893_v21 }
  0x8d   : > { %4830 = vmatmul.mubr.bf16.gmra.mxu0 %v5958_v13 }
  0x8e   : > { %4833 = vmatprep.mubr.bf16.mxu0 %v5968_v37 }
  0x92   : > { %4782 = vmatmul.mubr.bf16.gmra.mxu1 %v5912_v1 }
  0x93   : > { %4785 = vmatprep.mubr.bf16.mxu1 %v5927_v16 }
  0x95   : > { %4834 = vmatmul.mubr.bf16.gmra.mxu0 %v6042_v59 }
  0x96   : > { %4901 = vmatprep.mubr.bf16.mxu0 %v6814_v43  ;;  %v5239_v43 = vld [vmem:[%s6758_s3 + $0x1f8] sm:$0xff]  }
  0x9a   : > { %4786 = vmatmul.mubr.bf16.gmra.mxu1 %v5944_v5 }
  0x9b   : > { %4853 = vmatprep.mubr.bf16.mxu1 %v5742_v52  ;;  %v5229_v52 = vld [vmem:[%s6758_s3 + $0x1a0] sm:$0xff]  }
  0x9d   : > { %4902 = vmatmul.mubr.bf16.vlgmr.msra.gmra.mxu0 %v6815_v63 }
  0x9e   : > { %4982 = vmatpush3.bf16.msra.mxu0 %v5223_v11  ;;  %4905 = vmatprep.mubr.bf16.mxu0 %v6816_v47  ;;  %v5231_v11 = vld [vmem:[%s6758_s3 + $0x198] sm:$0xff]  }
  0x9f   : > { %4983 = vmatprep.subr.bf16.mxu0 %v5225_v4 }
  0xa2   : > { %4854 = vmatmul.mubr.bf16.vlgmr.msra.gmra.mxu1 %v5807_v6  ;;  %4984 = vmatpush3.bf16.msra.mxu0 %v5225_v4  ;;  %v2204_v4 = vshrl.u32 %v6051_v27, 16 }
  0xa3   : > { %4934 = vmatpush3.bf16.msra.mxu1 %v5222_v49  ;;  %4857 = vmatprep.mubr.bf16.mxu1 %v5760_v25  ;;  %v5233_v49 = vld [vmem:[%s6758_s3 + $0x190] sm:$0xff]  }
  0xa4   : > { %4935 = vmatprep.subr.bf16.mxu1 %v5224_v22  ;;  %4985 = vmatprep.subr.bf16.mxu0 %v5227_v45 }
  0xa5   : > { %4906 = vmatmul.mubr.bf16.gmra.mxu0 %v6817_v3 }
  0xa6   : > { %4909 = vmatprep.mubr.bf16.mxu0 %v6818_v56  ;;  %4986 = vmatpush3.bf16.msra.mxu0 %v5227_v45  ;;  %v2217_v45 = vshrl.u32 %v6046_v40, 16 }
  0xa7   : > { %4936 = vmatpush3.bf16.msra.mxu1 %v5224_v22  ;;  %4987 = vmatprep.subr.bf16.mxu0 %v5229_v52  ;;  %v2207_v22 = vshll.u32 %v6051_v27, 16 }
  0xa8   : > { %4937 = vmatprep.subr.bf16.mxu1 %v5226_v8 }
  0xaa   : > { %4858 = vmatmul.mubr.bf16.gmra.mxu1 %v5835_v33  ;;  %4988 = vmatpush3.bf16.msra.mxu0 %v5229_v52  ;;  %v2213_v52 = vshll.u32 %v6046_v40, 16 }
  0xab   : > { %4861 = vmatprep.mubr.bf16.mxu1 %v5843_v0  ;;  %4938 = vmatpush3.bf16.msra.mxu1 %v5226_v8  ;;  %v2206_v8 = vrot.slane %v2204_v4, 4 }
  0xac   : > { %4939 = vmatprep.subr.bf16.mxu1 %v5228_v58  ;;  %4989 = vmatprep.subr.bf16.mxu0 %v5231_v11 }
  0xad   : > { %4910 = vmatmul.mubr.bf16.gmra.mxu0 %v6819_v7 }
  0xae   : > { %4913 = vmatprep.mubr.bf16.mxu0 %v5750_v29  ;;  %4990 = vmatpush3.bf16.msra.mxu0 %v5231_v11  ;;  %v2215_v11 = vrot.slane %v2213_v52, 5 }
  0xaf   : > { %4940 = vmatpush3.bf16.msra.mxu1 %v5228_v58  ;;  %4991 = vmatprep.subr.bf16.mxu0 %v5233_v49  ;;  %v2209_v58 = vrot.slane %v2207_v22, 5 }
  0xb0   : > { %4941 = vmatprep.subr.bf16.mxu1 %v5230_v51 }
  0xb2   : > { %4862 = vmatmul.mubr.bf16.gmra.mxu1 %v5861_v42  ;;  %4992 = vmatpush3.bf16.msra.mxu0 %v5233_v49  ;;  %v2219_v49 = vrot.slane %v2217_v45, 4 }
  0xb3   : > { %4865 = vmatprep.mubr.bf16.mxu1 %v5988_v34  ;;  %4942 = vmatpush3.bf16.msra.mxu1 %v5230_v51  ;;  %v6824_v51 = vld [vmem:[#allocation11_spill] sm:$0xff] }
  0xb4   : > { %4943 = vmatprep.subr.bf16.mxu1 %v5232_v23  ;;  %4993 = vmatprep.subr.bf16.mxu0 %v5235_v10 }
  0xb5   : > { %4914 = vmatmul.mubr.bf16.gmra.mxu0 %v6820_v57 }
  0xb6   : > { %4917 = vmatprep.mubr.bf16.mxu0 %v6821_v2  ;;  %4994 = vmatpush3.bf16.msra.mxu0 %v5235_v10  ;;  %v2210_v10 = vor.u32 %v2209_v58, %v2206_v8  ;;  %v5249_v8 = vld [vmem:[%s6758_s3 + $0x1d0] sm:$0xff]   ;;  %v5252_v58 = vld [vmem:[%s6758_s3 + $0x208] sm:$0xff]  }
  0xb7   : > { %4944 = vmatpush3.bf16.msra.mxu1 %v5232_v23  ;;  %4995 = vmatprep.subr.bf16.mxu0 %v5238_v17  ;;  %v6825_v23 = vld [vmem:[#allocation14_spill] sm:$0xff] }
  0xb8   : > { %4945 = vmatprep.subr.bf16.mxu1 %v5234_v20 }
  0xba   : > { %4866 = vmatmul.mubr.bf16.gmra.mxu1 %v6002_v53  ;;  %4996 = vmatpush3.bf16.msra.mxu0 %v5238_v17  ;;  %v2220_v17 = vor.u32 %v2219_v49, %v2215_v11  ;;  %v5251_v49 = vld [vmem:[%s6758_s3 + $0x1c8] sm:$0xff]  }
  0xbb   : > { %4869 = vmatprep.mubr.bf16.mxu1 %v6022_v48  ;;  %4946 = vmatpush3.bf16.msra.mxu1 %v5234_v20  ;;  %v2223_v20 = vshll.u32 %v6054_v18, 16  ;;  %v6158_v18 = vcombine.low %v6051_v27, %v6046_v40  ;;  %v5248_v40 = vld [vmem:[%s6758_s3 + $0x218] sm:$0xff]  }
  0xbc   : > { %4947 = vmatprep.subr.bf16.mxu1 %v5237_v55  ;;  %5077 = vmatprep.subr.bf16.mxu0 %v5240_v14  ;;  %v2221_v41 = vrot.slane %v2220_v17, 4 }
  0xbd   : > { %4918 = vmatmul.mubr.bf16.gmra.mxu0 %v6822_v35 }
  0xbe   : > { %4921 = vmatprep.mubr.bf16.mxu0 %v6823_v60  ;;  %v2225_v60 = vrot.slane %v2223_v20, 5  ;;  %v5253_v20 = vld [vmem:[%s6758_s3 + $0x1c0] sm:$0xff]  }
  0xbf   : > { %4948 = vmatpush3.bf16.msra.mxu1 %v5237_v55  ;;  %v2211_v55 = vrot.slane %v2210_v10, 4 }
  0xc0   : > { %5029 = vmatprep.subr.bf16.mxu1 %v5239_v43  ;;  %v2226_v22 = vsel %vm5357_vm3, %v2221_v41, %v2225_v60  ;;  %v5241_v41 = vld [vmem:[%s6758_s3 + $0x1f0] sm:$0xff]  }
  0xc1   : > { %v2216_v4 = vsel %vm5357_vm3, %v2211_v55, %v2215_v11 }
  0xc2   : > { %4870 = vmatmul.mubr.bf16.gmra.mxu1 %v6025_v61  ;;  %v6151_v45 = vcombine.low %v2216_v4, %v2226_v22 }
  0xc3   : > { %4873 = vmatprep.mubr.bf16.mxu1 %v5877_v24 }
  0xc5   : > { %4922 = vmatmul.mubr.bf16.gmra.mxu0 %v6824_v51 }
  0xc6   : > { %4925 = vmatprep.mubr.bf16.mxu0 %v6825_v23 }
  0xca   : > { %4874 = vmatmul.mubr.bf16.gmra.mxu1 %v5893_v21 }
  0xcb   : > { %4877 = vmatprep.mubr.bf16.mxu1 %v5912_v1 }
  0xcd   : > { %4926 = vmatmul.mubr.bf16.gmra.mxu0 %v5727_v46 }
  0xce   : > { %4929 = vmatprep.mubr.bf16.mxu0 %v5776_v32 }
  0xd2   : > { %4878 = vmatmul.mubr.bf16.gmra.mxu1 %v5927_v16 }
  0xd3   : > { %4881 = vmatprep.mubr.bf16.mxu1 %v5944_v5 }
  0xd5   : > { %4930 = vmatmul.mubr.bf16.gmra.mxu0 %v6151_v45 }
  0xd6   : > { %4997 = vmatprep.mubr.bf16.mxu0 %v5807_v6  ;;  %v5244_v6 = vld [vmem:[%s6758_s3 + $0x228] sm:$0xff]  }
  0xda   : > { %4882 = vmatmul.mubr.bf16.gmra.mxu1 %v6158_v18 }
  0xdb   : > { %4949 = vmatprep.mubr.bf16.mxu1 %v5781_v28  ;;  %v5243_v28 = vld [vmem:[%s6758_s3 + $0x1e8] sm:$0xff]  }
  0xdd   : > { %4998 = vmatmul.mubr.bf16.vlgmr.msra.gmra.mxu0 %v5760_v25  ;;  %v5246_v25 = vld [vmem:[%s6758_s3 + $0x220] sm:$0xff]  }
  0xde   : > { %5078 = vmatpush3.bf16.msra.mxu0 %v5240_v14  ;;  %5001 = vmatprep.mubr.bf16.mxu0 %v5835_v33  ;;  %v5245_v33 = vld [vmem:[%s6758_s3 + $0x1e0] sm:$0xff]   ;;  %v5247_v14 = vld [vmem:[%s6758_s3 + $0x1d8] sm:$0xff]  }
  0xdf   : > { %5079 = vmatprep.subr.bf16.mxu0 %v5242_v9 }
  0xe2   : > { %4950 = vmatmul.mubr.bf16.vlgmr.msra.gmra.mxu1 %v5786_v44  ;;  %5080 = vmatpush3.bf16.msra.mxu0 %v5242_v9 }
  0xe3   : > { %5030 = vmatpush3.bf16.msra.mxu1 %v5239_v43  ;;  %4953 = vmatprep.mubr.bf16.mxu1 %v5821_v12 }
  0xe4   : > { %5031 = vmatprep.subr.bf16.mxu1 %v5241_v41  ;;  %5081 = vmatprep.subr.bf16.mxu0 %v5244_v6 }
  0xe5   : > { %5002 = vmatmul.mubr.bf16.gmra.mxu0 %v5843_v0 }
  0xe6   : > { %5005 = vmatprep.mubr.bf16.mxu0 %v5861_v42  ;;  %5082 = vmatpush3.bf16.msra.mxu0 %v5244_v6  ;;  %v5250_v42 = vld [vmem:[%s6758_s3 + $0x210] sm:$0xff]  }
  0xe7   : > { %5032 = vmatpush3.bf16.msra.mxu1 %v5241_v41  ;;  %5083 = vmatprep.subr.bf16.mxu0 %v5246_v25 }
  0xe8   : > { %5033 = vmatprep.subr.bf16.mxu1 %v5243_v28 }
  0xea   : > { %4954 = vmatmul.mubr.bf16.gmra.mxu1 %v5825_v39  ;;  %5084 = vmatpush3.bf16.msra.mxu0 %v5246_v25 }
  0xeb   : > { %4957 = vmatprep.mubr.bf16.mxu1 %v5857_v54  ;;  %5034 = vmatpush3.bf16.msra.mxu1 %v5243_v28 }
  0xec   : > { %5035 = vmatprep.subr.bf16.mxu1 %v5245_v33  ;;  %5085 = vmatprep.subr.bf16.mxu0 %v5248_v40 }
  0xed   : > { %v6191_v27 = vpop.f32.mrf.mxu0  ;;  %v6193_v0 = vpop.f32.mrf.mxu1  ;;  %5006 = vmatmul.mubr.bf16.gmra.mxu0 %v5988_v34 }
  0xee   : > { %5009 = vmatprep.mubr.bf16.mxu0 %v6002_v53  ;;  %5086 = vmatpush3.bf16.msra.mxu0 %v5248_v40  ;;  %v5254_v53 = vld [vmem:[%s6758_s3 + $0x200] sm:$0xff]  }
  0xef   : > { %v6202_v43 = vpop.f32.mrf.mxu0  ;;  %v6206_v60 = vpop.f32.mrf.mxu1  ;;  %5036 = vmatpush3.bf16.msra.mxu1 %v5245_v33  ;;  %5087 = vmatprep.subr.bf16.mxu0 %v5250_v42 }
  0xf0   : > { %5037 = vmatprep.subr.bf16.mxu1 %v5247_v14 }
  0xf1   : > { %v6208_v52 = vpop.f32.mrf.mxu0  ;;  %v6219_v34 = vpop.f32.mrf.mxu1 }
  0xf2   : > { %4958 = vmatmul.mubr.bf16.gmra.mxu1 %v5881_v30  ;;  %5088 = vmatpush3.bf16.msra.mxu0 %v5250_v42 }
  0xf3   : > { %v6216_v11 = vpop.f32.mrf.mxu0  ;;  %4961 = vmatprep.mubr.bf16.mxu1 %v5965_v26  ;;  %5038 = vmatpush3.bf16.msra.mxu1 %v5247_v14  ;;  %v6232_v17 = vpop.f32.mrf.mxu1 }
  0xf4   : > { %5039 = vmatprep.subr.bf16.mxu1 %v5249_v8  ;;  %5089 = vmatprep.subr.bf16.mxu0 %v5252_v58 }
  0xf5   : > { %5010 = vmatmul.mubr.bf16.gmra.mxu0 %v6022_v48  ;;  %v6229_v10 = vpop.f32.mrf.mxu0 }
  0xf6   : > { %5013 = vmatprep.mubr.bf16.mxu0 %v6025_v61  ;;  %5090 = vmatpush3.bf16.msra.mxu0 %v5252_v58 }
  0xf7   : > { %5040 = vmatpush3.bf16.msra.mxu1 %v5249_v8  ;;  %5091 = vmatprep.subr.bf16.mxu0 %v5254_v53  ;;  %v6237_v55 = vpop.f32.mrf.mxu0 }
  0xf8   : > { %5041 = vmatprep.subr.bf16.mxu1 %v5251_v49  ;;  %v6240_v4 = vpop.f32.mrf.mxu1 }
  0xf9   : > { %v6244_v48 = vpop.f32.mrf.mxu0 }
  0xfa   : > { %4962 = vmatmul.mubr.bf16.gmra.mxu1 %v5971_v36  ;;  %5092 = vmatpush3.bf16.msra.mxu0 %v5254_v53  ;;  %v6247_v61 = vpop.f32.mrf.mxu1 }
  0xfb   : > { %4965 = vmatprep.mubr.bf16.mxu1 %v6011_v15  ;;  %5042 = vmatpush3.bf16.msra.mxu1 %v5251_v49  ;;  %v6249_v22 = vpop.f32.mrf.mxu0 }
  0xfc   : > { %5043 = vmatprep.subr.bf16.mxu1 %v5253_v20  ;;  %v6252_v9 = vpop.f32.mrf.mxu1 }
  0xfd   : > { %5014 = vmatmul.mubr.bf16.gmra.mxu0 %v5877_v24 }
  0xfe   : > { %5017 = vmatprep.mubr.bf16.mxu0 %v5893_v21  ;;  %v6258_v24 = vpop.f32.mrf.mxu1 }
  0xff   : > { %5044 = vmatpush3.bf16.msra.mxu1 %v5253_v20 }
 0x102   : > { %4966 = vmatmul.mubr.bf16.gmra.mxu1 %v6014_v38 }
 0x103   : > { %4969 = vmatprep.mubr.bf16.mxu1 %v5916_v31 }
 0x105   : > { %5018 = vmatmul.mubr.bf16.gmra.mxu0 %v5912_v1  ;;  %v6256_v41 = vpop.f32.mrf.mxu0 }
 0x106   : > { %5021 = vmatprep.mubr.bf16.mxu0 %v5927_v16 }
 0x107   : > { %v6261_v21 = vpop.f32.mrf.mxu0 }
 0x108   : > { %v6264_v6 = vpop.f32.mrf.mxu1 }
 0x109   : > { %v6268_v25 = vpop.f32.mrf.mxu0 }
 0x10a   : > { %4970 = vmatmul.mubr.bf16.gmra.mxu1 %v5938_v19  ;;  %v6270_v28 = vpop.f32.mrf.mxu1 }
 0x10b   : > { %4973 = vmatprep.mubr.bf16.mxu1 %v5958_v13  ;;  %v6273_v1 = vpop.f32.mrf.mxu0 }
 0x10c   : > { %v6276_v16 = vpop.f32.mrf.mxu1 }
 0x10d   : > { %5022 = vmatmul.mubr.bf16.gmra.mxu0 %v5944_v5  ;;  %6826 = vst [vmem:[#allocation12_spill] sm:$0xff] %v6276_v16 }
 0x10e   : > { %5025 = vmatprep.mubr.bf16.mxu0 %v6158_v18  ;;  %v6282_v40 = vpop.f32.mrf.mxu1 }
 0x10f   : > { %6827 = vst [vmem:[#allocation15_spill] sm:$0xff] %v6282_v40 }
 0x112   : > { %4974 = vmatmul.mubr.bf16.gmra.mxu1 %v5968_v37 }
 0x113   : > { %4977 = vmatprep.mubr.bf16.mxu1 %v6042_v59 }
 0x115   : > { %v6279_v33 = vpop.f32.mrf.mxu0  ;;  %5026 = vmatmul.mubr.bf16.gmra.mxu0 %v5771_v50 }
 0x116   : > { %5093 = vmatprep.mubr.bf16.mxu0 %v5786_v44 }
 0x117   : > { %v6285_v5 = vpop.f32.mrf.mxu0 }
 0x119   : > { %v6287_v42 = vpop.f32.mrf.mxu0 }
 0x11a   : > { %v6289_v18 = vpop.f32.mrf.mxu1  ;;  %4978 = vmatmul.mubr.bf16.gmra.mxu1 %v6064_v62 }
 0x11b   : > { %6828 = vst [vmem:[#allocation4_spill] sm:$0xff] %v6289_v18  ;;  %v6292_v14 = vpop.f32.mrf.mxu0  ;;  %5045 = vmatprep.mubr.bf16.mxu1 %v6815_v63 }
 0x11c   : > { %v6295_v8 = vpop.f32.mrf.mxu1 }
 0x11d   : > { %6829 = vst [vmem:[#allocation6_spill] sm:$0xff] %v6295_v8  ;;  %v4807_v58 = vpop.f32.mrf.mxu0  ;;  %5094 = vmatmul.mubr.bf16.vlgmr.msra.gmra.mxu0 %v5821_v12 }
 0x11e   : > { %v6298_v50 = vpop.f32.mrf.mxu1  ;;  %5097 = vmatprep.mubr.bf16.mxu0 %v5825_v39 }
 0x11f   : > { %6830 = vst [vmem:[#allocation8_spill] sm:$0xff] %v6298_v50  ;;  %v1780_v44 = vpop.f32.mrf.mxu0 }
 0x120   : > { %v6301_v53 = vpop.f32.mrf.mxu1 }
 0x121   : > { %6831 = vst [vmem:[#allocation10_spill] sm:$0xff] %v6301_v53  ;;  %v4808_v49 = vpop.f32.mrf.mxu0 }
 0x122   : > { %v4759_v20 = vpop.f32.mrf.mxu1  ;;  %5046 = vmatmul.mubr.bf16.vlgmr.msra.gmra.mxu1 %v6816_v47 }
 0x123   : > { %v1368_v18 = vadd.f32 %v4759_v20, %v6191_v27  ;;  %v1783_v40 = vpop.f32.mrf.mxu0  ;;  %5049 = vmatprep.mubr.bf16.mxu1 %v6817_v3 }
 0x124   : > { %v1359_v63 = vpop.f32.mrf.mxu1 }
 0x125   : > { %v6306_v8 = vadd.f32 %v4807_v58, %v1368_v18  ;;  %v1360_v12 = vadd.f32 %v1359_v63, %v6202_v43  ;;  %v4811_v50 = vpop.f32.mrf.mxu0  ;;  %5098 = vmatmul.mubr.bf16.gmra.mxu0 %v5857_v54 }
 0x126   : > { %v4760_v39 = vpop.f32.mrf.mxu1  ;;  %5101 = vmatprep.mubr.bf16.mxu0 %v5881_v30 }
 0x127   : > { %v6311_v53 = vadd.f32 %v1780_v44, %v1360_v12  ;;  %v1371_v47 = vadd.f32 %v4760_v39, %v6208_v52  ;;  %v1796_v16 = vpop.f32.mrf.mxu0 }
 0x128   : > { %v1362_v27 = vpop.f32.mrf.mxu1 }
 0x129   : > { %v6314_v20 = vadd.f32 %v4808_v49, %v1371_v47  ;;  %v1363_v3 = vadd.f32 %v1362_v27, %v6216_v11  ;;  %v4812_v18 = vpop.f32.mrf.mxu0 }
 0x12a   : > { %v4763_v58 = vpop.f32.mrf.mxu1  ;;  %5050 = vmatmul.mubr.bf16.gmra.mxu1 %v6818_v56 }
 0x12b   : > { %v6318_v43 = vadd.f32 %v1783_v40, %v1363_v3  ;;  %v1384_v54 = vadd.f32 %v4763_v58, %v6229_v10  ;;  %v1799_v63 = vpop.f32.mrf.mxu0  ;;  %5053 = vmatprep.mubr.bf16.mxu1 %v6819_v7 }
 0x12c   : > { %v1375_v30 = vpop.f32.mrf.mxu1 }
 0x12d   : > { %v6322_v44 = vadd.f32 %v4811_v50, %v1384_v54  ;;  %v1376_v52 = vadd.f32 %v1375_v30, %v6237_v55  ;;  %v4815_v49 = vpop.f32.mrf.mxu0  ;;  %5102 = vmatmul.mubr.bf16.gmra.mxu0 %v5965_v26 }
 0x12e   : > { %v4764_v11 = vpop.f32.mrf.mxu1  ;;  %5105 = vmatprep.mubr.bf16.mxu0 %v5971_v36 }
 0x12f   : > { %v6327_v12 = vadd.f32 %v1796_v16, %v1376_v52  ;;  %v1387_v56 = vadd.f32 %v4764_v11, %v6244_v48  ;;  %v1812_v40 = vpop.f32.mrf.mxu0 }
 0x130   : > { %v1378_v10 = vpop.f32.mrf.mxu1 }
 0x131   : > { %v6330_v39 = vadd.f32 %v4812_v18, %v1387_v56  ;;  %v1379_v7 = vadd.f32 %v1378_v10, %v6249_v22  ;;  %v4816_v50 = vpop.f32.mrf.mxu0 }
 0x132   : > { %v4767_v47 = vpop.f32.mrf.mxu1  ;;  %5054 = vmatmul.mubr.bf16.gmra.mxu1 %v5750_v29 }
 0x133   : > { %v6334_v55 = vadd.f32 %v1799_v63, %v1379_v7  ;;  %v1400_v26 = vadd.f32 %v4767_v47, %v6256_v41  ;;  %v1815_v27 = vpop.f32.mrf.mxu0  ;;  %5057 = vmatprep.mubr.bf16.mxu1 %v6820_v57  ;;  %v6832_v47 = vld [vmem:[#allocation9_spill] sm:$0xff] }
 0x134   : > { %v1391_v36 = vpop.f32.mrf.mxu1 }
 0x135   : > { %v6338_v16 = vadd.f32 %v4815_v49, %v1400_v26  ;;  %v1392_v48 = vadd.f32 %v1391_v36, %v6261_v21  ;;  %v4819_v3 = vpop.f32.mrf.mxu0  ;;  %5106 = vmatmul.mubr.bf16.gmra.mxu0 %v6011_v15 }
 0x136   : > { %v4768_v22 = vpop.f32.mrf.mxu1  ;;  %5109 = vmatprep.mubr.bf16.mxu0 %v6014_v38 }
 0x137   : > { %v6343_v18 = vadd.f32 %v1812_v40, %v1392_v48  ;;  %v1403_v29 = vadd.f32 %v4768_v22, %v6268_v25  ;;  %v1828_v58 = vpop.f32.mrf.mxu0 }
 0x138   : > { %v1394_v41 = vpop.f32.mrf.mxu1 }
 0x139   : > { %v6346_v54 = vadd.f32 %v4816_v50, %v1403_v29  ;;  %v1395_v57 = vadd.f32 %v1394_v41, %v6273_v1  ;;  %v4820_v63 = vpop.f32.mrf.mxu0 }
 0x13a   : > { %v4771_v30 = vpop.f32.mrf.mxu1  ;;  %5058 = vmatmul.mubr.bf16.gmra.mxu1 %v6821_v2 }
 0x13b   : > { %v6350_v21 = vadd.f32 %v1815_v27, %v1395_v57  ;;  %v1416_v15 = vadd.f32 %v4771_v30, %v6279_v33  ;;  %v1831_v52 = vpop.f32.mrf.mxu0  ;;  %5061 = vmatprep.mubr.bf16.mxu1 %v6822_v35 }
 0x13c   : > { %v1407_v38 = vpop.f32.mrf.mxu1 }
 0x13d   : > { %v6354_v49 = vadd.f32 %v4819_v3, %v1416_v15  ;;  %v1408_v25 = vadd.f32 %v1407_v38, %v6285_v5  ;;  %v4823_v11 = vpop.f32.mrf.mxu0  ;;  %5110 = vmatmul.mubr.bf16.gmra.mxu0 %v5916_v31 }
 0x13e   : > { %v4772_v1 = vpop.f32.mrf.mxu1  ;;  %5113 = vmatprep.mubr.bf16.mxu0 %v5938_v19 }
 0x13f   : > { %v6359_v56 = vadd.f32 %v1828_v58, %v1408_v25  ;;  %v1419_v2 = vadd.f32 %v4772_v1, %v6287_v42  ;;  %v1844_v40 = vpop.f32.mrf.mxu0 }
 0x140   : > { %v1410_v33 = vpop.f32.mrf.mxu1 }
 0x141   : > { %v6362_v10 = vadd.f32 %v4820_v63, %v1419_v2  ;;  %v1411_v35 = vadd.f32 %v1410_v33, %v6292_v14  ;;  %v4824_v7 = vpop.f32.mrf.mxu0  ;;  %v6833_v33 = vld [vmem:[#allocation17_spill] sm:$0xff] }
 0x142   : > { %v4775_v50 = vpop.f32.mrf.mxu1  ;;  %5062 = vmatmul.mubr.bf16.gmra.mxu1 %v6832_v47 }
 0x143   : > { %v6366_v5 = vadd.f32 %v1831_v52, %v1411_v35  ;;  %v1432_v31 = vadd.f32 %v4775_v50, %v6193_v0  ;;  %v1847_v26 = vpop.f32.mrf.mxu0  ;;  %5065 = vmatprep.mubr.bf16.mxu1 %v6824_v51 }
 0x144   : > { %v1423_v19 = vpop.f32.mrf.mxu1 }
 0x145   : > { %v6370_v27 = vadd.f32 %v4823_v11, %v1432_v31  ;;  %v1424_v42 = vadd.f32 %v1423_v19, %v6206_v60  ;;  %v4827_v36 = vpop.f32.mrf.mxu0  ;;  %5114 = vmatmul.mubr.bf16.gmra.mxu0 %v5958_v13 }
 0x146   : > { %v4776_v14 = vpop.f32.mrf.mxu1  ;;  %5117 = vmatprep.mubr.bf16.mxu0 %v5968_v37 }
 0x147   : > { %v6375_v48 = vadd.f32 %v1844_v40, %v1424_v42  ;;  %v1435_v3 = vadd.f32 %v4776_v14, %v6219_v34  ;;  %v1860_v22 = vpop.f32.mrf.mxu0  ;;  %v6836_v42 = vld [vmem:[#allocation2_spill] sm:$0xff] }
 0x148   : > { %v1426_v0 = vpop.f32.mrf.mxu1 }
 0x149   : > { %v6378_v29 = vadd.f32 %v4824_v7, %v1435_v3  ;;  %v1427_v51 = vadd.f32 %v1426_v0, %v6232_v17  ;;  %v4828_v58 = vpop.f32.mrf.mxu0  ;;  %v6834_v7 = vld [vmem:[#allocation12_spill] sm:$0xff] }
 0x14a   : > { %v4779_v41 = vpop.f32.mrf.mxu1  ;;  %5066 = vmatmul.mubr.bf16.gmra.mxu1 %v6825_v23 }
 0x14b   : > { %v6382_v60 = vadd.f32 %v1847_v26, %v1427_v51  ;;  %v1448_v13 = vadd.f32 %v4779_v41, %v6240_v4  ;;  %v1863_v57 = vpop.f32.mrf.mxu0  ;;  %5069 = vmatprep.mubr.bf16.mxu1 %v5727_v46  ;;  %v6838_v51 = vld [vmem:[#allocation6_spill] sm:$0xff] }
 0x14c   : > { %v1439_v37 = vpop.f32.mrf.mxu1 }
 0x14d   : > { %v6386_v63 = vadd.f32 %v4827_v36, %v1448_v13  ;;  %v1440_v34 = vadd.f32 %v1439_v37, %v6247_v61  ;;  %v4831_v30 = vpop.f32.mrf.mxu0  ;;  %5118 = vmatmul.mubr.bf16.gmra.mxu0 %v6042_v59  ;;  %v6839_v37 = vld [vmem:[#allocation8_spill] sm:$0xff] }
 0x14e   : > { %v4780_v17 = vpop.f32.mrf.mxu1  ;;  %5121 = vmatprep.mubr.bf16.mxu0 %v6064_v62 }
 0x14f   : > { %v6391_v15 = vadd.f32 %v1860_v22, %v1440_v34  ;;  %v1451_v23 = vadd.f32 %v4780_v17, %v6252_v9  ;;  %v1876_v52 = vpop.f32.mrf.mxu0 }
 0x150   : > { %v1442_v4 = vpop.f32.mrf.mxu1 }
 0x151   : > { %v6394_v38 = vadd.f32 %v4828_v58, %v1451_v23  ;;  %v1443_v46 = vadd.f32 %v1442_v4, %v6258_v24  ;;  %v4832_v25 = vpop.f32.mrf.mxu0 }
 0x152   : > { %v4783_v11 = vpop.f32.mrf.mxu1  ;;  %5070 = vmatmul.mubr.bf16.gmra.mxu1 %v5776_v32 }
 0x153   : > { %v6398_v61 = vadd.f32 %v1863_v57, %v1443_v46  ;;  %v1464_v59 = vadd.f32 %v4783_v11, %v6264_v6  ;;  %v1879_v1 = vpop.f32.mrf.mxu0  ;;  %5073 = vmatprep.mubr.bf16.mxu1 %v6151_v45  ;;  %v6835_v6 = vld [vmem:[#allocation15_spill] sm:$0xff] }
 0x154   : > { %v1455_v62 = vpop.f32.mrf.mxu1 }
 0x155   : > { %v6402_v2 = vadd.f32 %v4831_v30, %v1464_v59  ;;  %v1456_v9 = vadd.f32 %v1455_v62, %v6270_v28  ;;  %v4835_v40 = vpop.f32.mrf.mxu0  ;;  %5122 = vmatmul.mubr.bf16.gmra.mxu0 %v6833_v33  ;;  %v6837_v28 = vld [vmem:[#allocation4_spill] sm:$0xff] }
 0x156   : > { %v4784_v24 = vpop.f32.mrf.mxu1 }
 0x157   : > { %v6406_v35 = vadd.f32 %v1876_v52, %v1456_v9  ;;  %v1467_v32 = vadd.f32 %v4784_v24, %v6834_v7  ;;  %v1892_v50 = vpop.f32.mrf.mxu0  ;;  %v6840_v52 = vld [vmem:[#allocation10_spill] sm:$0xff] }
 0x158   : > { %v1458_v47 = vpop.f32.mrf.mxu1 }
 0x159   : > { %v6409_v31 = vadd.f32 %v4832_v25, %v1467_v32  ;;  %v1459_v26 = vadd.f32 %v1458_v47, %v6835_v6  ;;  %v4836_v45 = vpop.f32.mrf.mxu0 }
 0x15a   : > { %v4787_v19 = vpop.f32.mrf.mxu1  ;;  %5074 = vmatmul.mubr.bf16.gmra.mxu1 %v6836_v42 }
 0x15b   : > { %v6413_v36 = vadd.f32 %v1879_v1, %v1459_v26  ;;  %v1480_v14 = vadd.f32 %v4787_v19, %v6837_v28  ;;  %v1895_v3 = vpop.f32.mrf.mxu0 }
 0x15c   : > { %v1471_v22 = vpop.f32.mrf.mxu1 }
 0x15d   : > { %v6416_v0 = vadd.f32 %v4835_v40, %v1480_v14  ;;  %v1472_v58 = vadd.f32 %v1471_v22, %v6838_v51  ;;  %v4903_v41 = vpop.f32.mrf.mxu0 }
 0x15e   : > { %v4788_v13 = vpop.f32.mrf.mxu1 }
 0x15f   : > { %v6419_v57 = vadd.f32 %v1892_v50, %v1472_v58  ;;  %v1483_v34 = vadd.f32 %v4788_v13, %v6839_v37  ;;  %v2330_v30 = vpop.f32.mrf.mxu0 }
 0x160   : > { %v1474_v17 = vpop.f32.mrf.mxu1 }
 0x161   : > { %v6422_v23 = vadd.f32 %v4836_v45, %v1483_v34  ;;  %v1475_v4 = vadd.f32 %v1474_v17, %v6840_v52  ;;  %v4904_v46 = vpop.f32.mrf.mxu0 }
 0x162   : > { %v4855_v25 = vpop.f32.mrf.mxu1 }
 0x163   : > { %v6425_v11 = vadd.f32 %v1895_v3, %v1475_v4  ;;  %v2173_v59 = vadd.f32 %v4855_v25, %v6306_v8  ;;  %v2333_v1 = vpop.f32.mrf.mxu0 }
 0x164   : > { %v2044_v62 = vpop.f32.mrf.mxu1 }
 0x165   : > { %v6428_v9 = vadd.f32 %v4903_v41, %v2173_v59  ;;  %v2171_v40 = vadd.f32 %v2044_v62, %v6311_v53  ;;  %v4907_v33 = vpop.f32.mrf.mxu0 }
 0x166   : > { %v4856_v24 = vpop.f32.mrf.mxu1 }
 0x167   : > { %v6431_v7 = vadd.f32 %v2330_v30, %v2171_v40  ;;  %v2174_v32 = vadd.f32 %v4856_v24, %v6314_v20  ;;  %v2346_v50 = vpop.f32.mrf.mxu0 }
 0x168   : > { %v2047_v47 = vpop.f32.mrf.mxu1 }
 0x169   : > { %v6434_v6 = vadd.f32 %v4904_v46, %v2174_v32  ;;  %v2172_v26 = vadd.f32 %v2047_v47, %v6318_v43  ;;  %v4908_v45 = vpop.f32.mrf.mxu0 }
 0x16a   : > { %v4859_v8 = vpop.f32.mrf.mxu1 }
 0x16b   : > { %v6437_v19 = vadd.f32 %v2333_v1, %v2172_v26  ;;  %v2177_v42 = vadd.f32 %v4859_v8, %v6322_v44  ;;  %v2349_v28 = vpop.f32.mrf.mxu0 }
 0x16c   : > { %v2060_v53 = vpop.f32.mrf.mxu1 }
 0x16d   : > { %v6440_v14 = vadd.f32 %v4907_v33, %v2177_v42  ;;  %v2175_v3 = vadd.f32 %v2060_v53, %v6327_v12  ;;  %v4911_v22 = vpop.f32.mrf.mxu0 }
 0x16e   : > { %v4860_v20 = vpop.f32.mrf.mxu1 }
 0x16f   : > { %v6443_v51 = vadd.f32 %v2346_v50, %v2175_v3  ;;  %v2178_v58 = vadd.f32 %v4860_v20, %v6330_v39  ;;  %v2362_v41 = vpop.f32.mrf.mxu0 }
 0x170   : > { %v2063_v43 = vpop.f32.mrf.mxu1 }
 0x171   : > { %v6446_v13 = vadd.f32 %v4908_v45, %v2178_v58  ;;  %v2176_v37 = vadd.f32 %v2063_v43, %v6334_v55  ;;  %v4912_v34 = vpop.f32.mrf.mxu0 }
 0x172   : > { %v4863_v44 = vpop.f32.mrf.mxu1 }
 0x173   : > { %v6449_v30 = vadd.f32 %v2349_v28, %v2176_v37  ;;  %v2181_v17 = vadd.f32 %v4863_v44, %v6338_v16  ;;  %v2365_v52 = vpop.f32.mrf.mxu0 }
 0x174   : > { %v2076_v12 = vpop.f32.mrf.mxu1 }
 0x175   : > { %v6452_v4 = vadd.f32 %v4911_v22, %v2181_v17  ;;  %v2179_v46 = vadd.f32 %v2076_v12, %v6343_v18  ;;  %v4915_v25 = vpop.f32.mrf.mxu0 }
 0x176   : > { %v4864_v39 = vpop.f32.mrf.mxu1 }
 0x177   : > { %v6455_v59 = vadd.f32 %v2362_v41, %v2179_v46  ;;  %v2182_v1 = vadd.f32 %v4864_v39, %v6346_v54  ;;  %v2378_v62 = vpop.f32.mrf.mxu0 }
 0x178   : > { %v2079_v55 = vpop.f32.mrf.mxu1 }
 0x179   : > { %v6458_v40 = vadd.f32 %v4912_v34, %v2182_v1  ;;  %v2180_v33 = vadd.f32 %v2079_v55, %v6350_v21  ;;  %v4916_v24 = vpop.f32.mrf.mxu0 }
 0x17a   : > { %v4867_v16 = vpop.f32.mrf.mxu1 }
 0x17b   : > { %v6461_v32 = vadd.f32 %v2365_v52, %v2180_v33  ;;  %v2185_v50 = vadd.f32 %v4867_v16, %v6354_v49  ;;  %v2381_v47 = vpop.f32.mrf.mxu0 }
 0x17c   : > { %v2092_v18 = vpop.f32.mrf.mxu1 }
 0x17d   : > { %v6464_v26 = vadd.f32 %v4915_v25, %v2185_v50  ;;  %v2183_v45 = vadd.f32 %v2092_v18, %v6359_v56  ;;  %v4919_v8 = vpop.f32.mrf.mxu0 }
 0x17e   : > { %v4868_v54 = vpop.f32.mrf.mxu1 }
 0x17f   : > { %v6467_v42 = vadd.f32 %v2378_v62, %v2183_v45  ;;  %v2186_v28 = vadd.f32 %v4868_v54, %v6362_v10  ;;  %v2394_v53 = vpop.f32.mrf.mxu0 }
 0x180   : > { %v2095_v21 = vpop.f32.mrf.mxu1 }
 0x181   : > { %v6470_v3 = vadd.f32 %v4916_v24, %v2186_v28  ;;  %v2184_v22 = vadd.f32 %v2095_v21, %v6366_v5  ;;  %v4920_v20 = vpop.f32.mrf.mxu0 }
 0x182   : > { %v4871_v49 = vpop.f32.mrf.mxu1 }
 0x183   : > { %v6473_v58 = vadd.f32 %v2381_v47, %v2184_v22  ;;  %v2189_v41 = vadd.f32 %v4871_v49, %v6370_v27  ;;  %v2397_v43 = vpop.f32.mrf.mxu0 }
 0x184   : > { %v2108_v56 = vpop.f32.mrf.mxu1 }
 0x185   : > { %v6476_v37 = vadd.f32 %v4919_v8, %v2189_v41  ;;  %v2187_v34 = vadd.f32 %v2108_v56, %v6375_v48  ;;  %v4923_v44 = vpop.f32.mrf.mxu0 }
 0x186   : > { %v4872_v10 = vpop.f32.mrf.mxu1 }
 0x187   : > { %v6479_v17 = vadd.f32 %v2394_v53, %v2187_v34  ;;  %v2190_v52 = vadd.f32 %v4872_v10, %v6378_v29  ;;  %v2410_v12 = vpop.f32.mrf.mxu0 }
 0x188   : > { %v2111_v5 = vpop.f32.mrf.mxu1 }
 0x189   : > { %v6482_v46 = vadd.f32 %v4920_v20, %v2190_v52  ;;  %v2188_v25 = vadd.f32 %v2111_v5, %v6382_v60  ;;  %v4924_v39 = vpop.f32.mrf.mxu0 }
 0x18a   : > { %v4875_v27 = vpop.f32.mrf.mxu1 }
 0x18b   : > { %v6485_v1 = vadd.f32 %v2397_v43, %v2188_v25  ;;  %v2193_v62 = vadd.f32 %v4875_v27, %v6386_v63  ;;  %v2413_v55 = vpop.f32.mrf.mxu0 }
 0x18c   : > { %v2124_v48 = vpop.f32.mrf.mxu1 }
 0x18d   : > { %v6488_v33 = vadd.f32 %v4923_v44, %v2193_v62  ;;  %v2191_v24 = vadd.f32 %v2124_v48, %v6391_v15  ;;  %v4927_v16 = vpop.f32.mrf.mxu0 }
 0x18e   : > { %v4876_v29 = vpop.f32.mrf.mxu1 }
 0x18f   : > { %v6491_v50 = vadd.f32 %v2410_v12, %v2191_v24  ;;  %v2194_v47 = vadd.f32 %v4876_v29, %v6394_v38  ;;  %v2426_v18 = vpop.f32.mrf.mxu0 }
 0x190   : > { %v2127_v60 = vpop.f32.mrf.mxu1 }
 0x191   : > { %6841 = vst [vmem:[#allocation13_spill] sm:$0xff] %v6491_v50  ;;  %v6494_v45 = vadd.f32 %v4924_v39, %v2194_v47  ;;  %v2192_v8 = vadd.f32 %v2127_v60, %v6398_v61  ;;  %v4928_v54 = vpop.f32.mrf.mxu0 }
 0x192   : > { %v4879_v63 = vpop.f32.mrf.mxu1 }
 0x193   : > { %6842 = vst [vmem:[#allocation16_spill] sm:$0xff] %v6494_v45  ;;  %v6497_v28 = vadd.f32 %v2413_v55, %v2192_v8  ;;  %v2197_v53 = vadd.f32 %v4879_v63, %v6402_v2  ;;  %v2429_v21 = vpop.f32.mrf.mxu0 }
 0x194   : > { %v2140_v15 = vpop.f32.mrf.mxu1 }
 0x195   : > { %6843 = vst [vmem:[#allocation3_spill] sm:$0xff] %v6497_v28  ;;  %v6500_v22 = vadd.f32 %v4927_v16, %v2197_v53  ;;  %v2195_v20 = vadd.f32 %v2140_v15, %v6406_v35  ;;  %v4931_v49 = vpop.f32.mrf.mxu0 }
 0x196   : > { %v4880_v38 = vpop.f32.mrf.mxu1 }
 0x197   : > { %v6503_v41 = vadd.f32 %v2426_v18, %v2195_v20  ;;  %v2198_v43 = vadd.f32 %v4880_v38, %v6409_v31  ;;  %v2442_v56 = vpop.f32.mrf.mxu0 }
 0x198   : > { %v2143_v61 = vpop.f32.mrf.mxu1 }
 0x199   : > { %6844 = vst [vmem:[#allocation5_spill] sm:$0xff] %v6503_v41  ;;  %v6506_v34 = vadd.f32 %v4928_v54, %v2198_v43  ;;  %v2196_v44 = vadd.f32 %v2143_v61, %v6413_v36  ;;  %v4932_v10 = vpop.f32.mrf.mxu0 }
 0x19a   : > { %v4883_v2 = vpop.f32.mrf.mxu1 }
 0x19b   : > { %6845 = vst [vmem:[#allocation7_spill] sm:$0xff] %v6506_v34  ;;  %v6509_v52 = vadd.f32 %v2429_v21, %v2196_v44  ;;  %v2201_v12 = vadd.f32 %v4883_v2, %v6416_v0  ;;  %v2445_v5 = vpop.f32.mrf.mxu0 }
 0x19c   : > { %v2156_v35 = vpop.f32.mrf.mxu1 }
 0x19d   : > { %6846 = vst [vmem:[#allocation11_spill] sm:$0xff] %v6509_v52  ;;  %v6512_v25 = vadd.f32 %v4931_v49, %v2201_v12  ;;  %v2199_v39 = vadd.f32 %v2156_v35, %v6419_v57  ;;  %v4999_v27 = vpop.f32.mrf.mxu0 }
 0x19e   : > { %v4884_v31 = vpop.f32.mrf.mxu1 }
 0x19f   : > { %v6515_v62 = vadd.f32 %v2442_v56, %v2199_v39  ;;  %v2202_v55 = vadd.f32 %v4884_v31, %v6422_v23  ;;  %v2864_v48 = vpop.f32.mrf.mxu0 }
 0x1a0   : > { %v2159_v36 = vpop.f32.mrf.mxu1 }
 0x1a1   : > { %6847 = vst [vmem:[#allocation14_spill] sm:$0xff] %v6515_v62  ;;  %v6518_v24 = vadd.f32 %v4932_v10, %v2202_v55  ;;  %v2200_v16 = vadd.f32 %v2159_v36, %v6425_v11  ;;  %v6521_v29 = vpop.f32.mrf.mxu0 }
 0x1a2   : > { %v4951_v0 = vpop.f32.mrf.mxu1 }
 0x1a3   : > { %6848 = vst [vmem:[#allocation9_spill] sm:$0xff] %v6518_v24  ;;  %v6523_v47 = vadd.f32 %v2445_v5, %v2200_v16  ;;  %v2729_v18 = vadd.f32 %v4951_v0, %v6428_v9  ;;  %v6526_v57 = vpop.f32.mrf.mxu0 }
 0x1a4   : > { %v2600_v60 = vpop.f32.mrf.mxu1 }
 0x1a5   : > { %6849 = vst [vmem:[#allocation17_spill] sm:$0xff] %v6523_v47  ;;  %v6528_v8 = vadd.f32 %v4999_v27, %v2729_v18  ;;  %v2727_v23 = vadd.f32 %v2600_v60, %v6431_v7  ;;  %v5003_v54 = vpop.f32.mrf.mxu0 }
 0x1a6   : > { %v6531_v63 = vpop.f32.mrf.mxu1 }
 0x1a7   : > { %v6533_v53 = vadd.f32 %v2864_v48, %v2727_v23  ;;  %v6535_v11 = vpop.f32.mrf.mxu0 }
 0x1a8   : > { %v6537_v21 = vpop.f32.mrf.mxu1 }
 0x1a9   : > { %v6539_v15 = vpop.f32.mrf.mxu0 }
 0x1aa   : > { %v4955_v20 = vpop.f32.mrf.mxu1 }
 0x1ab   : > { %v2733_v9 = vadd.f32 %v4955_v20, %v6440_v14  ;;  %v6542_v49 = vpop.f32.mrf.mxu0 }
 0x1ac   : > { %v6544_v38 = vpop.f32.mrf.mxu1 }
 0x1ad   : > { %v6546_v43 = vadd.f32 %v5003_v54, %v2733_v9  ;;  %v5007_v7 = vpop.f32.mrf.mxu0 }
 0x1ae   : > { %v6548_v56 = vpop.f32.mrf.mxu1 }
 0x1af   : > { %v6550_v61 = vpop.f32.mrf.mxu0 }
 0x1b0   : > { %v6552_v44 = vpop.f32.mrf.mxu1 }
 0x1b1   : > { %v6554_v10 = vpop.f32.mrf.mxu0 }
 0x1b2   : > { %v4959_v2 = vpop.f32.mrf.mxu1 }
 0x1b3   : > { %v2737_v12 = vadd.f32 %v4959_v2, %v6452_v4  ;;  %v6557_v5 = vpop.f32.mrf.mxu0 }
 0x1b4   : > { %v6559_v14 = vpop.f32.mrf.mxu1 }
 0x1b5   : > { %v6561_v35 = vadd.f32 %v5007_v7, %v2737_v12  ;;  %v5011_v39 = vpop.f32.mrf.mxu0 }
 0x1b6   : > { %v6563_v27 = vpop.f32.mrf.mxu1 }
 0x1b7   : > { %v6565_v31 = vpop.f32.mrf.mxu0 }
 0x1b8   : > { %v6567_v55 = vpop.f32.mrf.mxu1 }
 0x1b9   : > { %v6569_v48 = vpop.f32.mrf.mxu0 }
 0x1ba   : > { %v4963_v36 = vpop.f32.mrf.mxu1 }
 0x1bb   : > { %v2741_v16 = vadd.f32 %v4963_v36, %v6464_v26  ;;  %v6572_v0 = vpop.f32.mrf.mxu0 }
 0x1bc   : > { %v6574_v4 = vpop.f32.mrf.mxu1 }
 0x1bd   : > { %v6576_v18 = vadd.f32 %v5011_v39, %v2741_v16  ;;  %v5015_v60 = vpop.f32.mrf.mxu0 }
 0x1be   : > { %v6578_v23 = vpop.f32.mrf.mxu1 }
 0x1bf   : > { %v6580_v54 = vpop.f32.mrf.mxu0 }
 0x1c0   : > { %v6582_v20 = vpop.f32.mrf.mxu1 }
 0x1c1   : > { %v6584_v9 = vpop.f32.mrf.mxu0 }
 0x1c2   : > { %v4967_v7 = vpop.f32.mrf.mxu1 }
 0x1c3   : > { %v2745_v2 = vadd.f32 %v4967_v7, %v6476_v37  ;;  %v6587_v12 = vpop.f32.mrf.mxu0 }
 0x1c4   : > { %6850 = vst [vmem:[#allocation12_spill] sm:$0xff] %v6587_v12  ;;  %v6589_v26 = vpop.f32.mrf.mxu1 }
 0x1c5   : > { %v6591_v36 = vadd.f32 %v5015_v60, %v2745_v2  ;;  %v5019_v39 = vpop.f32.mrf.mxu0 }
 0x1c6   : > { %v6593_v16 = vpop.f32.mrf.mxu1 }
 0x1c7   : > { %v6595_v47 = vpop.f32.mrf.mxu0 }
 0x1c8   : > { %6851 = vst [vmem:[#allocation15_spill] sm:$0xff] %v6595_v47  ;;  %v6597_v24 = vpop.f32.mrf.mxu1 }
 0x1c9   : > { %v6599_v62 = vpop.f32.mrf.mxu0 }
 0x1ca   : > { %6852 = vst [vmem:[#allocation2_spill] sm:$0xff] %v6599_v62  ;;  %v4971_v52 = vpop.f32.mrf.mxu1 }
 0x1cb   : > { %v2749_v34 = vadd.f32 %v4971_v52, %v6488_v33  ;;  %v6602_v41 = vpop.f32.mrf.mxu0 }
 0x1cc   : > { %6853 = vst [vmem:[#allocation4_spill] sm:$0xff] %v6602_v41  ;;  %v6604_v37 = vpop.f32.mrf.mxu1 }
 0x1cd   : > { %v6606_v7 = vadd.f32 %v5019_v39, %v2749_v34  ;;  %v5023_v60 = vpop.f32.mrf.mxu0 }
 0x1ce   : > { %v6608_v2 = vpop.f32.mrf.mxu1 }
 0x1cf   : > { %6854 = vst [vmem:[#allocation6_spill] sm:$0xff] %v6606_v7  ;;  %6855 = vst [vmem:[#allocation8_spill] sm:$0xff] %v6608_v2  ;;  %v6610_v28 = vpop.f32.mrf.mxu0 }
 0x1d0   : > { %6856 = vst [vmem:[#allocation10_spill] sm:$0xff] %v6610_v28  ;;  %v6612_v45 = vpop.f32.mrf.mxu1 }
 0x1d1   : > { %6857 = vst [vmem:[#allocation18_spill] sm:$0xff] %v6612_v45  ;;  %v6614_v47 = vpop.f32.mrf.mxu0 }
 0x1d2   : > { %6858 = vst [vmem:[#allocation19_spill] sm:$0xff] %v6614_v47  ;;  %v4975_v50 = vpop.f32.mrf.mxu1 }
 0x1d3   : > { %v2753_v62 = vadd.f32 %v4975_v50, %v6500_v22  ;;  %v6617_v12 = vpop.f32.mrf.mxu0 }
 0x1d4   : > { %6859 = vst [vmem:[#allocation20_spill] sm:$0xff] %v6617_v12  ;;  %v6619_v33 = vpop.f32.mrf.mxu1 }
 0x1d5   : > { %6860 = vst [vmem:[#allocation21_spill] sm:$0xff] %v6619_v33  ;;  %v6621_v52 = vadd.f32 %v5023_v60, %v2753_v62  ;;  %v5027_v34 = vpop.f32.mrf.mxu0 }
 0x1d6   : > { %v6623_v39 = vpop.f32.mrf.mxu1 }
 0x1d7   : > { %6861 = vst [vmem:[#allocation22_spill] sm:$0xff] %v6621_v52  ;;  %6862 = vst [vmem:[#allocation23_spill] sm:$0xff] %v6623_v39  ;;  %v6625_v41 = vpop.f32.mrf.mxu0 }
 0x1d8   : > { %6863 = vst [vmem:[#allocation24_spill] sm:$0xff] %v6625_v41  ;;  %v6627_v7 = vpop.f32.mrf.mxu1  ;;  %v2730_v41 = vadd.f32 %v6531_v63, %v6434_v6  ;;  %v2731_v63 = vadd.f32 %v6544_v38, %v6443_v51 }
 0x1d9   : > { %6864 = vst [vmem:[#allocation25_spill] sm:$0xff] %v6627_v7  ;;  %v6629_v28 = vpop.f32.mrf.mxu0 }
 0x1da   : > { %6865 = vst [vmem:[#allocation26_spill] sm:$0xff] %v6629_v28  ;;  %v4979_v45 = vpop.f32.mrf.mxu1 }
 0x1db   : > { %v2757_v47 = vadd.f32 %v4979_v45, %v6512_v25  ;;  %v6632_v2 = vpop.f32.mrf.mxu0  ;;  %v2728_v45 = vadd.f32 %v6537_v21, %v6437_v19  ;;  %v2734_v19 = vadd.f32 %v6548_v56, %v6446_v13  ;;  %v2995_v13 = vadd.f32 %v6535_v11, %v2731_v63 }
 0x1dc   : > { %6866 = vst [vmem:[#allocation27_spill] sm:$0xff] %v6632_v2  ;;  %v6634_v50 = vpop.f32.mrf.mxu1  ;;  %v2738_v63 = vadd.f32 %v6563_v27, %v6458_v40 }
 0x1dd   : > { %6867 = vst [vmem:[#allocation28_spill] sm:$0xff] %v6634_v50  ;;  %v6636_v22 = vadd.f32 %v5027_v34, %v2757_v47  ;;  %v5095_v62 = vpop.f32.mrf.mxu0  ;;  %v2994_v47 = vadd.f32 %v6521_v29, %v2730_v41 }
 0x1de   : > { %v6638_v60 = vpop.f32.mrf.mxu1 }
 0x1df   : > { %6868 = vst [vmem:[#allocation29_spill] sm:$0xff] %v6636_v22  ;;  %6869 = vst [vmem:[#allocation30_spill] sm:$0xff] %v6638_v60  ;;  %v3420_v12 = vpop.f32.mrf.mxu0 }
 0x1e0   : > { %v6640_v52 = vpop.f32.mrf.mxu1 }
 0x1e1   : > { %6870 = vst [vmem:[#allocation31_spill] sm:$0xff] %v6640_v52  ;;  %v5096_v28 = vpop.f32.mrf.mxu0  ;;  %v2992_v52 = vadd.f32 %v6526_v57, %v2728_v45 }
 0x1e2   : > { %v5047_v7 = vpop.f32.mrf.mxu1 }
 0x1e3   : > { %v3423_v25 = vpop.f32.mrf.mxu0  ;;  %v3279_v34 = vadd.f32 %v5047_v7, %v6528_v8 }
 0x1e4   : > { %v3150_v2 = vpop.f32.mrf.mxu1 }
 0x1e5   : > { %v3277_v22 = vadd.f32 %v3150_v2, %v6533_v53  ;;  %v5099_v60 = vpop.f32.mrf.mxu0  ;;  %v3549_v33 = vadd.f32 %v5095_v62, %v3279_v34  ;;  %v2732_v53 = vadd.f32 %v6552_v44, %v6449_v30  ;;  %v2735_v62 = vadd.f32 %v6559_v14, %v6455_v59 }
 0x1e6   : > { %v5048_v50 = vpop.f32.mrf.mxu1 }
 0x1e7   : > { %v3280_v39 = vadd.f32 %v5048_v50, %v2994_v47  ;;  %v3436_v6 = vpop.f32.mrf.mxu0  ;;  %v3547_v41 = vadd.f32 %v3420_v12, %v3277_v22  ;;  %v2996_v22 = vadd.f32 %v6542_v49, %v2732_v53  ;;  %v3778_v47 = vmul.f32 %v3549_v33, %v3549_v33 }
 0x1e8   : > { %v3153_v21 = vpop.f32.mrf.mxu1 }
 0x1e9   : > { %v3550_v29 = vadd.f32 %v5096_v28, %v3280_v39  ;;  %v3278_v8 = vadd.f32 %v3153_v21, %v2992_v52  ;;  %v5100_v7 = vpop.f32.mrf.mxu0  ;;  %v2998_v28 = vadd.f32 %v6539_v15, %v2734_v19  ;;  %v3776_v52 = vmul.f32 %v3547_v41, %v3547_v41 }
 0x1ea   : > { %v5051_v57 = vpop.f32.mrf.mxu1 }
 0x1eb   : > { %v4390_v51 = vpack.c.bf16 %v3550_v29, %v3549_v33  ;;  %v3548_v38 = vadd.f32 %v3423_v25, %v3278_v8  ;;  %v3439_v2 = vpop.f32.mrf.mxu0  ;;  %v3283_v56 = vadd.f32 %v5051_v57, %v6546_v43  ;;  %v3779_v19 = vmul.f32 %v3550_v29, %v3550_v29 }
 0x1ec   : > { %v3166_v12 = vpop.f32.mrf.mxu1 }
 0x1ed   : > { %4462 = vst [vmem:[%s6660_s11 + $0x8] sm:$0xff] %v4390_v51   ;;  %v4385_v30 = vpack.c.bf16 %v3548_v38, %v3547_v41  ;;  %v3739_v44 = vadd.f32 %v3548_v38, %v3547_v41  ;;  %v3777_v39 = vmul.f32 %v3548_v38, %v3548_v38  ;;  %v5103_v50 = vpop.f32.mrf.mxu0  ;;  %v3281_v45 = vadd.f32 %v3166_v12, %v2995_v13 }
 0x1ee   : > { %v5052_v25 = vpop.f32.mrf.mxu1  ;;  %v3553_v21 = vadd.f32 %v5099_v60, %v3283_v56  ;;  %v2999_v51 = vadd.f32 %v6550_v61, %v2735_v62  ;;  %v3002_v56 = vadd.f32 %v6554_v10, %v2738_v63 }
 0x1ef   : > { %4386 = vst [vmem:[%s6660_s11] sm:$0xff] %v4385_v30   ;;  %v3740_v11 = vadd.f32 %v3739_v44, %v3549_v33  ;;  %v3808_v15 = vadd.f32 %v3777_v39, %v3776_v52  ;;  %v3284_v34 = vadd.f32 %v5052_v25, %v2998_v28  ;;  %v3452_v43 = vpop.f32.mrf.mxu0  ;;  %v3551_v41 = vadd.f32 %v3436_v6, %v3281_v45 }
 0x1f0   : > { %v3169_v8 = vpop.f32.mrf.mxu1  ;;  %v2736_v33 = vadd.f32 %v6567_v55, %v6461_v32  ;;  %v3782_v45 = vmul.f32 %v3553_v21, %v3553_v21 }
 0x1f1   : > { %v3809_v57 = vadd.f32 %v3808_v15, %v3778_v47  ;;  %v3741_v49 = vadd.f32 %v3740_v11, %v3550_v29  ;;  %v3554_v53 = vadd.f32 %v5100_v7, %v3284_v34  ;;  %v3282_v59 = vadd.f32 %v3169_v8, %v2996_v22  ;;  %v5104_v14 = vpop.f32.mrf.mxu0 }
 0x1f2   : > { %v5055_v38 = vpop.f32.mrf.mxu1  ;;  %v3780_v28 = vmul.f32 %v3551_v41, %v3551_v41  ;;  %v3000_v39 = vadd.f32 %v6557_v5, %v2736_v33  ;;  %v2739_v22 = vadd.f32 %v6574_v4, %v6467_v42 }
 0x1f3   : > { %v3742_v13 = vadd.f32 %v3741_v49, %v3551_v41  ;;  %v3810_v12 = vadd.f32 %v3809_v57, %v3779_v19  ;;  %v4400_v40 = vpack.c.bf16 %v3554_v53, %v3553_v21  ;;  %v3455_v27 = vpop.f32.mrf.mxu0  ;;  %v3552_v60 = vadd.f32 %v3439_v2, %v3282_v59 }
 0x1f4   : > { %v3182_v6 = vpop.f32.mrf.mxu1  ;;  %v3287_v7 = vadd.f32 %v5055_v38, %v6561_v35  ;;  %v2742_v2 = vadd.f32 %v6578_v23, %v6470_v3  ;;  %v3783_v5 = vmul.f32 %v3554_v53, %v3554_v53  ;;  %v3003_v4 = vadd.f32 %v6565_v31, %v2739_v22 }
 0x1f5   : > { %v3811_v29 = vadd.f32 %v3810_v12, %v3780_v28  ;;  %4464 = vst [vmem:[%s6660_s11 + $0x18] sm:$0xff] %v4400_v40   ;;  %v3285_v52 = vadd.f32 %v3182_v6, %v2999_v51  ;;  %v5107_v61 = vpop.f32.mrf.mxu0  ;;  %v4395_v30 = vpack.c.bf16 %v3552_v60, %v3551_v41  ;;  %v3743_v44 = vadd.f32 %v3742_v13, %v3552_v60 }
 0x1f6   : > { %v3781_v32 = vmul.f32 %v3552_v60, %v3552_v60  ;;  %v5056_v55 = vpop.f32.mrf.mxu1  ;;  %v3557_v15 = vadd.f32 %v5103_v50, %v3287_v7  ;;  %v2740_v3 = vadd.f32 %v6582_v20, %v6473_v58  ;;  %v2746_v12 = vadd.f32 %v6593_v16, %v6482_v46 }
 0x1f7   : > { %v3288_v10 = vadd.f32 %v5056_v55, %v3002_v56  ;;  %v3468_v62 = vpop.f32.mrf.mxu0  ;;  %4463 = vst [vmem:[%s6660_s11 + $0x10] sm:$0xff] %v4395_v30   ;;  %v3744_v25 = vadd.f32 %v3743_v44, %v3553_v21  ;;  %v3555_v47 = vadd.f32 %v3452_v43, %v3285_v52  ;;  %v3006_v43 = vadd.f32 %v6569_v48, %v2742_v2 }
 0x1f8   : > { %v3812_v35 = vadd.f32 %v3811_v29, %v3781_v32  ;;  %v3185_v11 = vpop.f32.mrf.mxu1  ;;  %v3004_v20 = vadd.f32 %v6572_v0, %v2740_v3  ;;  %v2743_v48 = vadd.f32 %v6589_v26, %v6479_v17  ;;  %v3786_v60 = vmul.f32 %v3557_v15, %v3557_v15 }
 0x1f9   : > { %v3558_v34 = vadd.f32 %v5104_v14, %v3288_v10  ;;  %v3286_v63 = vadd.f32 %v3185_v11, %v3000_v39  ;;  %v5108_v19 = vpop.f32.mrf.mxu0  ;;  %v3745_v8 = vadd.f32 %v3744_v25, %v3554_v53  ;;  %v3784_v50 = vmul.f32 %v3555_v47, %v3555_v47 }
 0x1fa   : > { %v3813_v41 = vadd.f32 %v3812_v35, %v3782_v45  ;;  %v5059_v42 = vpop.f32.mrf.mxu1  ;;  %v3007_v26 = vadd.f32 %v6580_v54, %v2743_v48  ;;  %v2744_v46 = vadd.f32 %v6597_v24, %v6485_v1  ;;  %v3010_v2 = vadd.f32 %v6584_v9, %v2746_v12  ;;  %v6871_v24 = vld [vmem:[#allocation12_spill] sm:$0xff] }
 0x1fb   : > { %v4410_v23 = vpack.c.bf16 %v3558_v34, %v3557_v15  ;;  %v3556_v57 = vadd.f32 %v3455_v27, %v3286_v63  ;;  %v3471_v21 = vpop.f32.mrf.mxu0  ;;  %v3746_v49 = vadd.f32 %v3745_v8, %v3555_v47  ;;  %v3291_v53 = vadd.f32 %v5059_v42, %v6576_v18 }
 0x1fc   : > { %v3814_v59 = vadd.f32 %v3813_v41, %v3783_v5  ;;  %v3198_v14 = vpop.f32.mrf.mxu1  ;;  %v3787_v0 = vmul.f32 %v3558_v34, %v3558_v34  ;;  %v3008_v63 = vadd.f32 %v6871_v24, %v2744_v46  ;;  %v6873_v5 = vld [vmem:[#allocation16_spill] sm:$0xff]  ;;  %v6881_v46 = vld [vmem:[#allocation5_spill] sm:$0xff] }
 0x1fd   : > { %4466 = vst [vmem:[%s6660_s11 + $0x28] sm:$0xff] %v4410_v23   ;;  %v4405_v51 = vpack.c.bf16 %v3556_v57, %v3555_v47  ;;  %v3785_v33 = vmul.f32 %v3556_v57, %v3556_v57  ;;  %v3289_v38 = vadd.f32 %v3198_v14, %v3003_v4  ;;  %v5111_v31 = vpop.f32.mrf.mxu0  ;;  %v3747_v28 = vadd.f32 %v3746_v49, %v3556_v57  ;;  %v6874_v41 = vld [vmem:[#allocation8_spill] sm:$0xff] }
 0x1fe   : > { %v3815_v13 = vadd.f32 %v3814_v59, %v3784_v50  ;;  %v5060_v58 = vpop.f32.mrf.mxu1  ;;  %v3561_v7 = vadd.f32 %v5107_v61, %v3291_v53  ;;  %v2750_v8 = vadd.f32 %v6874_v41, %v6873_v5  ;;  %v6875_v53 = vld [vmem:[#allocation15_spill] sm:$0xff]  ;;  %v6885_v41 = vld [vmem:[#allocation10_spill] sm:$0xff] }
 0x1ff   : > { %4465 = vst [vmem:[%s6660_s11 + $0x20] sm:$0xff] %v4405_v51   ;;  %v3292_v40 = vadd.f32 %v5060_v58, %v3006_v43  ;;  %v3484_v27 = vpop.f32.mrf.mxu0  ;;  %v3748_v6 = vadd.f32 %v3747_v28, %v3557_v15  ;;  %v3559_v18 = vadd.f32 %v3468_v62, %v3289_v38  ;;  %v6877_v28 = vld [vmem:[#allocation18_spill] sm:$0xff] }
 0x200   : > { %v3816_v56 = vadd.f32 %v3815_v13, %v3785_v33  ;;  %v3201_v29 = vpop.f32.mrf.mxu1  ;;  %v3790_v3 = vmul.f32 %v3561_v7, %v3561_v7  ;;  %v6876_v13 = vld [vmem:[#allocation3_spill] sm:$0xff] }
 0x201   : > { %v3562_v52 = vadd.f32 %v5108_v19, %v3292_v40  ;;  %v3290_v30 = vadd.f32 %v3201_v29, %v3004_v20  ;;  %v5112_v44 = vpop.f32.mrf.mxu0  ;;  %v3749_v55 = vadd.f32 %v3748_v6, %v3558_v34  ;;  %v3788_v61 = vmul.f32 %v3559_v18, %v3559_v18  ;;  %v6872_v19 = vld [vmem:[#allocation13_spill] sm:$0xff]  ;;  %v6878_v40 = vld [vmem:[#allocation2_spill] sm:$0xff] }
 0x202   : > { %v3817_v32 = vadd.f32 %v3816_v56, %v3786_v60  ;;  %v5063_v17 = vpop.f32.mrf.mxu1  ;;  %v2747_v9 = vadd.f32 %v6604_v37, %v6872_v19  ;;  %v2748_v58 = vadd.f32 %v6877_v28, %v6876_v13 }
 0x203   : > { %v4420_v16 = vpack.c.bf16 %v3562_v52, %v3561_v7  ;;  %v3560_v39 = vadd.f32 %v3471_v21, %v3290_v30  ;;  %v3487_v22 = vpop.f32.mrf.mxu0  ;;  %v3750_v10 = vadd.f32 %v3749_v55, %v3559_v18  ;;  %v3295_v47 = vadd.f32 %v5063_v17, %v6591_v36  ;;  %v6880_v17 = vld [vmem:[#allocation4_spill] sm:$0xff] }
 0x204   : > { %v3818_v62 = vadd.f32 %v3817_v32, %v3787_v0  ;;  %v3214_v45 = vpop.f32.mrf.mxu1  ;;  %v3791_v14 = vmul.f32 %v3562_v52, %v3562_v52  ;;  %v3011_v38 = vadd.f32 %v6875_v53, %v2747_v9 }
 0x205   : > { %4468 = vst [vmem:[%s6660_s11 + $0x38] sm:$0xff] %v4420_v16   ;;  %v4415_v25 = vpack.c.bf16 %v3560_v39, %v3559_v18  ;;  %v3789_v35 = vmul.f32 %v3560_v39, %v3560_v39  ;;  %v3293_v11 = vadd.f32 %v3214_v45, %v3007_v26  ;;  %v5115_v54 = vpop.f32.mrf.mxu0  ;;  %v3751_v34 = vadd.f32 %v3750_v10, %v3560_v39  ;;  %v6882_v16 = vld [vmem:[#allocation21_spill] sm:$0xff] }
 0x206   : > { %v3819_v15 = vadd.f32 %v3818_v62, %v3788_v61  ;;  %v5064_v1 = vpop.f32.mrf.mxu1  ;;  %v3565_v43 = vadd.f32 %v5111_v31, %v3295_v47  ;;  %v3012_v26 = vadd.f32 %v6880_v17, %v2748_v58  ;;  %v2751_v39 = vadd.f32 %v6882_v16, %v6881_v46 }
 0x207   : > { %4467 = vst [vmem:[%s6660_s11 + $0x30] sm:$0xff] %v4415_v25   ;;  %v3296_v42 = vadd.f32 %v5064_v1, %v3010_v2  ;;  %v3500_v4 = vpop.f32.mrf.mxu0  ;;  %v3752_v23 = vadd.f32 %v3751_v34, %v3561_v7  ;;  %v3563_v36 = vadd.f32 %v3484_v27, %v3293_v11  ;;  %v3014_v27 = vadd.f32 %v6878_v40, %v2750_v8  ;;  %v6879_v7 = vld [vmem:[#allocation6_spill] sm:$0xff]  ;;  %v6884_v2 = vld [vmem:[#allocation23_spill] sm:$0xff]  ;;  %v6892_v40 = vld [vmem:[#allocation28_spill] sm:$0xff] }
 0x208   : > { %v3820_v57 = vadd.f32 %v3819_v15, %v3789_v35  ;;  %v3217_v21 = vpop.f32.mrf.mxu1  ;;  %v3794_v45 = vmul.f32 %v3565_v43, %v3565_v43  ;;  %v3015_v8 = vadd.f32 %v6885_v41, %v2751_v39 }
 0x209   : > { %v3566_v49 = vadd.f32 %v5112_v44, %v3296_v42  ;;  %v3294_v50 = vadd.f32 %v3217_v21, %v3008_v63  ;;  %v5116_v59 = vpop.f32.mrf.mxu0  ;;  %v3753_v33 = vadd.f32 %v3752_v23, %v3562_v52  ;;  %v3792_v31 = vmul.f32 %v3563_v36, %v3563_v36  ;;  %v6886_v42 = vld [vmem:[#allocation11_spill] sm:$0xff] }
 0x20a   : > { %v3821_v51 = vadd.f32 %v3820_v57, %v3790_v3  ;;  %v5067_v37 = vpop.f32.mrf.mxu1  ;;  %v6887_v3 = vld [vmem:[#allocation25_spill] sm:$0xff] }
 0x20b   : > { %v4430_v20 = vpack.c.bf16 %v3566_v49, %v3565_v43  ;;  %v3564_v48 = vadd.f32 %v3487_v22, %v3294_v50  ;;  %v3503_v12 = vpop.f32.mrf.mxu0  ;;  %v3754_v60 = vadd.f32 %v3753_v33, %v3563_v36  ;;  %v3299_v52 = vadd.f32 %v5067_v37, %v6879_v7  ;;  %v6883_v22 = vld [vmem:[#allocation7_spill] sm:$0xff] }
 0x20c   : > { %v3822_v6 = vadd.f32 %v3821_v51, %v3791_v14  ;;  %v3230_v56 = vpop.f32.mrf.mxu1  ;;  %v2754_v10 = vadd.f32 %v6884_v2, %v6883_v22  ;;  %v3795_v63 = vmul.f32 %v3566_v49, %v3566_v49  ;;  %v2752_v23 = vadd.f32 %v6887_v3, %v6886_v42  ;;  %v6895_v22 = vld [vmem:[#allocation24_spill] sm:$0xff]  ;;  %v6900_v3 = vld [vmem:[#allocation27_spill] sm:$0xff] }
 0x20d   : > { %4470 = vst [vmem:[%s6660_s11 + $0x48] sm:$0xff] %v4430_v20   ;;  %v4425_v18 = vpack.c.bf16 %v3564_v48, %v3563_v36  ;;  %v3793_v29 = vmul.f32 %v3564_v48, %v3564_v48  ;;  %v3297_v30 = vadd.f32 %v3230_v56, %v3011_v38  ;;  %v5119_v44 = vpop.f32.mrf.mxu0  ;;  %v3755_v32 = vadd.f32 %v3754_v60, %v3564_v48  ;;  %v6890_v20 = vld [vmem:[#allocation20_spill] sm:$0xff]  ;;  %v6893_v60 = vld [vmem:[#allocation9_spill] sm:$0xff] }
 0x20e   : > { %v3823_v0 = vadd.f32 %v3822_v6, %v3792_v31  ;;  %v5068_v55 = vpop.f32.mrf.mxu1  ;;  %v3569_v15 = vadd.f32 %v5115_v54, %v3299_v52  ;;  %v3016_v48 = vadd.f32 %v6890_v20, %v2752_v23  ;;  %v6894_v31 = vld [vmem:[#allocation30_spill] sm:$0xff] }
 0x20f   : > { %4469 = vst [vmem:[%s6660_s11 + $0x40] sm:$0xff] %v4425_v18   ;;  %v3300_v61 = vadd.f32 %v5068_v55, %v3014_v27  ;;  %v3516_v62 = vpop.f32.mrf.mxu0  ;;  %v3756_v25 = vadd.f32 %v3755_v32, %v3565_v43  ;;  %v3567_v47 = vadd.f32 %v3500_v4, %v3297_v30  ;;  %v6888_v43 = vld [vmem:[#allocation19_spill] sm:$0xff]  ;;  %v2758_v6 = vadd.f32 %v6894_v31, %v6893_v60 }
 0x210   : > { %v3824_v35 = vadd.f32 %v3823_v0, %v3793_v29  ;;  %v3233_v11 = vpop.f32.mrf.mxu1  ;;  %v3018_v4 = vadd.f32 %v6888_v43, %v2754_v10  ;;  %v3798_v18 = vmul.f32 %v3569_v15, %v3569_v15  ;;  %v6896_v10 = vld [vmem:[#allocation17_spill] sm:$0xff] }
 0x211   : > { %v3570_v34 = vadd.f32 %v5116_v59, %v3300_v61  ;;  %v3298_v1 = vadd.f32 %v3233_v11, %v3012_v26  ;;  %v5120_v24 = vpop.f32.mrf.mxu0  ;;  %v3757_v9 = vadd.f32 %v3756_v25, %v3566_v49  ;;  %v3796_v54 = vmul.f32 %v3567_v47, %v3567_v47  ;;  %v6889_v49 = vld [vmem:[#allocation22_spill] sm:$0xff]  ;;  %v6897_v61 = vld [vmem:[#allocation31_spill] sm:$0xff] }
 0x212   : > { %v3825_v19 = vadd.f32 %v3824_v35, %v3794_v45  ;;  %v5071_v5 = vpop.f32.mrf.mxu1  ;;  %v2756_v45 = vadd.f32 %v6897_v61, %v6896_v10 }
 0x213   : > { %v4440_v57 = vpack.c.bf16 %v3570_v34, %v3569_v15  ;;  %v3568_v36 = vadd.f32 %v3503_v12, %v3298_v1  ;;  %v3519_v21 = vpop.f32.mrf.mxu0  ;;  %v3758_v50 = vadd.f32 %v3757_v9, %v3567_v47  ;;  %v3303_v37 = vadd.f32 %v5071_v5, %v6889_v49  ;;  %v6891_v12 = vld [vmem:[#allocation14_spill] sm:$0xff] }
 0x214   : > { %v3826_v59 = vadd.f32 %v3825_v19, %v3795_v63  ;;  %v3246_v14 = vpop.f32.mrf.mxu1  ;;  %v2755_v27 = vadd.f32 %v6892_v40, %v6891_v12  ;;  %v3799_v17 = vmul.f32 %v3570_v34, %v3570_v34  ;;  %v3020_v23 = vadd.f32 %v6900_v3, %v2756_v45 }
 0x215   : > { %4472 = vst [vmem:[%s6660_s11 + $0x58] sm:$0xff] %v4440_v57   ;;  %v4435_v51 = vpack.c.bf16 %v3568_v36, %v3567_v47  ;;  %v3797_v33 = vmul.f32 %v3568_v36, %v3568_v36  ;;  %v3301_v53 = vadd.f32 %v3246_v14, %v3015_v8  ;;  %v3759_v13 = vadd.f32 %v3758_v50, %v3568_v36  ;;  %v5123_v58 = vpop.f32.mrf.mxu0  ;;  %v6898_v47 = vld [vmem:[#allocation26_spill] sm:$0xff] }
 0x216   : > { %v3827_v38 = vadd.f32 %v3826_v59, %v3796_v54  ;;  %v5072_v28 = vpop.f32.mrf.mxu1  ;;  %v3573_v0 = vadd.f32 %v5119_v44, %v3303_v37  ;;  %v3019_v2 = vadd.f32 %v6895_v22, %v2755_v27 }
 0x217   : > { %4471 = vst [vmem:[%s6660_s11 + $0x50] sm:$0xff] %v4435_v51   ;;  %v3304_v56 = vadd.f32 %v5072_v28, %v3018_v4  ;;  %v3760_v29 = vadd.f32 %v3759_v13, %v3569_v15  ;;  %v3571_v52 = vadd.f32 %v3516_v62, %v3301_v53  ;;  %v3532_v39 = vpop.f32.mrf.mxu0  ;;  %v3022_v62 = vadd.f32 %v6898_v47, %v2758_v6 }
 0x218   : > { %v3828_v7 = vadd.f32 %v3827_v38, %v3797_v33  ;;  %v3249_v30 = vpop.f32.mrf.mxu1  ;;  %v3802_v36 = vmul.f32 %v3573_v0, %v3573_v0 }
 0x219   : > { %v3574_v32 = vadd.f32 %v5120_v24, %v3304_v56  ;;  %v3302_v55 = vadd.f32 %v3249_v30, %v3016_v48  ;;  %v3761_v46 = vadd.f32 %v3760_v29, %v3570_v34  ;;  %v3800_v44 = vmul.f32 %v3571_v52, %v3571_v52  ;;  %v6899_v34 = vld [vmem:[#allocation29_spill] sm:$0xff]  ;;  %v5124_v42 = vpop.f32.mrf.mxu0 }
 0x21a   : > { %v3829_v26 = vadd.f32 %v3828_v7, %v3798_v18  ;;  %v5075_v16 = vpop.f32.mrf.mxu1 }
 0x21b   : > { %v4450_v25 = vpack.c.bf16 %v3574_v32, %v3573_v0  ;;  %v3572_v35 = vadd.f32 %v3519_v21, %v3302_v55  ;;  %v3762_v11 = vadd.f32 %v3761_v46, %v3571_v52  ;;  %v3307_v19 = vadd.f32 %v5075_v16, %v6899_v34  ;;  %v3535_v37 = vpop.f32.mrf.mxu0 }
 0x21c   : > { %v3830_v15 = vadd.f32 %v3829_v26, %v3799_v17  ;;  %v3262_v1 = vpop.f32.mrf.mxu1  ;;  %v3803_v51 = vmul.f32 %v3574_v32, %v3574_v32 }
 0x21d   : > { %4474 = vst [vmem:[%s6660_s11 + $0x68] sm:$0xff] %v4450_v25   ;;  %v4445_v24 = vpack.c.bf16 %v3572_v35, %v3571_v52  ;;  %v3801_v63 = vmul.f32 %v3572_v35, %v3572_v35  ;;  %v3305_v9 = vadd.f32 %v3262_v1, %v3019_v2  ;;  %v3763_v41 = vadd.f32 %v3762_v11, %v3572_v35 }
 0x21e   : > { %v3831_v5 = vadd.f32 %v3830_v15, %v3800_v44  ;;  %v5076_v8 = vpop.f32.mrf.mxu1  ;;  %v3577_v54 = vadd.f32 %v5123_v58, %v3307_v19 }
 0x21f   : > { %4473 = vst [vmem:[%s6660_s11 + $0x60] sm:$0xff] %v4445_v24   ;;  %v3308_v57 = vadd.f32 %v5076_v8, %v3022_v62  ;;  %v3764_v21 = vadd.f32 %v3763_v41, %v3573_v0  ;;  %v3575_v4 = vadd.f32 %v3532_v39, %v3305_v9 }
 0x220   : > { %v3832_v43 = vadd.f32 %v3831_v5, %v3801_v63  ;;  %v3265_v50 = vpop.f32.mrf.mxu1  ;;  %v3806_v60 = vmul.f32 %v3577_v54, %v3577_v54 }
 0x221   : > { %v3578_v59 = vadd.f32 %v5124_v42, %v3308_v57  ;;  %v3306_v14 = vadd.f32 %v3265_v50, %v3020_v23  ;;  %v3765_v49 = vadd.f32 %v3764_v21, %v3574_v32  ;;  %v3804_v28 = vmul.f32 %v3575_v4, %v3575_v4 }
 0x222   : > { %v3833_v33 = vadd.f32 %v3832_v43, %v3802_v36 }
 0x223   : > { %v4460_v53 = vpack.c.bf16 %v3578_v59, %v3577_v54  ;;  %v3576_v38 = vadd.f32 %v3535_v37, %v3306_v14  ;;  %v3766_v13 = vadd.f32 %v3765_v49, %v3575_v4  ;;  %v3807_v6 = vmul.f32 %v3578_v59, %v3578_v59 }
 0x224   : > { %v3834_v20 = vadd.f32 %v3833_v33, %v3803_v51 }
 0x225   : > { %4476 = vst [vmem:[%s6660_s11 + $0x78] sm:$0xff] %v4460_v53   ;;  %v4455_v48 = vpack.c.bf16 %v3576_v38, %v3575_v4  ;;  %v3805_v12 = vmul.f32 %v3576_v38, %v3576_v38  ;;  %v3767_v27 = vadd.f32 %v3766_v13, %v3576_v38 }
 0x226   : > { %v3835_v40 = vadd.f32 %v3834_v20, %v3804_v28 }
 0x227   : > { %4475 = vst [vmem:[%s6660_s11 + $0x70] sm:$0xff] %v4455_v48   ;;  %v3768_v58 = vadd.f32 %v3767_v27, %v3577_v54 }
 0x228   : > { %v3836_v31 = vadd.f32 %v3835_v40, %v3805_v12 }
 0x229   : > { %v3769_v56 = vadd.f32 %v3768_v58, %v3578_v59 }
 0x22a   : > { %v3837_v18 = vadd.f32 %v3836_v31, %v3806_v60 }
 0x22b   : > { %v3770_v29 = vrot.slane %v3769_v56, 4 }
 0x22c   : > { %v3838_v7 = vadd.f32 %v3837_v18, %v3807_v6 }
 0x22d   : > { %v3771_v52 = vadd.f32 %v3770_v29, %v3769_v56 }
 0x22e   : > { %v3839_v30 = vrot.slane %v3838_v7, 4 }
 0x22f   : > { %v3772_v0 = vrot.slane %v3771_v52, 2 }
 0x230   : > { %v3840_v32 = vadd.f32 %v3839_v30, %v3838_v7 }
 0x231   : > { %v3773_v55 = vadd.f32 %v3772_v0, %v3771_v52 }
 0x232   : > { %v3841_v17 = vrot.slane %v3840_v32, 2 }
 0x233   : > { %v3774_v26 = vrot.slane %v3773_v55, 1 }
 0x234   : > { %v3842_v46 = vadd.f32 %v3841_v17, %v3840_v32 }
 0x235   : > { %v3775_v39 = vadd.f32 %v3774_v26, %v3773_v55 }
 0x236   : > { %v3843_v16 = vrot.slane %v3842_v46, 1 }
 0x238   : > { %v3844_v22 = vadd.f32 %v3843_v16, %v3842_v46 }
 0x23a   : > { %v3846_v2 = vsel %vm3845_vm6, %v3775_v39, %v3844_v22 }
 0x23b   : > { %3847 = vst [vmem:[%s421_s15] sm:$0x3] %v3846_v2 }
 0x23c PF: > { %s16_s20 = sadd.s32 1, %s5286_s20   ;;  %s6901_s18 = smov %s5282_s19 }
 0x23d   : > { %p13_p5 = scmp.ge.s32.totalorder %s16_s20, 4   ;;  %s6902_s19 = smov %s6904_s1 }
 0x23f   :  { %15 = sbr.rel (!%p13_p5) target bundleno = 2 (0x2), region = 93 }

</bundles_post_ra>
